<compile_context>
chip_gen: v5e
topology: v5e:2x2
jax: 0.10.0
libtpu: 0.0.40
codegen_flags: <defaults>
</compile_context>

<pallas_src>
import functools

import jax
import jax.numpy as jnp
from jax import lax
from jax.experimental import pallas as pl
from jax.experimental.pallas import tpu as pltpu

_EPS = 1e-5
_SLOPE = 0.2
_VMEM_LIMIT = 64 * 1024 * 1024      # explicit scoped-VMEM ceiling (fits v7x 64 MiB physical)
_VMEM_BUDGET = 20 * 1024 * 1024     # per-grid-step live-bytes target (double-buffer headroom)


# ---------------------------------------------------------------------------
# Tile-size helpers (divisor based, keep 8-row alignment, respect VMEM budget)
# ---------------------------------------------------------------------------
def _pick_batch_tile(n, per_sample_bytes, rows_per_sample, budget=_VMEM_BUDGET):
    divisors = [d for d in range(1, n + 1) if n % d == 0]
    ok = [d for d in divisors if d == n or (d * rows_per_sample) % 8 == 0]
    fitting = [d for d in ok if d * per_sample_bytes <= budget]
    return max(fitting) if fitting else min(ok)


def _pick_row_tile(m, row_bytes, budget=_VMEM_BUDGET):
    divisors = [d for d in range(1, m + 1) if m % d == 0]
    ok = [d for d in divisors if d == m or d % 8 == 0]
    fitting = [d for d in ok if d * row_bytes <= budget]
    return max(fitting) if fitting else min(ok)


# ---------------------------------------------------------------------------
# Kernel bodies
# ---------------------------------------------------------------------------
def _conv_taps(xs_ref, w_ref, oh, ow):
    """In-kernel im2col + matmul for a 4x4 / stride-2 / pad-1 conv.

    xs_ref: (bn, OH+1, OW+1, 4C) bf16  -- space-to-depth input (compact, +halo)
    w_ref : (4, 4C, Cout)        bf16  -- per 2x2-tap-group weight matrices
    Returns the f32 conv output (bn*OH*OW, Cout); accumulation in f32 on the MXU.
    """
    bn = xs_ref.shape[0]
    c4 = xs_ref.shape[3]
    cout = w_ref.shape[2]
    m = bn * oh * ow
    acc = jnp.zeros((m, cout), jnp.float32)
    t = 0
    for ii in range(2):
        for jj in range(2):
            tap = xs_ref[:, ii:ii + oh, jj:jj + ow, :]          # (bn, OH, OW, 4C) bf16
            # f32 up-cast first so the (bn,OH,OW,4C)->(M,4C) collapse is layout-trivial
            a = tap.astype(jnp.float32).reshape(m, c4)
            acc = acc + jnp.dot(a.astype(jnp.bfloat16), w_ref[t],
                                preferred_element_type=jnp.float32)
            t += 1
    return acc


def _conv_relu_kernel(xs_ref, w_ref, o_ref, *, oh, ow):
    """Layer 1: conv (in-kernel im2col) + ReLU, per batch tile."""
    acc = _conv_taps(xs_ref, w_ref, oh, ow)
    o_ref[...] = jnp.maximum(acc, 0.0).astype(o_ref.dtype)


def _conv_stats_kernel(xs_ref, w_ref, y_ref, ssum_ref, ssq_ref, *, oh, ow):
    """DownSample pass 1: conv (in-kernel im2col) per batch tile; stream bf16 conv
    output and accumulate per-channel sum / sum-of-squares across the grid."""
    @pl.when(pl.program_id(0) == 0)
    def _init():
        ssum_ref[...] = jnp.zeros_like(ssum_ref)
        ssq_ref[...] = jnp.zeros_like(ssq_ref)

    acc = _conv_taps(xs_ref, w_ref, oh, ow)
    y_ref[...] = acc.astype(y_ref.dtype)
    ssum_ref[...] += jnp.sum(acc, axis=0, keepdims=True)
    ssq_ref[...] += jnp.sum(acc * acc, axis=0, keepdims=True)


def _bn_lrelu_kernel(y_ref, ssum_ref, ssq_ref, g_ref, bt_ref, o_ref, *,
                     m_total, eps, slope):
    """DownSample pass 2 (M-tiled, parallel): BN scale/shift + LeakyReLU from the
    globally accumulated statistics."""
    mean = ssum_ref[...] * (1.0 / m_total)
    var = jnp.maximum(ssq_ref[...] * (1.0 / m_total) - mean * mean, 0.0)
    scale = g_ref[...] * lax.rsqrt(var + eps)
    shift = bt_ref[...] - mean * scale
    z = y_ref[...].astype(jnp.float32) * scale + shift
    o_ref[...] = jnp.maximum(z, slope * z).astype(o_ref.dtype)


def _matmul_bn_lrelu_kernel(a_ref, b_ref, g_ref, bt_ref, o_ref, *, eps, slope):
    """Tiny-tail DownSample: conv-as-matmul + BN (batch stats, single sweep) +
    LeakyReLU fused in one block (only used where everything fits VMEM trivially)."""
    y = jnp.dot(a_ref[...], b_ref[...], preferred_element_type=jnp.float32)
    m = y.shape[0]
    s = jnp.sum(y, axis=0, keepdims=True)
    ss = jnp.sum(y * y, axis=0, keepdims=True)
    mean = s * (1.0 / m)
    var = jnp.maximum(ss * (1.0 / m) - mean * mean, 0.0)
    scale = g_ref[...] * lax.rsqrt(var + eps)
    shift = bt_ref[...] - mean * scale
    z = y * scale + shift
    o_ref[...] = jnp.maximum(z, slope * z).astype(o_ref.dtype)


def _matmul_kernel(a_ref, b_ref, o_ref):
    o_ref[...] = jnp.dot(a_ref[...], b_ref[...],
                         preferred_element_type=jnp.float32).astype(o_ref.dtype)


# ---------------------------------------------------------------------------
# Layout plumbing (wrapper level, compact / no patch duplication for big layers)
# ---------------------------------------------------------------------------
def space_to_depth_pad(x):
    """(N,H,W,C) -> (N, H/2+1, W/2+1, 4C): 1-pixel pad + stride-2 space-to-depth.
    Channel order of the 4C axis is (a, b, c) with a/b the intra-2x2 offsets."""
    n, h, w, c = x.shape
    oh, ow = h // 2, w // 2
    xp = jnp.pad(x, ((0, 0), (1, 1), (1, 1), (0, 0)))
    xs = xp.reshape(n, oh + 1, 2, ow + 1, 2, c).transpose(0, 1, 3, 2, 4, 5)
    return xs.reshape(n, oh + 1, ow + 1, 4 * c), oh, ow


def conv_weight_taps(w):
    """PyTorch Conv2d weight (Cout,Cin,4,4) -> (4, 4*Cin, Cout), one matrix per 2x2
    tap group, channel order matching space_to_depth_pad."""
    cout, cin, _, _ = w.shape
    w6 = w.reshape(cout, cin, 2, 2, 2, 2)                 # (co, c, ii, a, jj, b)
    wt = jnp.transpose(w6, (2, 4, 3, 5, 1, 0))            # (ii, jj, a, b, c, co)
    return wt.reshape(4, 4 * cin, cout).astype(jnp.bfloat16)


def im2col_nhwc(x, kh=4, kw=4, stride=2, pad=1):
    """Wrapper-level im2col (only used for the tiny 8x8/4x4 tail layers)."""
    n, h, w, c = x.shape
    xp = jnp.pad(x, ((0, 0), (pad, pad), (pad, pad), (0, 0)))
    oh = (h + 2 * pad - kh) // stride + 1
    ow = (w + 2 * pad - kw) // stride + 1
    taps = [xp[:, i:i + stride * oh:stride, j:j + stride * ow:stride, :]
            for i in range(kh) for j in range(kw)]
    patches = jnp.concatenate(taps, axis=-1)              # (N, OH, OW, KH*KW*C)
    return patches.reshape(n * oh * ow, kh * kw * c), n, oh, ow


def weight_to_matrix(w):
    """(Cout,Cin,KH,KW) -> (KH*KW*Cin, Cout), tap-major / channel-minor (matches
    im2col_nhwc column order)."""
    cout, cin, kh, kw = w.shape
    return jnp.transpose(w, (2, 3, 1, 0)).reshape(kh * kw * cin, cout).astype(jnp.bfloat16)


# ---------------------------------------------------------------------------
# pallas_call wrappers (one per stage)
# ---------------------------------------------------------------------------
def conv_relu(x_nhwc, w):
    """Layer 1: Conv2d(4,2,1,no-bias) + ReLU, in-kernel im2col, batch-tiled."""
    xs, oh, ow = space_to_depth_pad(x_nhwc)
    n = x_nhwc.shape[0]
    c4 = xs.shape[-1]
    cout = w.shape[0]
    wt = conv_weight_taps(w)
    rows = oh * ow
    per_sample = ((oh + 1) * (ow + 1) * c4 * 2          # xs tile (bf16)
                  + rows * c4 * 6                       # f32 tap + bf16 copy
                  + rows * cout * 6)                    # f32 acc + bf16 out
    bn = _pick_batch_tile(n, per_sample, rows)
    m = n * rows
    m_tile = bn * rows
    y = pl.pallas_call(
        functools.partial(_conv_relu_kernel, oh=oh, ow=ow),
        out_shape=jax.ShapeDtypeStruct((m, cout), jnp.bfloat16),
        grid=(n // bn,),
        in_specs=[pl.BlockSpec((bn, oh + 1, ow + 1, c4), lambda i: (i, 0, 0, 0)),
                  pl.BlockSpec((4, c4, cout), lambda i: (0, 0, 0))],
        out_specs=pl.BlockSpec((m_tile, cout), lambda i: (i, 0)),
        compiler_params=pltpu.CompilerParams(
            dimension_semantics=("parallel",),
            vmem_limit_bytes=_VMEM_LIMIT),
    )(xs.astype(jnp.bfloat16), wt)
    return y.reshape(n, oh, ow, cout)


def downsample_tiled(x_nhwc, w, gamma, beta, eps=_EPS, slope=_SLOPE):
    """DownSample: conv (in-kernel im2col, batch-tiled, stats accumulated across the
    grid) followed by an M-tiled BN+LeakyReLU finalize kernel."""
    xs, oh, ow = space_to_depth_pad(x_nhwc)
    n = x_nhwc.shape[0]
    c4 = xs.shape[-1]
    cout = w.shape[0]
    wt = conv_weight_taps(w)
    rows = oh * ow
    m = n * rows
    per_sample = ((oh + 1) * (ow + 1) * c4 * 2
                  + rows * c4 * 6
                  + rows * cout * 6)
    bn = _pick_batch_tile(n, per_sample, rows)
    m_tile = bn * rows

    y, ssum, ssq = pl.pallas_call(
        functools.partial(_conv_stats_kernel, oh=oh, ow=ow),
        out_shape=(jax.ShapeDtypeStruct((m, cout), jnp.bfloat16),
                   jax.ShapeDtypeStruct((1, cout), jnp.float32),
                   jax.ShapeDtypeStruct((1, cout), jnp.float32)),
        grid=(n // bn,),
        in_specs=[pl.BlockSpec((bn, oh + 1, ow + 1, c4), lambda i: (i, 0, 0, 0)),
                  pl.BlockSpec((4, c4, cout), lambda i: (0, 0, 0))],
        out_specs=(pl.BlockSpec((m_tile, cout), lambda i: (i, 0)),
                   pl.BlockSpec((1, cout), lambda i: (0, 0)),
                   pl.BlockSpec((1, cout), lambda i: (0, 0))),
        compiler_params=pltpu.CompilerParams(
            dimension_semantics=("arbitrary",),          # stats block is revisited
            vmem_limit_bytes=_VMEM_LIMIT),
    )(xs.astype(jnp.bfloat16), wt)

    bm = _pick_row_tile(m, cout * (2 + 4 + 2))
    out = pl.pallas_call(
        functools.partial(_bn_lrelu_kernel, m_total=m, eps=eps, slope=slope),
        out_shape=jax.ShapeDtypeStruct((m, cout), jnp.bfloat16),
        grid=(m // bm,),
        in_specs=[pl.BlockSpec((bm, cout), lambda i: (i, 0)),
                  pl.BlockSpec((1, cout), lambda i: (0, 0)),
                  pl.BlockSpec((1, cout), lambda i: (0, 0)),
                  pl.BlockSpec((1, cout), lambda i: (0, 0)),
                  pl.BlockSpec((1, cout), lambda i: (0, 0))],
        out_specs=pl.BlockSpec((bm, cout), lambda i: (i, 0)),
        compiler_params=pltpu.CompilerParams(
            dimension_semantics=("parallel",),
            vmem_limit_bytes=_VMEM_LIMIT),
    )(y, ssum, ssq,
      gamma.reshape(1, cout).astype(jnp.float32),
      beta.reshape(1, cout).astype(jnp.float32))
    return out.reshape(n, oh, ow, cout)


def downsample_fused_small(x_nhwc, w, gamma, beta, eps=_EPS, slope=_SLOPE):
    """Tiny-tail DownSample (8x8 -> 4x4): single fused conv+BN+LeakyReLU block;
    wrapper im2col here moves only a few hundred KiB."""
    p, n, oh, ow = im2col_nhwc(x_nhwc)
    wm = weight_to_matrix(w)
    m, k = p.shape
    cout = w.shape[0]
    out = pl.pallas_call(
        functools.partial(_matmul_bn_lrelu_kernel, eps=eps, slope=slope),
        out_shape=jax.ShapeDtypeStruct((m, cout), jnp.bfloat16),
        grid=(1,),
        in_specs=[pl.BlockSpec((m, k), lambda i: (0, 0)),
                  pl.BlockSpec((k, cout), lambda i: (0, 0)),
                  pl.BlockSpec((1, cout), lambda i: (0, 0)),
                  pl.BlockSpec((1, cout), lambda i: (0, 0))],
        out_specs=pl.BlockSpec((m, cout), lambda i: (0, 0)),
        compiler_params=pltpu.CompilerParams(
            dimension_semantics=("arbitrary",),
            vmem_limit_bytes=_VMEM_LIMIT),
    )(p.astype(jnp.bfloat16), wm,
      gamma.reshape(1, cout).astype(jnp.float32),
      beta.reshape(1, cout).astype(jnp.float32))
    return out.reshape(n, oh, ow, cout)


def head_matmul(x_nhwc, w_mean, w_logvar):
    """Merged mean/logvar head: one matmul on shared patches (lane-dense Cout=2*nz)."""
    p, n, oh, ow = im2col_nhwc(x_nhwc)
    nz = w_mean.shape[0]
    wmat = jnp.concatenate([weight_to_matrix(w_mean),
                            weight_to_matrix(w_logvar)], axis=1)
    m, k = p.shape
    cout = 2 * nz
    bm = _pick_row_tile(m, k * 2 + cout * 4)
    y = pl.pallas_call(
        _matmul_kernel,
        out_shape=jax.ShapeDtypeStruct((m, cout), jnp.float32),
        grid=(m // bm,),
        in_specs=[pl.BlockSpec((bm, k), lambda i: (i, 0)),
                  pl.BlockSpec((k, cout), lambda i: (0, 0))],
        out_specs=pl.BlockSpec((bm, cout), lambda i: (i, 0)),
        compiler_params=pltpu.CompilerParams(
            dimension_semantics=("parallel",),
            vmem_limit_bytes=_VMEM_LIMIT),
    )(p.astype(jnp.bfloat16), wmat)
    y = y.reshape(n, oh, ow, cout).transpose(0, 3, 1, 2)   # NCHW once, at the boundary
    return y[:, :nz], y[:, nz:]


# ---------------------------------------------------------------------------
# Encoder forward (NCHW at the module boundary, NHWC bf16 in between)
# ---------------------------------------------------------------------------
def encoder_forward(x, params):
    h = jnp.transpose(x, (0, 2, 3, 1)).astype(jnp.bfloat16)       # NHWC, once

    h = conv_relu(h, params["w1"])                                # nc   -> ngf
    h = downsample_tiled(h, params["w2"], params["g2"], params["b2"])   # -> 2*ngf
    h = downsample_fused_small(h, params["w3"], params["g3"], params["b3"])  # -> 4*ngf
    mu, logvar = head_matmul(h, params["wm"], params["wv"])       # -> (nz, nz)
    return mu, logvar


# ---------------------------------------------------------------------------
# Deterministic parameter init + smoke test
# ---------------------------------------------------------------------------
def init_params(key, nc, ngf, nz):
    ks = jax.random.split(key, 8)

    def w(k, shape):
        return (0.05 * jax.random.normal(k, shape)).astype(jnp.float32)

    return {
        "w1": w(ks[0], (ngf, nc, 4, 4)),
        "w2": w(ks[1], (2 * ngf, ngf, 4, 4)),
        "g2": (1.0 + 0.1 * jax.random.normal(ks[2], (2 * ngf,))).astype(jnp.float32),
        "b2": (0.1 * jax.random.normal(ks[3], (2 * ngf,))).astype(jnp.float32),
        "w3": w(ks[4], (4 * ngf, 2 * ngf, 4, 4)),
        "g3": (1.0 + 0.1 * jax.random.normal(ks[5], (4 * ngf,))).astype(jnp.float32),
        "b3": (0.1 * jax.random.normal(ks[6], (4 * ngf,))).astype(jnp.float32),
        "wm": w(ks[7], (nz, 4 * ngf, 4, 4)),
        "wv": w(jax.random.fold_in(ks[7], 1), (nz, 4 * ngf, 4, 4)),
    }


if __name__ == "__main__":
    nc, ngf, nz = 1, 8, 16          # small config consistent with Encoder(nc, nz, ngf)
    N, H, W = 2, 32, 32             # spatial: 32 -> 16 -> 8 -> 4 -> 2

    key = jax.random.PRNGKey(0)
    kx, kp = jax.random.split(key)
    x = jax.random.normal(kx, (N, nc, H, W), dtype=jnp.float32)
    params = init_params(kp, nc, ngf, nz)

    fwd = jax.jit(encoder_forward)
    mu, logvar = fwd(x, params)
    jax.block_until_ready((mu, logvar))

    oh = H // 16
    assert mu.shape == (N, nz, oh, oh) and logvar.shape == (N, nz, oh, oh)
    assert mu.dtype == jnp.float32 and logvar.dtype == jnp.float32
    assert bool(jnp.all(jnp.isfinite(mu))) and bool(jnp.all(jnp.isfinite(logvar)))
    print("KERNEL_OK")
</pallas_src>

<mosaic_0001>
module attributes {stable_mosaic.version = 11 : i64} {
  func.func @_conv_relu_kernel(%arg0: i32, %arg1: memref<2x17x17x4xbf16, #tpu.memory_space<vmem>>, %arg2: memref<4x4x8xbf16, #tpu.memory_space<vmem>>, %arg3: memref<512x8xbf16, #tpu.memory_space<vmem>>) attributes {dimension_semantics = [#tpu.dimension_semantics<parallel>], iteration_bounds = array<i64: 1>, scalar_prefetch = 0 : i64, scratch_operands = 0 : i64, tpu.core_type = #tpu.core_type<tc>, window_params = [{transform_indices = @transform_0, window_bounds = array<i64: 2, 17, 17, 4>}, {pipeline_mode = #tpu.pipeline_mode<synchronous>, transform_indices = @transform_1, window_bounds = array<i64: 4, 4, 8>}, {transform_indices = @transform_2, window_bounds = array<i64: 512, 8>}]} {
    %cst = arith.constant 0.000000e+00 : f32
    %0 = vector.broadcast %cst : f32 to vector<512x8xf32>
    %c0 = arith.constant 0 : index
    %c0_0 = arith.constant 0 : index
    %c0_1 = arith.constant 0 : index
    %c0_2 = arith.constant 0 : index
    %1 = vector.load %arg1[%c0, %c0_0, %c0_1, %c0_2] : memref<2x17x17x4xbf16, #tpu.memory_space<vmem>>, vector<2x16x16x4xbf16>
    %2 = arith.extf %1 : vector<2x16x16x4xbf16> to vector<2x16x16x4xf32>
    %3 = vector.shape_cast %2 : vector<2x16x16x4xf32> to vector<512x4xf32>
    %4 = arith.truncf %3 : vector<512x4xf32> to vector<512x4xbf16>
    %c0_3 = arith.constant 0 : index
    %c0_4 = arith.constant 0 : index
    %c0_5 = arith.constant 0 : index
    %5 = vector.load %arg2[%c0_3, %c0_4, %c0_5] : memref<4x4x8xbf16, #tpu.memory_space<vmem>>, vector<1x4x8xbf16>
    %6 = vector.shape_cast %5 : vector<1x4x8xbf16> to vector<4x8xbf16>
    %cst_6 = arith.constant dense<0.000000e+00> : vector<512x8xf32>
    %7 = tpu.matmul %4, %6, %cst_6 {dimension_numbers = #tpu.dot_dimension_numbers<[1], [0], [0], [1], [0, 0, 1, 1], [], []>} : vector<512x4xbf16>, vector<4x8xbf16>, vector<512x8xf32> -> vector<512x8xf32>
    %8 = arith.addf %0, %7 : vector<512x8xf32>
    %c0_7 = arith.constant 0 : index
    %c0_8 = arith.constant 0 : index
    %c1 = arith.constant 1 : index
    %c0_9 = arith.constant 0 : index
    %9 = vector.load %arg1[%c0_7, %c0_8, %c1, %c0_9] : memref<2x17x17x4xbf16, #tpu.memory_space<vmem>>, vector<2x16x16x4xbf16>
    %10 = arith.extf %9 : vector<2x16x16x4xbf16> to vector<2x16x16x4xf32>
    %11 = vector.shape_cast %10 : vector<2x16x16x4xf32> to vector<512x4xf32>
    %12 = arith.truncf %11 : vector<512x4xf32> to vector<512x4xbf16>
    %c1_10 = arith.constant 1 : index
    %c0_11 = arith.constant 0 : index
    %c0_12 = arith.constant 0 : index
    %13 = vector.load %arg2[%c1_10, %c0_11, %c0_12] : memref<4x4x8xbf16, #tpu.memory_space<vmem>>, vector<1x4x8xbf16>
    %14 = vector.shape_cast %13 : vector<1x4x8xbf16> to vector<4x8xbf16>
    %cst_13 = arith.constant dense<0.000000e+00> : vector<512x8xf32>
    %15 = tpu.matmul %12, %14, %cst_13 {dimension_numbers = #tpu.dot_dimension_numbers<[1], [0], [0], [1], [0, 0, 1, 1], [], []>} : vector<512x4xbf16>, vector<4x8xbf16>, vector<512x8xf32> -> vector<512x8xf32>
    %16 = arith.addf %8, %15 : vector<512x8xf32>
    %c0_14 = arith.constant 0 : index
    %c1_15 = arith.constant 1 : index
    %c0_16 = arith.constant 0 : index
    %c0_17 = arith.constant 0 : index
    %17 = vector.load %arg1[%c0_14, %c1_15, %c0_16, %c0_17] : memref<2x17x17x4xbf16, #tpu.memory_space<vmem>>, vector<2x16x16x4xbf16>
    %18 = arith.extf %17 : vector<2x16x16x4xbf16> to vector<2x16x16x4xf32>
    %19 = vector.shape_cast %18 : vector<2x16x16x4xf32> to vector<512x4xf32>
    %20 = arith.truncf %19 : vector<512x4xf32> to vector<512x4xbf16>
    %c2 = arith.constant 2 : index
    %c0_18 = arith.constant 0 : index
    %c0_19 = arith.constant 0 : index
    %21 = vector.load %arg2[%c2, %c0_18, %c0_19] : memref<4x4x8xbf16, #tpu.memory_space<vmem>>, vector<1x4x8xbf16>
    %22 = vector.shape_cast %21 : vector<1x4x8xbf16> to vector<4x8xbf16>
    %cst_20 = arith.constant dense<0.000000e+00> : vector<512x8xf32>
    %23 = tpu.matmul %20, %22, %cst_20 {dimension_numbers = #tpu.dot_dimension_numbers<[1], [0], [0], [1], [0, 0, 1, 1], [], []>} : vector<512x4xbf16>, vector<4x8xbf16>, vector<512x8xf32> -> vector<512x8xf32>
    %24 = arith.addf %16, %23 : vector<512x8xf32>
    %c0_21 = arith.constant 0 : index
    %c1_22 = arith.constant 1 : index
    %c1_23 = arith.constant 1 : index
    %c0_24 = arith.constant 0 : index
    %25 = vector.load %arg1[%c0_21, %c1_22, %c1_23, %c0_24] : memref<2x17x17x4xbf16, #tpu.memory_space<vmem>>, vector<2x16x16x4xbf16>
    %26 = arith.extf %25 : vector<2x16x16x4xbf16> to vector<2x16x16x4xf32>
    %27 = vector.shape_cast %26 : vector<2x16x16x4xf32> to vector<512x4xf32>
    %28 = arith.truncf %27 : vector<512x4xf32> to vector<512x4xbf16>
    %c3 = arith.constant 3 : index
    %c0_25 = arith.constant 0 : index
    %c0_26 = arith.constant 0 : index
    %29 = vector.load %arg2[%c3, %c0_25, %c0_26] : memref<4x4x8xbf16, #tpu.memory_space<vmem>>, vector<1x4x8xbf16>
    %30 = vector.shape_cast %29 : vector<1x4x8xbf16> to vector<4x8xbf16>
    %cst_27 = arith.constant dense<0.000000e+00> : vector<512x8xf32>
    %31 = tpu.matmul %28, %30, %cst_27 {dimension_numbers = #tpu.dot_dimension_numbers<[1], [0], [0], [1], [0, 0, 1, 1], [], []>} : vector<512x4xbf16>, vector<4x8xbf16>, vector<512x8xf32> -> vector<512x8xf32>
    %32 = arith.addf %24, %31 : vector<512x8xf32>
    %cst_28 = arith.constant 0.000000e+00 : f32
    %33 = vector.broadcast %cst_28 : f32 to vector<512x8xf32>
    %34 = arith.maximumf %32, %33 : vector<512x8xf32>
    %35 = arith.truncf %34 : vector<512x8xf32> to vector<512x8xbf16>
    %c0_29 = arith.constant 0 : index
    %c0_30 = arith.constant 0 : index
    %36 = vector.load %arg3[%c0_29, %c0_30] : memref<512x8xbf16, #tpu.memory_space<vmem>>, vector<512x8xbf16>
    tpu.vector_store %arg3[%c0_29, %c0_30], %35 {strides = array<i32>} : memref<512x8xbf16, #tpu.memory_space<vmem>>, vector<512x8xbf16>,
    return
  }
  func.func @transform_0(%arg0: i32) -> (i32, i32, i32, i32) {
    %c0_i32 = arith.constant 0 : i32
    %c0_i32_0 = arith.constant 0 : i32
    %c0_i32_1 = arith.constant 0 : i32
    %c0_i32_2 = arith.constant 0 : i32
    return %arg0, %c0_i32, %c0_i32_0, %c0_i32_1 : i32, i32, i32, i32
  }
  func.func @transform_1(%arg0: i32) -> (i32, i32, i32) {
    %c0_i32 = arith.constant 0 : i32
    %c0_i32_0 = arith.constant 0 : i32
    %c0_i32_1 = arith.constant 0 : i32
    %c0_i32_2 = arith.constant 0 : i32
    return %c0_i32, %c0_i32_0, %c0_i32_1 : i32, i32, i32
  }
  func.func @transform_2(%arg0: i32) -> (i32, i32) {
    %c0_i32 = arith.constant 0 : i32
    %c0_i32_0 = arith.constant 0 : i32
    return %arg0, %c0_i32 : i32, i32
  }
}

module attributes {stable_mosaic.version = 11 : i64} {
  func.func @_conv_stats_kernel(%arg0: i32, %arg1: memref<2x9x9x32xbf16, #tpu.memory_space<vmem>>, %arg2: memref<4x32x16xbf16, #tpu.memory_space<vmem>>, %arg3: memref<128x16xbf16, #tpu.memory_space<vmem>>, %arg4: memref<1x16xf32, #tpu.memory_space<vmem>>, %arg5: memref<1x16xf32, #tpu.memory_space<vmem>>) attributes {dimension_semantics = [#tpu.dimension_semantics<arbitrary>], iteration_bounds = array<i64: 1>, scalar_prefetch = 0 : i64, scratch_operands = 0 : i64, tpu.core_type = #tpu.core_type<tc>, window_params = [{transform_indices = @transform_0, window_bounds = array<i64: 2, 9, 9, 32>}, {pipeline_mode = #tpu.pipeline_mode<synchronous>, transform_indices = @transform_1, window_bounds = array<i64: 4, 32, 16>}, {transform_indices = @transform_2, window_bounds = array<i64: 128, 16>}, {pipeline_mode = #tpu.pipeline_mode<synchronous>, transform_indices = @transform_3, window_bounds = array<i64: 1, 16>}, {pipeline_mode = #tpu.pipeline_mode<synchronous>, transform_indices = @transform_4, window_bounds = array<i64: 1, 16>}]} {
    %c0_i32 = arith.constant 0 : i32
    %0 = arith.cmpi eq, %arg0, %c0_i32 : i32
    %1 = arith.extui %0 : i1 to i32
    %c0_i32_0 = arith.constant 0 : i32
    %2 = arith.cmpi ne, %1, %c0_i32_0 : i32
    scf.if %2 {
      %cst_41 = arith.constant 0.000000e+00 : f32
      %49 = vector.broadcast %cst_41 : f32 to vector<1x16xf32>
      %c0_42 = arith.constant 0 : index
      %c0_43 = arith.constant 0 : index
      %50 = vector.load %arg4[%c0_42, %c0_43] : memref<1x16xf32, #tpu.memory_space<vmem>>, vector<1x16xf32>
      tpu.vector_store %arg4[%c0_42, %c0_43], %49 {strides = array<i32>} : memref<1x16xf32, #tpu.memory_space<vmem>>, vector<1x16xf32>,
      %cst_44 = arith.constant 0.000000e+00 : f32
      %51 = vector.broadcast %cst_44 : f32 to vector<1x16xf32>
      %c0_45 = arith.constant 0 : index
      %c0_46 = arith.constant 0 : index
      %52 = vector.load %arg5[%c0_45, %c0_46] : memref<1x16xf32, #tpu.memory_space<vmem>>, vector<1x16xf32>
      tpu.vector_store %arg5[%c0_45, %c0_46], %51 {strides = array<i32>} : memref<1x16xf32, #tpu.memory_space<vmem>>, vector<1x16xf32>,
    } else {
    }
    %cst = arith.constant 0.000000e+00 : f32
    %3 = vector.broadcast %cst : f32 to vector<128x16xf32>
    %c0 = arith.constant 0 : index
    %c0_1 = arith.constant 0 : index
    %c0_2 = arith.constant 0 : index
    %c0_3 = arith.constant 0 : index
    %4 = vector.load %arg1[%c0, %c0_1, %c0_2, %c0_3] : memref<2x9x9x32xbf16, #tpu.memory_space<vmem>>, vector<2x8x8x32xbf16>
    %5 = arith.extf %4 : vector<2x8x8x32xbf16> to vector<2x8x8x32xf32>
    %6 = vector.shape_cast %5 : vector<2x8x8x32xf32> to vector<128x32xf32>
    %7 = arith.truncf %6 : vector<128x32xf32> to vector<128x32xbf16>
    %c0_4 = arith.constant 0 : index
    %c0_5 = arith.constant 0 : index
    %c0_6 = arith.constant 0 : index
    %8 = vector.load %arg2[%c0_4, %c0_5, %c0_6] : memref<4x32x16xbf16, #tpu.memory_space<vmem>>, vector<1x32x16xbf16>
    %9 = vector.shape_cast %8 : vector<1x32x16xbf16> to vector<32x16xbf16>
    %cst_7 = arith.constant dense<0.000000e+00> : vector<128x16xf32>
    %10 = tpu.matmul %7, %9, %cst_7 {dimension_numbers = #tpu.dot_dimension_numbers<[1], [0], [0], [1], [0, 0, 1, 1], [], []>} : vector<128x32xbf16>, vector<32x16xbf16>, vector<128x16xf32> -> vector<128x16xf32>
    %11 = arith.addf %3, %10 : vector<128x16xf32>
    %c0_8 = arith.constant 0 : index
    %c0_9 = arith.constant 0 : index
    %c1 = arith.constant 1 : index
    %c0_10 = arith.constant 0 : index
    %12 = vector.load %arg1[%c0_8, %c0_9, %c1, %c0_10] : memref<2x9x9x32xbf16, #tpu.memory_space<vmem>>, vector<2x8x8x32xbf16>
    %13 = arith.extf %12 : vector<2x8x8x32xbf16> to vector<2x8x8x32xf32>
    %14 = vector.shape_cast %13 : vector<2x8x8x32xf32> to vector<128x32xf32>
    %15 = arith.truncf %14 : vector<128x32xf32> to vector<128x32xbf16>
    %c1_11 = arith.constant 1 : index
    %c0_12 = arith.constant 0 : index
    %c0_13 = arith.constant 0 : index
    %16 = vector.load %arg2[%c1_11, %c0_12, %c0_13] : memref<4x32x16xbf16, #tpu.memory_space<vmem>>, vector<1x32x16xbf16>
    %17 = vector.shape_cast %16 : vector<1x32x16xbf16> to vector<32x16xbf16>
    %cst_14 = arith.constant dense<0.000000e+00> : vector<128x16xf32>
    %18 = tpu.matmul %15, %17, %cst_14 {dimension_numbers = #tpu.dot_dimension_numbers<[1], [0], [0], [1], [0, 0, 1, 1], [], []>} : vector<128x32xbf16>, vector<32x16xbf16>, vector<128x16xf32> -> vector<128x16xf32>
    %19 = arith.addf %11, %18 : vector<128x16xf32>
    %c0_15 = arith.constant 0 : index
    %c1_16 = arith.constant 1 : index
    %c0_17 = arith.constant 0 : index
    %c0_18 = arith.constant 0 : index
    %20 = vector.load %arg1[%c0_15, %c1_16, %c0_17, %c0_18] : memref<2x9x9x32xbf16, #tpu.memory_space<vmem>>, vector<2x8x8x32xbf16>
    %21 = arith.extf %20 : vector<2x8x8x32xbf16> to vector<2x8x8x32xf32>
    %22 = vector.shape_cast %21 : vector<2x8x8x32xf32> to vector<128x32xf32>
    %23 = arith.truncf %22 : vector<128x32xf32> to vector<128x32xbf16>
    %c2 = arith.constant 2 : index
    %c0_19 = arith.constant 0 : index
    %c0_20 = arith.constant 0 : index
    %24 = vector.load %arg2[%c2, %c0_19, %c0_20] : memref<4x32x16xbf16, #tpu.memory_space<vmem>>, vector<1x32x16xbf16>
    %25 = vector.shape_cast %24 : vector<1x32x16xbf16> to vector<32x16xbf16>
    %cst_21 = arith.constant dense<0.000000e+00> : vector<128x16xf32>
    %26 = tpu.matmul %23, %25, %cst_21 {dimension_numbers = #tpu.dot_dimension_numbers<[1], [0], [0], [1], [0, 0, 1, 1], [], []>} : vector<128x32xbf16>, vector<32x16xbf16>, vector<128x16xf32> -> vector<128x16xf32>
    %27 = arith.addf %19, %26 : vector<128x16xf32>
    %c0_22 = arith.constant 0 : index
    %c1_23 = arith.constant 1 : index
    %c1_24 = arith.constant 1 : index
    %c0_25 = arith.constant 0 : index
    %28 = vector.load %arg1[%c0_22, %c1_23, %c1_24, %c0_25] : memref<2x9x9x32xbf16, #tpu.memory_space<vmem>>, vector<2x8x8x32xbf16>
    %29 = arith.extf %28 : vector<2x8x8x32xbf16> to vector<2x8x8x32xf32>
    %30 = vector.shape_cast %29 : vector<2x8x8x32xf32> to vector<128x32xf32>
    %31 = arith.truncf %30 : vector<128x32xf32> to vector<128x32xbf16>
    %c3 = arith.constant 3 : index
    %c0_26 = arith.constant 0 : index
    %c0_27 = arith.constant 0 : index
    %32 = vector.load %arg2[%c3, %c0_26, %c0_27] : memref<4x32x16xbf16, #tpu.memory_space<vmem>>, vector<1x32x16xbf16>
    %33 = vector.shape_cast %32 : vector<1x32x16xbf16> to vector<32x16xbf16>
    %cst_28 = arith.constant dense<0.000000e+00> : vector<128x16xf32>
    %34 = tpu.matmul %31, %33, %cst_28 {dimension_numbers = #tpu.dot_dimension_numbers<[1], [0], [0], [1], [0, 0, 1, 1], [], []>} : vector<128x32xbf16>, vector<32x16xbf16>, vector<128x16xf32> -> vector<128x16xf32>
    %35 = arith.addf %27, %34 : vector<128x16xf32>
    %36 = arith.truncf %35 : vector<128x16xf32> to vector<128x16xbf16>
    %c0_29 = arith.constant 0 : index
    %c0_30 = arith.constant 0 : index
    %37 = vector.load %arg3[%c0_29, %c0_30] : memref<128x16xbf16, #tpu.memory_space<vmem>>, vector<128x16xbf16>
    tpu.vector_store %arg3[%c0_29, %c0_30], %36 {strides = array<i32>} : memref<128x16xbf16, #tpu.memory_space<vmem>>, vector<128x16xbf16>,
    %c0_31 = arith.constant 0 : index
    %c0_32 = arith.constant 0 : index
    %38 = vector.load %arg4[%c0_31, %c0_32] : memref<1x16xf32, #tpu.memory_space<vmem>>, vector<1x16xf32>
    %cst_33 = arith.constant dense<0.000000e+00> : vector<16xf32>
    %39 = vector.multi_reduction <add>, %35, %cst_33 [0] : vector<128x16xf32> to vector<16xf32>
    %40 = vector.shape_cast %39 : vector<16xf32> to vector<1x16xf32>
    %41 = arith.addf %38, %40 : vector<1x16xf32>
    %c0_34 = arith.constant 0 : index
    %c0_35 = arith.constant 0 : index
    %42 = vector.load %arg4[%c0_34, %c0_35] : memref<1x16xf32, #tpu.memory_space<vmem>>, vector<1x16xf32>
    tpu.vector_store %arg4[%c0_34, %c0_35], %41 {strides = array<i32>} : memref<1x16xf32, #tpu.memory_space<vmem>>, vector<1x16xf32>,
    %c0_36 = arith.constant 0 : index
    %c0_37 = arith.constant 0 : index
    %43 = vector.load %arg5[%c0_36, %c0_37] : memref<1x16xf32, #tpu.memory_space<vmem>>, vector<1x16xf32>
    %44 = arith.mulf %35, %35 : vector<128x16xf32>
    %cst_38 = arith.constant dense<0.000000e+00> : vector<16xf32>
    %45 = vector.multi_reduction <add>, %44, %cst_38 [0] : vector<128x16xf32> to vector<16xf32>
    %46 = vector.shape_cast %45 : vector<16xf32> to vector<1x16xf32>
    %47 = arith.addf %43, %46 : vector<1x16xf32>
    %c0_39 = arith.constant 0 : index
    %c0_40 = arith.constant 0 : index
    %48 = vector.load %arg5[%c0_39, %c0_40] : memref<1x16xf32, #tpu.memory_space<vmem>>, vector<1x16xf32>
    tpu.vector_store %arg5[%c0_39, %c0_40], %47 {strides = array<i32>} : memref<1x16xf32, #tpu.memory_space<vmem>>, vector<1x16xf32>,
    return
  }
  func.func @transform_0(%arg0: i32) -> (i32, i32, i32, i32) {
    %c0_i32 = arith.constant 0 : i32
    %c0_i32_0 = arith.constant 0 : i32
    %c0_i32_1 = arith.constant 0 : i32
    %c0_i32_2 = arith.constant 0 : i32
    return %arg0, %c0_i32, %c0_i32_0, %c0_i32_1 : i32, i32, i32, i32
  }
  func.func @transform_1(%arg0: i32) -> (i32, i32, i32) {
    %c0_i32 = arith.constant 0 : i32
    %c0_i32_0 = arith.constant 0 : i32
    %c0_i32_1 = arith.constant 0 : i32
    %c0_i32_2 = arith.constant 0 : i32
    return %c0_i32, %c0_i32_0, %c0_i32_1 : i32, i32, i32
  }
  func.func @transform_2(%arg0: i32) -> (i32, i32) {
    %c0_i32 = arith.constant 0 : i32
    %c0_i32_0 = arith.constant 0 : i32
    return %arg0, %c0_i32 : i32, i32
  }
  func.func @transform_3(%arg0: i32) -> (i32, i32) {
    %c0_i32 = arith.constant 0 : i32
    %c0_i32_0 = arith.constant 0 : i32
    %c0_i32_1 = arith.constant 0 : i32
    return %c0_i32, %c0_i32_0 : i32, i32
  }
  func.func @transform_4(%arg0: i32) -> (i32, i32) {
    %c0_i32 = arith.constant 0 : i32
    %c0_i32_0 = arith.constant 0 : i32
    %c0_i32_1 = arith.constant 0 : i32
    return %c0_i32, %c0_i32_0 : i32, i32
  }
}

module attributes {stable_mosaic.version = 11 : i64} {
  func.func @_bn_lrelu_kernel(%arg0: i32, %arg1: memref<128x16xbf16, #tpu.memory_space<vmem>>, %arg2: memref<1x16xf32, #tpu.memory_space<vmem>>, %arg3: memref<1x16xf32, #tpu.memory_space<vmem>>, %arg4: memref<1x16xf32, #tpu.memory_space<vmem>>, %arg5: memref<1x16xf32, #tpu.memory_space<vmem>>, %arg6: memref<128x16xbf16, #tpu.memory_space<vmem>>) attributes {dimension_semantics = [#tpu.dimension_semantics<parallel>], iteration_bounds = array<i64: 1>, scalar_prefetch = 0 : i64, scratch_operands = 0 : i64, tpu.core_type = #tpu.core_type<tc>, window_params = [{transform_indices = @transform_0, window_bounds = array<i64: 128, 16>}, {pipeline_mode = #tpu.pipeline_mode<synchronous>, transform_indices = @transform_1, window_bounds = array<i64: 1, 16>}, {pipeline_mode = #tpu.pipeline_mode<synchronous>, transform_indices = @transform_2, window_bounds = array<i64: 1, 16>}, {pipeline_mode = #tpu.pipeline_mode<synchronous>, transform_indices = @transform_3, window_bounds = array<i64: 1, 16>}, {pipeline_mode = #tpu.pipeline_mode<synchronous>, transform_indices = @transform_4, window_bounds = array<i64: 1, 16>}, {transform_indices = @transform_5, window_bounds = array<i64: 128, 16>}]} {
    %c0 = arith.constant 0 : index
    %c0_0 = arith.constant 0 : index
    %0 = vector.load %arg2[%c0, %c0_0] : memref<1x16xf32, #tpu.memory_space<vmem>>, vector<1x16xf32>
    %cst = arith.constant 7.812500e-03 : f32
    %1 = vector.broadcast %cst : f32 to vector<1x16xf32>
    %2 = arith.mulf %0, %1 : vector<1x16xf32>
    %c0_1 = arith.constant 0 : index
    %c0_2 = arith.constant 0 : index
    %3 = vector.load %arg3[%c0_1, %c0_2] : memref<1x16xf32, #tpu.memory_space<vmem>>, vector<1x16xf32>
    %cst_3 = arith.constant 7.812500e-03 : f32
    %4 = vector.broadcast %cst_3 : f32 to vector<1x16xf32>
    %5 = arith.mulf %3, %4 : vector<1x16xf32>
    %6 = arith.mulf %2, %2 : vector<1x16xf32>
    %7 = arith.subf %5, %6 : vector<1x16xf32>
    %cst_4 = arith.constant 0.000000e+00 : f32
    %8 = vector.broadcast %cst_4 : f32 to vector<1x16xf32>
    %9 = arith.maximumf %7, %8 : vector<1x16xf32>
    %c0_5 = arith.constant 0 : index
    %c0_6 = arith.constant 0 : index
    %10 = vector.load %arg4[%c0_5, %c0_6] : memref<1x16xf32, #tpu.memory_space<vmem>>, vector<1x16xf32>
    %cst_7 = arith.constant 9.99999974E-6 : f32
    %11 = vector.broadcast %cst_7 : f32 to vector<1x16xf32>
    %12 = arith.addf %9, %11 : vector<1x16xf32>
    %13 = math.rsqrt %12 : vector<1x16xf32>
    %14 = arith.mulf %10, %13 : vector<1x16xf32>
    %c0_8 = arith.constant 0 : index
    %c0_9 = arith.constant 0 : index
    %15 = vector.load %arg5[%c0_8, %c0_9] : memref<1x16xf32, #tpu.memory_space<vmem>>, vector<1x16xf32>
    %16 = arith.mulf %2, %14 : vector<1x16xf32>
    %17 = arith.subf %15, %16 : vector<1x16xf32>
    %c0_10 = arith.constant 0 : index
    %c0_11 = arith.constant 0 : index
    %18 = vector.load %arg1[%c0_10, %c0_11] : memref<128x16xbf16, #tpu.memory_space<vmem>>, vector<128x16xbf16>
    %19 = arith.extf %18 : vector<128x16xbf16> to vector<128x16xf32>
    %20 = vector.broadcast %14 : vector<1x16xf32> to vector<128x16xf32>
    %21 = arith.mulf %19, %20 : vector<128x16xf32>
    %22 = vector.broadcast %17 : vector<1x16xf32> to vector<128x16xf32>
    %23 = arith.addf %21, %22 : vector<128x16xf32>
    %cst_12 = arith.constant 2.000000e-01 : f32
    %24 = vector.broadcast %cst_12 : f32 to vector<128x16xf32>
    %25 = arith.mulf %24, %23 : vector<128x16xf32>
    %26 = arith.maximumf %23, %25 : vector<128x16xf32>
    %27 = arith.truncf %26 : vector<128x16xf32> to vector<128x16xbf16>
    %c0_13 = arith.constant 0 : index
    %c0_14 = arith.constant 0 : index
    %28 = vector.load %arg6[%c0_13, %c0_14] : memref<128x16xbf16, #tpu.memory_space<vmem>>, vector<128x16xbf16>
    tpu.vector_store %arg6[%c0_13, %c0_14], %27 {strides = array<i32>} : memref<128x16xbf16, #tpu.memory_space<vmem>>, vector<128x16xbf16>,
    return
  }
  func.func @transform_0(%arg0: i32) -> (i32, i32) {
    %c0_i32 = arith.constant 0 : i32
    %c0_i32_0 = arith.constant 0 : i32
    return %arg0, %c0_i32 : i32, i32
  }
  func.func @transform_1(%arg0: i32) -> (i32, i32) {
    %c0_i32 = arith.constant 0 : i32
    %c0_i32_0 = arith.constant 0 : i32
    %c0_i32_1 = arith.constant 0 : i32
    return %c0_i32, %c0_i32_0 : i32, i32
  }
  func.func @transform_2(%arg0: i32) -> (i32, i32) {
    %c0_i32 = arith.constant 0 : i32
    %c0_i32_0 = arith.constant 0 : i32
    %c0_i32_1 = arith.constant 0 : i32
    return %c0_i32, %c0_i32_0 : i32, i32
  }
  func.func @transform_3(%arg0: i32) -> (i32, i32) {
    %c0_i32 = arith.constant 0 : i32
    %c0_i32_0 = arith.constant 0 : i32
    %c0_i32_1 = arith.constant 0 : i32
    return %c0_i32, %c0_i32_0 : i32, i32
  }
  func.func @transform_4(%arg0: i32) -> (i32, i32) {
    %c0_i32 = arith.constant 0 : i32
    %c0_i32_0 = arith.constant 0 : i32
    %c0_i32_1 = arith.constant 0 : i32
    return %c0_i32, %c0_i32_0 : i32, i32
  }
  func.func @transform_5(%arg0: i32) -> (i32, i32) {
    %c0_i32 = arith.constant 0 : i32
    %c0_i32_0 = arith.constant 0 : i32
    return %arg0, %c0_i32 : i32, i32
  }
}

module attributes {stable_mosaic.version = 11 : i64} {
  func.func @_matmul_bn_lrelu_kernel(%arg0: i32, %arg1: memref<32x256xbf16, #tpu.memory_space<vmem>>, %arg2: memref<256x32xbf16, #tpu.memory_space<vmem>>, %arg3: memref<1x32xf32, #tpu.memory_space<vmem>>, %arg4: memref<1x32xf32, #tpu.memory_space<vmem>>, %arg5: memref<32x32xbf16, #tpu.memory_space<vmem>>) attributes {dimension_semantics = [#tpu.dimension_semantics<arbitrary>], iteration_bounds = array<i64: 1>, scalar_prefetch = 0 : i64, scratch_operands = 0 : i64, tpu.core_type = #tpu.core_type<tc>, window_params = [{pipeline_mode = #tpu.pipeline_mode<synchronous>, transform_indices = @transform_0, window_bounds = array<i64: 32, 256>}, {pipeline_mode = #tpu.pipeline_mode<synchronous>, transform_indices = @transform_1, window_bounds = array<i64: 256, 32>}, {pipeline_mode = #tpu.pipeline_mode<synchronous>, transform_indices = @transform_2, window_bounds = array<i64: 1, 32>}, {pipeline_mode = #tpu.pipeline_mode<synchronous>, transform_indices = @transform_3, window_bounds = array<i64: 1, 32>}, {pipeline_mode = #tpu.pipeline_mode<synchronous>, transform_indices = @transform_4, window_bounds = array<i64: 32, 32>}]} {
    %c0 = arith.constant 0 : index
    %c0_0 = arith.constant 0 : index
    %0 = vector.load %arg1[%c0, %c0_0] : memref<32x256xbf16, #tpu.memory_space<vmem>>, vector<32x256xbf16>
    %c0_1 = arith.constant 0 : index
    %c0_2 = arith.constant 0 : index
    %1 = vector.load %arg2[%c0_1, %c0_2] : memref<256x32xbf16, #tpu.memory_space<vmem>>, vector<256x32xbf16>
    %cst = arith.constant dense<0.000000e+00> : vector<32x32xf32>
    %2 = tpu.matmul %0, %1, %cst {dimension_numbers = #tpu.dot_dimension_numbers<[1], [0], [0], [1], [0, 0, 1, 1], [], []>} : vector<32x256xbf16>, vector<256x32xbf16>, vector<32x32xf32> -> vector<32x32xf32>
    %cst_3 = arith.constant dense<0.000000e+00> : vector<32xf32>
    %3 = vector.multi_reduction <add>, %2, %cst_3 [0] : vector<32x32xf32> to vector<32xf32>
    %4 = vector.shape_cast %3 : vector<32xf32> to vector<1x32xf32>
    %5 = arith.mulf %2, %2 : vector<32x32xf32>
    %cst_4 = arith.constant dense<0.000000e+00> : vector<32xf32>
    %6 = vector.multi_reduction <add>, %5, %cst_4 [0] : vector<32x32xf32> to vector<32xf32>
    %7 = vector.shape_cast %6 : vector<32xf32> to vector<1x32xf32>
    %cst_5 = arith.constant 3.125000e-02 : f32
    %8 = vector.broadcast %cst_5 : f32 to vector<1x32xf32>
    %9 = arith.mulf %4, %8 : vector<1x32xf32>
    %cst_6 = arith.constant 3.125000e-02 : f32
    %10 = vector.broadcast %cst_6 : f32 to vector<1x32xf32>
    %11 = arith.mulf %7, %10 : vector<1x32xf32>
    %12 = arith.mulf %9, %9 : vector<1x32xf32>
    %13 = arith.subf %11, %12 : vector<1x32xf32>
    %cst_7 = arith.constant 0.000000e+00 : f32
    %14 = vector.broadcast %cst_7 : f32 to vector<1x32xf32>
    %15 = arith.maximumf %13, %14 : vector<1x32xf32>
    %c0_8 = arith.constant 0 : index
    %c0_9 = arith.constant 0 : index
    %16 = vector.load %arg3[%c0_8, %c0_9] : memref<1x32xf32, #tpu.memory_space<vmem>>, vector<1x32xf32>
    %cst_10 = arith.constant 9.99999974E-6 : f32
    %17 = vector.broadcast %cst_10 : f32 to vector<1x32xf32>
    %18 = arith.addf %15, %17 : vector<1x32xf32>
    %19 = math.rsqrt %18 : vector<1x32xf32>
    %20 = arith.mulf %16, %19 : vector<1x32xf32>
    %c0_11 = arith.constant 0 : index
    %c0_12 = arith.constant 0 : index
    %21 = vector.load %arg4[%c0_11, %c0_12] : memref<1x32xf32, #tpu.memory_space<vmem>>, vector<1x32xf32>
    %22 = arith.mulf %9, %20 : vector<1x32xf32>
    %23 = arith.subf %21, %22 : vector<1x32xf32>
    %24 = vector.broadcast %20 : vector<1x32xf32> to vector<32x32xf32>
    %25 = arith.mulf %2, %24 : vector<32x32xf32>
    %26 = vector.broadcast %23 : vector<1x32xf32> to vector<32x32xf32>
    %27 = arith.addf %25, %26 : vector<32x32xf32>
    %cst_13 = arith.constant 2.000000e-01 : f32
    %28 = vector.broadcast %cst_13 : f32 to vector<32x32xf32>
    %29 = arith.mulf %28, %27 : vector<32x32xf32>
    %30 = arith.maximumf %27, %29 : vector<32x32xf32>
    %31 = arith.truncf %30 : vector<32x32xf32> to vector<32x32xbf16>
    %c0_14 = arith.constant 0 : index
    %c0_15 = arith.constant 0 : index
    %32 = vector.load %arg5[%c0_14, %c0_15] : memref<32x32xbf16, #tpu.memory_space<vmem>>, vector<32x32xbf16>
    tpu.vector_store %arg5[%c0_14, %c0_15], %31 {strides = array<i32>} : memref<32x32xbf16, #tpu.memory_space<vmem>>, vector<32x32xbf16>,
    return
  }
  func.func @transform_0(%arg0: i32) -> (i32, i32) {
    %c0_i32 = arith.constant 0 : i32
    %c0_i32_0 = arith.constant 0 : i32
    %c0_i32_1 = arith.constant 0 : i32
    return %c0_i32, %c0_i32_0 : i32, i32
  }
  func.func @transform_1(%arg0: i32) -> (i32, i32) {
    %c0_i32 = arith.constant 0 : i32
    %c0_i32_0 = arith.constant 0 : i32
    %c0_i32_1 = arith.constant 0 : i32
    return %c0_i32, %c0_i32_0 : i32, i32
  }
  func.func @transform_2(%arg0: i32) -> (i32, i32) {
    %c0_i32 = arith.constant 0 : i32
    %c0_i32_0 = arith.constant 0 : i32
    %c0_i32_1 = arith.constant 0 : i32
    return %c0_i32, %c0_i32_0 : i32, i32
  }
  func.func @transform_3(%arg0: i32) -> (i32, i32) {
    %c0_i32 = arith.constant 0 : i32
    %c0_i32_0 = arith.constant 0 : i32
    %c0_i32_1 = arith.constant 0 : i32
    return %c0_i32, %c0_i32_0 : i32, i32
  }
  func.func @transform_4(%arg0: i32) -> (i32, i32) {
    %c0_i32 = arith.constant 0 : i32
    %c0_i32_0 = arith.constant 0 : i32
    %c0_i32_1 = arith.constant 0 : i32
    return %c0_i32, %c0_i32_0 : i32, i32
  }
}

module attributes {stable_mosaic.version = 11 : i64} {
  func.func @_matmul_kernel(%arg0: i32, %arg1: memref<8x512xbf16, #tpu.memory_space<vmem>>, %arg2: memref<512x32xbf16, #tpu.memory_space<vmem>>, %arg3: memref<8x32xf32, #tpu.memory_space<vmem>>) attributes {dimension_semantics = [#tpu.dimension_semantics<parallel>], iteration_bounds = array<i64: 1>, scalar_prefetch = 0 : i64, scratch_operands = 0 : i64, tpu.core_type = #tpu.core_type<tc>, window_params = [{transform_indices = @transform_0, window_bounds = array<i64: 8, 512>}, {pipeline_mode = #tpu.pipeline_mode<synchronous>, transform_indices = @transform_1, window_bounds = array<i64: 512, 32>}, {transform_indices = @transform_2, window_bounds = array<i64: 8, 32>}]} {
    %c0 = arith.constant 0 : index
    %c0_0 = arith.constant 0 : index
    %0 = vector.load %arg1[%c0, %c0_0] : memref<8x512xbf16, #tpu.memory_space<vmem>>, vector<8x512xbf16>
    %c0_1 = arith.constant 0 : index
    %c0_2 = arith.constant 0 : index
    %1 = vector.load %arg2[%c0_1, %c0_2] : memref<512x32xbf16, #tpu.memory_space<vmem>>, vector<512x32xbf16>
    %cst = arith.constant dense<0.000000e+00> : vector<8x32xf32>
    %2 = tpu.matmul %0, %1, %cst {dimension_numbers = #tpu.dot_dimension_numbers<[1], [0], [0], [1], [0, 0, 1, 1], [], []>} : vector<8x512xbf16>, vector<512x32xbf16>, vector<8x32xf32> -> vector<8x32xf32>
    %c0_3 = arith.constant 0 : index
    %c0_4 = arith.constant 0 : index
    %3 = vector.load %arg3[%c0_3, %c0_4] : memref<8x32xf32, #tpu.memory_space<vmem>>, vector<8x32xf32>
    tpu.vector_store %arg3[%c0_3, %c0_4], %2 {strides = array<i32>} : memref<8x32xf32, #tpu.memory_space<vmem>>, vector<8x32xf32>,
    return
  }
  func.func @transform_0(%arg0: i32) -> (i32, i32) {
    %c0_i32 = arith.constant 0 : i32
    %c0_i32_0 = arith.constant 0 : i32
    return %arg0, %c0_i32 : i32, i32
  }
  func.func @transform_1(%arg0: i32) -> (i32, i32) {
    %c0_i32 = arith.constant 0 : i32
    %c0_i32_0 = arith.constant 0 : i32
    %c0_i32_1 = arith.constant 0 : i32
    return %c0_i32, %c0_i32_0 : i32, i32
  }
  func.func @transform_2(%arg0: i32) -> (i32, i32) {
    %c0_i32 = arith.constant 0 : i32
    %c0_i32_0 = arith.constant 0 : i32
    return %arg0, %c0_i32 : i32, i32
  }
}

</mosaic_0001>

<bundles_post_ra>
// kernel: encoder_forward.5
= control target key start
LH: loop header
LB: loop body
LE: loop exit
PB: predicated region body
PF: predicated region fallthrough
CT: control target
= control target key end

     0   :  { %vm689_vm0 = vcmask 1041408   ;;  %vm592_vm1 = vcmask 31744   ;;  %vm333_vm2 = vcmask 1046528   ;;  %vm2631_vm3 = vcmask 60416   ;;  %s4328_s1 = inlined_call_operand.vmem [shape: bf16[4,4,8], index: 1, kind: input, shape index: {}]   ;;  %s4329_s0 = inlined_call_operand.vmem [shape: bf16[2,17,17,4], index: 0, kind: input, shape index: {}]   ;;  %s4330_s2 = inlined_call_operand.vmem [shape: bf16[512,8], index: 2, kind: output, shape index: {}]  }
   0x1   :  { %v172_v0 = vld [vmem:[%s4328_s1] sm:$0x3]  ;;  %v2957_v1 = vld [vmem:[%s4328_s1 + $0x4] sm:$0x3]  ;;  %v2700_v2 = vld [vmem:[%s4328_s1 + $0x2] sm:$0x3] }
   0x2   :  { %v959_v3 = vsel %vm689_vm0, %v172_v0, 0  ;;  %v1390_v4 = vsel %vm689_vm0, %v2957_v1, 0  ;;  %v691_v5 = vsel %vm689_vm0, %v2700_v2, 0  ;;  %v3152_v6 = vld [vmem:[%s4329_s0] sm:$0xff]   ;;  %v3119_v7 = vld [vmem:[%s4329_s0 + $0xc] sm:$0xff]  ;;  %v3294_v33 = vld [vmem:[%s4329_s0 + $0x18] sm:$0xff]  }
   0x3   :  { %v2990_v8 = vld [vmem:[%s4329_s0 + $0xc] sm:$0xff]   ;;  %968 = vmatpush.bf16.msra.mxu1 %v959_v3  ;;  %1399 = vmatpush.bf16.msra.mxu2 %v1390_v4  ;;  %v3153_v9 = vunpack.c.l.bf16 %v3152_v6  ;;  %v3154_v10 = vunpack.c.h.bf16 %v3152_v6  ;;  %v3086_v11 = vld [vmem:[%s4328_s1 + $0x6] sm:$0x3]  ;;  %v173_v12 = vld [vmem:[%s4329_s0 + $0x8] sm:$0x1]  ;;  %v3217_v38 = vunpack.c.l.bf16 %v3294_v33  ;;  %v3218_v39 = vunpack.c.h.bf16 %v3294_v33 }
   0x4   :  { %v2992_v13 = vld [vmem:[%s4329_s0 + $0x14] sm:$0x1]  ;;  %v1721_v14 = vunpack.c.l.bf16 %v2990_v8  ;;  %v1722_v15 = vunpack.c.h.bf16 %v2990_v8  ;;  %700 = vmatpush.bf16.msra.mxu0 %v691_v5  ;;  %v2268_v16 = vsel %vm689_vm0, %v3086_v11, 0  ;;  %v205_v17 = vunpack.c.l.bf16 %v173_v12  ;;  %v14_v29 = vld [vmem:[%s4329_s0 + $0xc] sm:$0xff]   ;;  %v2995_v34 = vld [vmem:[%s4329_s0 + $0x20] sm:$0x1] }
   0x5   :  { %v1723_v18 = vunpack.c.l.bf16 %v2992_v13  ;;  %v334_v19 = vrot.slane %v3153_v9, 1  ;;  %v335_v20 = vrot.slane %v3154_v10, 1  ;;  %2277 = vmatpush.bf16.msra.mxu3 %v2268_v16  ;;  %v174_v32 = vld [vmem:[%s4329_s0 + $0x14] sm:$0x1]  ;;  %v78_v35 = vunpack.c.l.bf16 %v14_v29  ;;  %v3120_v47 = vld [vmem:[%s4329_s0 + $0x18] sm:$0xff]  ;;  %v2996_v55 = vld [vmem:[%s4329_s0 + $0x24] sm:$0xff]  }
   0x6   :  { %v1913_v21 = vrot.slane %v1721_v14, 1  ;;  %v1914_v22 = vrot.slane %v1722_v15, 1  ;;  %2733 = vmatmul.msk.bf16.vlgmr.msra.gmra.mxu1 %vm592_vm1, %v3152_v6  ;;  %2958 = vmatmul.msk.bf16.vlgmr.msra.gmra.mxu2 %vm592_vm1, %v3119_v7  ;;  %v337_v23 = vrot.slane %v205_v17, 1  ;;  %v79_v36 = vunpack.c.h.bf16 %v14_v29  ;;  %v175_v54 = vld [vmem:[%s4329_s0 + $0x20] sm:$0x1]  ;;  %v3121_v1 = vld [vmem:[%s4329_s0 + $0x24] sm:$0xff] }
   0x7   :  { %v1916_v24 = vrot.slane %v1723_v18, 1  ;;  %v336_v25 = vsel %vm333_vm2, %v334_v19, %v335_v20  ;;  %v206_v37 = vunpack.c.l.bf16 %v174_v32  ;;  %v1726_v40 = vunpack.c.l.bf16 %v2995_v34  ;;  %v2998_v56 = vld [vmem:[%s4329_s0 + $0x2c] sm:$0x1]  ;;  %v18_v7 = vld [vmem:[%s4329_s0 + $0x24] sm:$0xff]   ;;  %v3295_v9 = vld [vmem:[%s4329_s0 + $0x30] sm:$0xff]  }
   0x8   :  { %v1915_v26 = vsel %vm333_vm2, %v1913_v21, %v1914_v22  ;;  %v338_v27 = vsel %vm333_vm2, %v335_v20, %v337_v23  ;;  %v339_v41 = vrot.slane %v78_v35, 1  ;;  %v340_v42 = vrot.slane %v79_v36, 1  ;;  %v176_v8 = vld [vmem:[%s4329_s0 + $0x2c] sm:$0x1]  ;;  %v3001_v10 = vld [vmem:[%s4329_s0 + $0x38] sm:$0x1] }
   0x9   :  { %v1917_v28 = vsel %vm333_vm2, %v1914_v22, %v1916_v24  ;;  %v558_v30 = vpack.c.bf16 %v338_v27, %v336_v25  ;;  %v342_v43 = vrot.slane %v206_v37, 1  ;;  %v1918_v44 = vrot.slane %v3217_v38, 1  ;;  %v3122_v23 = vld [vmem:[%s4329_s0 + $0x30] sm:$0xff]  ;;  %v3004_v32 = vld [vmem:[%s4329_s0 + $0x44] sm:$0x1] }
   0xa   :  { %v2137_v31 = vpack.c.bf16 %v1917_v28, %v1915_v26  ;;  %v1919_v45 = vrot.slane %v3218_v39, 1  ;;  %v1921_v46 = vrot.slane %v1726_v40, 1  ;;  %v341_v48 = vsel %vm333_vm2, %v339_v41, %v340_v42  ;;  %v3123_v41 = vld [vmem:[%s4329_s0 + $0x3c] sm:$0xff] }
   0xb   :  { %2701 = vmatmul.msk.bf16.vlgmr.msra.gmra.mxu0 %vm592_vm1, %v558_v30  ;;  %v343_v49 = vsel %vm333_vm2, %v340_v42, %v342_v43  ;;  %v207_v57 = vunpack.c.l.bf16 %v175_v54  ;;  %v1727_v58 = vunpack.c.l.bf16 %v2996_v55  ;;  %v1728_v59 = vunpack.c.h.bf16 %v2996_v55  ;;  %v177_v30 = vld [vmem:[%s4329_s0 + $0x38] sm:$0x1] }
   0xc   :  { %3087 = vmatmul.msk.bf16.vlgmr.msra.gmra.mxu3 %vm592_vm1, %v2137_v31  ;;  %v1920_v50 = vsel %vm333_vm2, %v1918_v44, %v1919_v45  ;;  %v1922_v51 = vsel %vm333_vm2, %v1919_v45, %v1921_v46  ;;  %v559_v52 = vpack.c.bf16 %v343_v49, %v341_v48  ;;  %v1729_v60 = vunpack.c.l.bf16 %v2998_v56  ;;  %v3002_v31 = vld [vmem:[%s4329_s0 + $0x3c] sm:$0xff]   ;;  %v178_v48 = vld [vmem:[%s4329_s0 + $0x44] sm:$0x1]  ;;  %v3296_v49 = vld [vmem:[%s4329_s0 + $0x48] sm:$0xff]  }
   0xd   :  { %v2138_v53 = vpack.c.bf16 %v1922_v51, %v1920_v50  ;;  %v347_v61 = vrot.slane %v207_v57, 1  ;;  %v1923_v62 = vrot.slane %v1727_v58, 1  ;;  %v1924_v63 = vrot.slane %v1728_v59, 1 }
   0xe   :  { %v1926_v0 = vrot.slane %v1729_v60, 1  ;;  %v82_v11 = vunpack.c.l.bf16 %v18_v7  ;;  %v83_v12 = vunpack.c.h.bf16 %v18_v7  ;;  %v208_v13 = vunpack.c.l.bf16 %v176_v8  ;;  %v3010_v8 = vld [vmem:[%s4329_s0 + $0x5c] sm:$0x1] }
   0xf   :  { %v348_v2 = vsel %vm333_vm2, %v1919_v45, %v347_v61  ;;  %v1925_v3 = vsel %vm333_vm2, %v1923_v62, %v1924_v63  ;;  %v3221_v14 = vunpack.c.l.bf16 %v3295_v9  ;;  %v3222_v15 = vunpack.c.h.bf16 %v3295_v9 }
  0x10   :  { %v1927_v4 = vsel %vm333_vm2, %v1924_v63, %v1926_v0  ;;  %v560_v5 = vpack.c.bf16 %v348_v2, %v1920_v50  ;;  %v1732_v16 = vunpack.c.l.bf16 %v3001_v10  ;;  %v349_v17 = vrot.slane %v82_v11, 1  ;;  %v3007_v50 = vld [vmem:[%s4329_s0 + $0x50] sm:$0x1]  ;;  %v3124_v63 = vld [vmem:[%s4329_s0 + $0x48] sm:$0xff] }
  0x11   :  { %v2139_v6 = vpack.c.bf16 %v1927_v4, %v1925_v3  ;;  %v350_v18 = vrot.slane %v83_v12, 1  ;;  %v352_v19 = vrot.slane %v208_v13, 1  ;;  %v1928_v20 = vrot.slane %v3221_v14, 1 }
  0x12   :  { %v1929_v21 = vrot.slane %v3222_v15, 1  ;;  %v1931_v22 = vrot.slane %v1732_v16, 1  ;;  %v1733_v34 = vunpack.c.l.bf16 %v3002_v31  ;;  %v1734_v35 = vunpack.c.h.bf16 %v3002_v31 }
  0x13   :  { %v351_v24 = vsel %vm333_vm2, %v349_v17, %v350_v18  ;;  %v353_v25 = vsel %vm333_vm2, %v350_v18, %v352_v19  ;;  %v1735_v36 = vunpack.c.l.bf16 %v3004_v32  ;;  %v3225_v54 = vunpack.c.l.bf16 %v3296_v49  ;;  %v3125_v17 = vld [vmem:[%s4329_s0 + $0x54] sm:$0xff] }
  0x14   :  { %v1930_v26 = vsel %vm333_vm2, %v1928_v20, %v1929_v21  ;;  %v1932_v27 = vsel %vm333_vm2, %v1929_v21, %v1931_v22  ;;  %v561_v28 = vpack.c.bf16 %v353_v25, %v351_v24  ;;  %v1933_v38 = vrot.slane %v1733_v34, 1  ;;  %v180_v24 = vld [vmem:[%s4329_s0 + $0x5c] sm:$0x1]  ;;  %v3297_v25 = vld [vmem:[%s4329_s0 + $0x60] sm:$0xff]  }
  0x15   :  { %v1934_v39 = vrot.slane %v1734_v35, 1  ;;  %v1936_v40 = vrot.slane %v1735_v36, 1  ;;  %v3226_v55 = vunpack.c.h.bf16 %v3296_v49  ;;  %v1738_v56 = vunpack.c.l.bf16 %v3007_v50 }
  0x16   :  { %2734 = vmatmul.msk.bf16.gmra.mxu1 %vm592_vm1, %v14_v29  ;;  %2959 = vmatmul.msk.bf16.gmra.mxu2 %vm592_vm1, %v3120_v47  ;;  %v2140_v29 = vpack.c.bf16 %v1932_v27, %v1930_v26  ;;  %v22_v47 = vld [vmem:[%s4329_s0 + $0x3c] sm:$0xff]   ;;  %v1938_v60 = vrot.slane %v3225_v54, 1  ;;  %v1741_v12 = vunpack.c.l.bf16 %v3010_v8  ;;  %v3230_v31 = vunpack.c.h.bf16 %v3297_v25 }
  0x17   :  { %v1935_v43 = vsel %vm333_vm2, %v1933_v38, %v1934_v39  ;;  %v1937_v44 = vsel %vm333_vm2, %v1934_v39, %v1936_v40  ;;  %v86_v51 = vunpack.c.l.bf16 %v22_v47  ;;  %v1939_v61 = vrot.slane %v3226_v55, 1  ;;  %v3126_v39 = vld [vmem:[%s4329_s0 + $0x60] sm:$0xff] }
  0x18   :  { %v2141_v46 = vpack.c.bf16 %v1937_v44, %v1935_v43  ;;  %v1941_v62 = vrot.slane %v1738_v56, 1  ;;  %v1946_v16 = vrot.slane %v1741_v12, 1 }
  0x19   :  { %v359_v57 = vrot.slane %v86_v51, 1  ;;  %v1940_v2 = vsel %vm333_vm2, %v1938_v60, %v1939_v61 }
  0x1a   :  { %v1942_v3 = vsel %vm333_vm2, %v1939_v61, %v1941_v62 }
  0x1b   :  { %2702 = vmatmul.msk.bf16.gmra.mxu0 %vm592_vm1, %v559_v52  ;;  %v87_v52 = vunpack.c.h.bf16 %v22_v47 }
  0x1c   :  { %3088 = vmatmul.msk.bf16.gmra.mxu3 %vm592_vm1, %v2138_v53  ;;  %v210_v53 = vunpack.c.l.bf16 %v178_v48  ;;  %v3016_v48 = vld [vmem:[%s4329_s0 + $0x74] sm:$0x1] }
  0x1d   :  { %v360_v58 = vrot.slane %v87_v52, 1  ;;  %v1747_v52 = vunpack.c.l.bf16 %v3016_v48 }
  0x1e   :  { %v362_v59 = vrot.slane %v210_v53, 1 }
  0x1f   :  { %v361_v0 = vsel %vm333_vm2, %v359_v57, %v360_v58  ;;  %v1956_v56 = vrot.slane %v1747_v52, 1  ;;  %v3127_v57 = vld [vmem:[%s4329_s0 + $0x6c] sm:$0xff] }
  0x26   :  { %2735 = vmatmul.msk.bf16.gmra.mxu1 %vm592_vm1, %v3294_v33  ;;  %2960 = vmatmul.msk.bf16.gmra.mxu2 %vm592_vm1, %v3121_v1  ;;  %v209_v33 = vunpack.c.l.bf16 %v177_v30  ;;  %v363_v1 = vsel %vm333_vm2, %v360_v58, %v362_v59  ;;  %v3229_v30 = vunpack.c.l.bf16 %v3297_v25 }
  0x27   :  { %v563_v4 = vpack.c.bf16 %v363_v1, %v361_v0  ;;  %v30_v1 = vld [vmem:[%s4329_s0 + $0x6c] sm:$0xff]  }
  0x28   :  { %v357_v37 = vrot.slane %v209_v33, 1  ;;  %v1948_v36 = vrot.slane %v3229_v30, 1 }
  0x2a   :  { %v358_v42 = vsel %vm333_vm2, %v1929_v21, %v357_v37  ;;  %v1949_v37 = vrot.slane %v3230_v31, 1 }
  0x2b   :  { %2703 = vmatmul.msk.bf16.gmra.mxu0 %vm592_vm1, %v560_v5  ;;  %v562_v45 = vpack.c.bf16 %v358_v42, %v1930_v26  ;;  %v2142_v5 = vpack.c.bf16 %v1942_v3, %v1940_v2  ;;  %v3013_v26 = vld [vmem:[%s4329_s0 + $0x68] sm:$0x1] }
  0x2c   :  { %3089 = vmatmul.msk.bf16.gmra.mxu3 %vm592_vm1, %v2139_v6  ;;  %v179_v6 = vld [vmem:[%s4329_s0 + $0x50] sm:$0x1]  ;;  %v1744_v32 = vunpack.c.l.bf16 %v3013_v26  ;;  %v1950_v42 = vsel %vm333_vm2, %v1948_v36, %v1949_v37 }
  0x2e   :  { %v1951_v38 = vrot.slane %v1744_v32, 1 }
  0x30   :  { %v1952_v43 = vsel %vm333_vm2, %v1949_v37, %v1951_v38 }
  0x36   :  { %2736 = vmatmul.msk.bf16.gmra.mxu1 %vm592_vm1, %v18_v7  ;;  %2961 = vmatmul.msk.bf16.gmra.mxu2 %vm592_vm1, %v3122_v23  ;;  %v3008_v7 = vld [vmem:[%s4329_s0 + $0x54] sm:$0xff]  }
  0x37   :  { %v1739_v10 = vunpack.c.l.bf16 %v3008_v7  ;;  %v1740_v11 = vunpack.c.h.bf16 %v3008_v7  ;;  %v26_v23 = vld [vmem:[%s4329_s0 + $0x54] sm:$0xff]  }
  0x38   :  { %v90_v27 = vunpack.c.l.bf16 %v26_v23 }
  0x39   :  { %v1943_v14 = vrot.slane %v1739_v10, 1  ;;  %v1944_v15 = vrot.slane %v1740_v11, 1  ;;  %v95_v10 = vunpack.c.h.bf16 %v30_v1 }
  0x3a   :  { %v369_v33 = vrot.slane %v90_v27, 1  ;;  %v3128_v27 = vld [vmem:[%s4329_s0 + $0x78] sm:$0xff] }
  0x3b   :  { %2704 = vmatmul.msk.bf16.gmra.mxu0 %vm592_vm1, %v561_v28  ;;  %v1945_v19 = vsel %vm333_vm2, %v1943_v14, %v1944_v15  ;;  %v1947_v20 = vsel %vm333_vm2, %v1944_v15, %v1946_v16  ;;  %v91_v28 = vunpack.c.h.bf16 %v26_v23 }
  0x3c   :  { %3090 = vmatmul.msk.bf16.gmra.mxu3 %vm592_vm1, %v2140_v29  ;;  %v2143_v22 = vpack.c.bf16 %v1947_v20, %v1945_v19  ;;  %v212_v29 = vunpack.c.l.bf16 %v180_v24 }
  0x3d   :  { %v370_v34 = vrot.slane %v91_v28, 1 }
  0x3e   :  { %v372_v35 = vrot.slane %v212_v29, 1 }
  0x3f   :  { %v371_v40 = vsel %vm333_vm2, %v369_v33, %v370_v34 }
  0x46   :  { %2737 = vmatmul.msk.bf16.gmra.mxu1 %vm592_vm1, %v3295_v9  ;;  %2962 = vmatmul.msk.bf16.gmra.mxu2 %vm592_vm1, %v3123_v41  ;;  %v211_v9 = vunpack.c.l.bf16 %v179_v6  ;;  %v373_v41 = vsel %vm333_vm2, %v370_v34, %v372_v35  ;;  %v3019_v6 = vld [vmem:[%s4329_s0 + $0x80] sm:$0x1] }
  0x47   :  { %v565_v44 = vpack.c.bf16 %v373_v41, %v371_v40  ;;  %v1750_v14 = vunpack.c.l.bf16 %v3019_v6 }
  0x48   :  { %v367_v13 = vrot.slane %v211_v9, 1  ;;  %v94_v9 = vunpack.c.l.bf16 %v30_v1 }
  0x4a   :  { %v368_v18 = vsel %vm333_vm2, %v1939_v61, %v367_v13 }
  0x4b   :  { %2705 = vmatmul.msk.bf16.gmra.mxu0 %vm592_vm1, %v562_v45  ;;  %v564_v21 = vpack.c.bf16 %v368_v18, %v1940_v2  ;;  %v2144_v45 = vpack.c.bf16 %v1952_v43, %v1950_v42  ;;  %v380_v18 = vrot.slane %v95_v10, 1  ;;  %v183_v43 = vld [vmem:[%s4329_s0 + $0x80] sm:$0x1] }
  0x4c   :  { %3091 = vmatmul.msk.bf16.gmra.mxu3 %vm592_vm1, %v2141_v46  ;;  %v181_v46 = vld [vmem:[%s4329_s0 + $0x68] sm:$0x1] }
  0x56   :  { %2738 = vmatmul.msk.bf16.gmra.mxu1 %vm592_vm1, %v22_v47  ;;  %2963 = vmatmul.msk.bf16.gmra.mxu2 %vm592_vm1, %v3124_v63  ;;  %v3014_v47 = vld [vmem:[%s4329_s0 + $0x6c] sm:$0xff]  }
  0x57   :  { %v1745_v50 = vunpack.c.l.bf16 %v3014_v47  ;;  %v1746_v51 = vunpack.c.h.bf16 %v3014_v47 }
  0x59   :  { %v1953_v54 = vrot.slane %v1745_v50, 1  ;;  %v1954_v55 = vrot.slane %v1746_v51, 1 }
  0x5b   :  { %2706 = vmatmul.msk.bf16.gmra.mxu0 %vm592_vm1, %v563_v4  ;;  %v1955_v60 = vsel %vm333_vm2, %v1953_v54, %v1954_v55  ;;  %v1957_v61 = vsel %vm333_vm2, %v1954_v55, %v1956_v56  ;;  %v182_v4 = vld [vmem:[%s4329_s0 + $0x74] sm:$0x1] }
  0x5c   :  { %3092 = vmatmul.msk.bf16.gmra.mxu3 %vm592_vm1, %v2142_v5  ;;  %v2145_v63 = vpack.c.bf16 %v1957_v61, %v1955_v60  ;;  %v3539_v5 = vld [vmem:[%s4329_s0 + $0x78] sm:$0xff]   ;;  %v214_v11 = vunpack.c.l.bf16 %v182_v4 }
  0x5d   :  { %v3233_v12 = vunpack.c.l.bf16 %v3539_v5  ;;  %v3234_v13 = vunpack.c.h.bf16 %v3539_v5 }
  0x5e   :  { %v382_v20 = vrot.slane %v214_v11, 1 }
  0x60   :  { %v383_v32 = vsel %vm333_vm2, %v380_v18, %v382_v20 }
  0x66   :  { %2739 = vmatmul.msk.bf16.gmra.mxu1 %vm592_vm1, %v3296_v49  ;;  %2964 = vmatmul.msk.bf16.gmra.mxu2 %vm592_vm1, %v3125_v17  ;;  %v213_v49 = vunpack.c.l.bf16 %v181_v46  ;;  %v379_v17 = vrot.slane %v94_v9, 1 }
  0x68   :  { %v377_v53 = vrot.slane %v213_v49, 1  ;;  %v381_v31 = vsel %vm333_vm2, %v379_v17, %v380_v18  ;;  %v215_v49 = vunpack.c.l.bf16 %v183_v43  ;;  %v3025_v17 = vld [vmem:[%s4329_s0 + $0x98] sm:$0x1] }
  0x6a   :  { %v378_v59 = vsel %vm333_vm2, %v1949_v37, %v377_v53  ;;  %v567_v37 = vpack.c.bf16 %v383_v32, %v381_v31  ;;  %v387_v56 = vrot.slane %v215_v49, 1 }
  0x6b   :  { %2707 = vmatmul.msk.bf16.gmra.mxu0 %vm592_vm1, %v564_v21  ;;  %v566_v62 = vpack.c.bf16 %v378_v59, %v1950_v42  ;;  %v1958_v21 = vrot.slane %v3233_v12, 1  ;;  %v34_v12 = vld [vmem:[%s4329_s0 + $0x84] sm:$0xff]  }
  0x6c   :  { %3093 = vmatmul.msk.bf16.gmra.mxu3 %vm592_vm1, %v2143_v22  ;;  %v1959_v22 = vrot.slane %v3234_v13, 1 }
  0x6e   :  { %v1960_v33 = vsel %vm333_vm2, %v1958_v21, %v1959_v22  ;;  %v98_v21 = vunpack.c.l.bf16 %v34_v12 }
  0x76   :  { %2740 = vmatmul.msk.bf16.gmra.mxu1 %vm592_vm1, %v26_v23  ;;  %2965 = vmatmul.msk.bf16.gmra.mxu2 %vm592_vm1, %v3126_v39  ;;  %v1961_v23 = vrot.slane %v1750_v14, 1 }
  0x78   :  { %v1962_v34 = vsel %vm333_vm2, %v1959_v22, %v1961_v23 }
  0x79   :  { %v2146_v38 = vpack.c.bf16 %v1962_v34, %v1960_v33 }
  0x7b   :  { %2708 = vmatmul.msk.bf16.gmra.mxu0 %vm592_vm1, %v565_v44  ;;  %v3020_v44 = vld [vmem:[%s4329_s0 + $0x84] sm:$0xff]  }
  0x7c   :  { %3094 = vmatmul.msk.bf16.gmra.mxu3 %vm592_vm1, %v2144_v45  ;;  %v3022_v45 = vld [vmem:[%s4329_s0 + $0x8c] sm:$0x1]  ;;  %v1751_v50 = vunpack.c.l.bf16 %v3020_v44  ;;  %v1752_v51 = vunpack.c.h.bf16 %v3020_v44 }
  0x7d   :  { %v1753_v52 = vunpack.c.l.bf16 %v3022_v45 }
  0x7f   :  { %v1966_v59 = vrot.slane %v1753_v52, 1 }
  0x83   :  { %v970_v58 = vpop.f32.mrf.mxu1 }
  0x86   :  { %2741 = vmatmul.msk.bf16.gmra.mxu1 %vm592_vm1, %v3297_v25  ;;  %2966 = vmatmul.msk.bf16.gmra.mxu2 %vm592_vm1, %v3127_v57  ;;  %v1963_v57 = vrot.slane %v1751_v50, 1 }
  0x88   :  { %v702_v0 = vpop.f32.mrf.mxu0 }
  0x89   :  { %v971_v2 = vadd.f32 %v970_v58, %v702_v0  ;;  %v1401_v3 = vpop.f32.mrf.mxu2  ;;  %v1964_v58 = vrot.slane %v1752_v51, 1 }
  0x8b   :  { %2709 = vmatmul.msk.bf16.gmra.mxu0 %vm592_vm1, %v566_v62  ;;  %v1561_v7 = vadd.f32 %v1401_v3, %v971_v2  ;;  %v972_v8 = vpop.f32.mrf.mxu1  ;;  %v388_v3 = vsel %vm333_vm2, %v1959_v22, %v387_v56  ;;  %v1965_v4 = vsel %vm333_vm2, %v1963_v57, %v1964_v58  ;;  %v1967_v6 = vsel %vm333_vm2, %v1964_v58, %v1966_v59  ;;  %v3026_v56 = vld [vmem:[%s4329_s0 + $0x9c] sm:$0xff]   ;;  %v3028_v57 = vld [vmem:[%s4329_s0 + $0xa4] sm:$0x1] }
  0x8c   :  { %3095 = vmatmul.msk.bf16.gmra.mxu3 %vm592_vm1, %v2145_v63  ;;  %v3129_v63 = vld [vmem:[%s4329_s0 + $0x84] sm:$0xff]  ;;  %v568_v9 = vpack.c.bf16 %v388_v3, %v1960_v33  ;;  %v2147_v10 = vpack.c.bf16 %v1967_v6, %v1965_v4  ;;  %v99_v22 = vunpack.c.h.bf16 %v34_v12 }
  0x8f   :  { %v2279_v15 = vpop.f32.mrf.mxu3 }
  0x90   :  { %v2439_v16 = vadd.f32 %v2279_v15, %v1561_v7  ;;  %v704_v19 = vpop.f32.mrf.mxu0 }
  0x91   :  { %v973_v25 = vadd.f32 %v972_v8, %v704_v19  ;;  %v1403_v26 = vpop.f32.mrf.mxu2 }
  0x92   :  { %v2503_v24 = vmax.f32 %v2439_v16, 0.0  ;;  %v184_v16 = vld [vmem:[%s4329_s0 + $0x8c] sm:$0x1] }
  0x93   :  { %v1562_v29 = vadd.f32 %v1403_v26, %v973_v25  ;;  %v975_v30 = vpop.f32.mrf.mxu1  ;;  %v216_v23 = vunpack.c.l.bf16 %v184_v16  ;;  %v1756_v26 = vunpack.c.l.bf16 %v3025_v17 }
  0x94   :  { %v2567_v28 = vpack.c.bf16 %v2503_v24, %v2503_v24 }
  0x95   :  { %v392_v32 = vrot.slane %v216_v23, 1 }
  0x96   :  { %2632 = vst.msk [vmem:[%s4330_s2] sm:$0xf] %vm2631_vm3, %v2567_v28  ;;  %2742 = vmatmul.msk.bf16.gmra.mxu1 %vm592_vm1, %v30_v1  ;;  %2967 = vmatmul.msk.bf16.gmra.mxu2 %vm592_vm1, %v3128_v27 }
  0x97   :  { %v2281_v35 = vpop.f32.mrf.mxu3 }
  0x98   :  { %v2440_v36 = vadd.f32 %v2281_v35, %v1562_v29  ;;  %v707_v39 = vpop.f32.mrf.mxu0  ;;  %v389_v29 = vrot.slane %v98_v21, 1  ;;  %v1971_v35 = vrot.slane %v1756_v26, 1 }
  0x99   :  { %v976_v41 = vadd.f32 %v975_v30, %v707_v39  ;;  %v1406_v42 = vpop.f32.mrf.mxu2  ;;  %v390_v30 = vrot.slane %v99_v22, 1  ;;  %v3130_v39 = vld [vmem:[%s4329_s0 + $0x90] sm:$0xff] }
  0x9a   :  { %v2504_v40 = vmax.f32 %v2440_v36, 0.0 }
  0x9b   :  { %2710 = vmatmul.msk.bf16.gmra.mxu0 %vm592_vm1, %v567_v37  ;;  %v1563_v47 = vadd.f32 %v1406_v42, %v976_v41  ;;  %v977_v48 = vpop.f32.mrf.mxu1  ;;  %v391_v43 = vsel %vm333_vm2, %v389_v29, %v390_v30  ;;  %v393_v44 = vsel %vm333_vm2, %v390_v30, %v392_v32  ;;  %v3031_v29 = vld [vmem:[%s4329_s0 + $0xb0] sm:$0x1] }
  0x9c   :  { %v2568_v46 = vpack.c.bf16 %v2504_v40, %v2504_v40  ;;  %3096 = vmatmul.msk.bf16.gmra.mxu3 %vm592_vm1, %v2146_v38  ;;  %v569_v49 = vpack.c.bf16 %v393_v44, %v391_v43 }
  0x9e   :  { %2633 = vst.msk [vmem:[%s4330_s2 + $0x4] sm:$0xf] %vm2631_vm3, %v2568_v46 }
  0x9f   :  { %v2284_v53 = vpop.f32.mrf.mxu3 }
  0xa0   :  { %v2441_v54 = vadd.f32 %v2284_v53, %v1563_v47  ;;  %v709_v55 = vpop.f32.mrf.mxu0 }
  0xa1   :  { %v978_v61 = vadd.f32 %v977_v48, %v709_v55  ;;  %v1408_v62 = vpop.f32.mrf.mxu2  ;;  %v185_v55 = vld [vmem:[%s4329_s0 + $0x98] sm:$0x1] }
  0xa2   :  { %v2505_v60 = vmax.f32 %v2441_v54, 0.0 }
  0xa3   :  { %v1564_v1 = vadd.f32 %v1408_v62, %v978_v61  ;;  %v980_v2 = vpop.f32.mrf.mxu1  ;;  %v217_v61 = vunpack.c.l.bf16 %v185_v55  ;;  %v1757_v62 = vunpack.c.l.bf16 %v3026_v56 }
  0xa4   :  { %v2569_v0 = vpack.c.bf16 %v2505_v60, %v2505_v60 }
  0xa5   :  { %v397_v4 = vrot.slane %v217_v61, 1  ;;  %v1973_v6 = vrot.slane %v1757_v62, 1 }
  0xa6   :  { %2634 = vst.msk [vmem:[%s4330_s2 + $0x8] sm:$0xf] %vm2631_vm3, %v2569_v0  ;;  %2743 = vmatmul.msk.bf16.gmra.mxu1 %vm592_vm1, %v3539_v5  ;;  %2968 = vmatmul.msk.bf16.gmra.mxu2 %vm592_vm1, %v3129_v63  ;;  %v3598_v5 = vld [vmem:[%s4329_s0 + $0x90] sm:$0xff]   ;;  %v1758_v63 = vunpack.c.h.bf16 %v3026_v56  ;;  %v1759_v0 = vunpack.c.l.bf16 %v3028_v57 }
  0xa7   :  { %v2286_v7 = vpop.f32.mrf.mxu3  ;;  %v3237_v24 = vunpack.c.l.bf16 %v3598_v5  ;;  %v3238_v25 = vunpack.c.h.bf16 %v3598_v5 }
  0xa8   :  { %v2442_v8 = vadd.f32 %v2286_v7, %v1564_v1  ;;  %v712_v11 = vpop.f32.mrf.mxu0  ;;  %v1974_v7 = vrot.slane %v1758_v63, 1 }
  0xa9   :  { %v981_v14 = vadd.f32 %v980_v2, %v712_v11  ;;  %v1411_v15 = vpop.f32.mrf.mxu2  ;;  %v1968_v33 = vrot.slane %v3237_v24, 1  ;;  %v1969_v34 = vrot.slane %v3238_v25, 1  ;;  %v38_v24 = vld [vmem:[%s4329_s0 + $0x9c] sm:$0xff]  }
  0xaa   :  { %v2506_v13 = vmax.f32 %v2442_v8, 0.0  ;;  %v1976_v8 = vrot.slane %v1759_v0, 1  ;;  %v1975_v17 = vsel %vm333_vm2, %v1973_v6, %v1974_v7  ;;  %v3034_v6 = vld [vmem:[%s4329_s0 + $0xbc] sm:$0x1] }
  0xab   :  { %2711 = vmatmul.msk.bf16.gmra.mxu0 %vm592_vm1, %v568_v9  ;;  %v1565_v19 = vadd.f32 %v1411_v15, %v981_v14  ;;  %v982_v20 = vpop.f32.mrf.mxu1  ;;  %v1970_v45 = vsel %vm333_vm2, %v1968_v33, %v1969_v34  ;;  %v1972_v46 = vsel %vm333_vm2, %v1969_v34, %v1971_v35  ;;  %v398_v16 = vsel %vm333_vm2, %v1969_v34, %v397_v4  ;;  %v3032_v4 = vld [vmem:[%s4329_s0 + $0xb4] sm:$0xff]  }
  0xac   :  { %v2570_v18 = vpack.c.bf16 %v2506_v13, %v2506_v13  ;;  %3097 = vmatmul.msk.bf16.gmra.mxu3 %vm592_vm1, %v2147_v10  ;;  %v2148_v50 = vpack.c.bf16 %v1972_v46, %v1970_v45  ;;  %v570_v21 = vpack.c.bf16 %v398_v16, %v1970_v45  ;;  %v102_v33 = vunpack.c.l.bf16 %v38_v24 }
  0xad   :  { %v103_v34 = vunpack.c.h.bf16 %v38_v24 }
  0xae   :  { %2635 = vst.msk [vmem:[%s4330_s2 + $0xc] sm:$0xf] %vm2631_vm3, %v2570_v18  ;;  %v1977_v18 = vsel %vm333_vm2, %v1974_v7, %v1976_v8 }
  0xaf   :  { %v2289_v27 = vpop.f32.mrf.mxu3  ;;  %v2149_v22 = vpack.c.bf16 %v1977_v18, %v1975_v17 }
  0xb0   :  { %v2443_v28 = vadd.f32 %v2289_v27, %v1565_v19  ;;  %v714_v31 = vpop.f32.mrf.mxu0 }
  0xb1   :  { %v983_v37 = vadd.f32 %v982_v20, %v714_v31  ;;  %v1413_v38 = vpop.f32.mrf.mxu2 }
  0xb2   :  { %v2507_v36 = vmax.f32 %v2443_v28, 0.0  ;;  %v186_v28 = vld [vmem:[%s4329_s0 + $0xa4] sm:$0x1] }
  0xb3   :  { %v1566_v41 = vadd.f32 %v1413_v38, %v983_v37  ;;  %v985_v42 = vpop.f32.mrf.mxu1  ;;  %v218_v35 = vunpack.c.l.bf16 %v186_v28  ;;  %v1762_v38 = vunpack.c.l.bf16 %v3031_v29 }
  0xb4   :  { %v2571_v40 = vpack.c.bf16 %v2507_v36, %v2507_v36 }
  0xb5   :  { %v402_v44 = vrot.slane %v218_v35, 1 }
  0xb6   :  { %2636 = vst.msk [vmem:[%s4330_s2 + $0x10] sm:$0xf] %vm2631_vm3, %v2571_v40  ;;  %2744 = vmatmul.msk.bf16.gmra.mxu1 %vm592_vm1, %v34_v12  ;;  %2969 = vmatmul.msk.bf16.gmra.mxu2 %vm592_vm1, %v3130_v39  ;;  %v3131_v12 = vld [vmem:[%s4329_s0 + $0x9c] sm:$0xff] }
  0xb7   :  { %v2291_v47 = vpop.f32.mrf.mxu3 }
  0xb8   :  { %v2444_v48 = vadd.f32 %v2291_v47, %v1566_v41  ;;  %v717_v51 = vpop.f32.mrf.mxu0  ;;  %v399_v41 = vrot.slane %v102_v33, 1  ;;  %v1981_v47 = vrot.slane %v1762_v38, 1 }
  0xb9   :  { %v986_v53 = vadd.f32 %v985_v42, %v717_v51  ;;  %v1416_v54 = vpop.f32.mrf.mxu2  ;;  %v400_v42 = vrot.slane %v103_v34, 1  ;;  %v3132_v51 = vld [vmem:[%s4329_s0 + $0xa8] sm:$0xff] }
  0xba   :  { %v2508_v52 = vmax.f32 %v2444_v48, 0.0 }
  0xbb   :  { %2712 = vmatmul.msk.bf16.gmra.mxu0 %vm592_vm1, %v569_v49  ;;  %v1567_v59 = vadd.f32 %v1416_v54, %v986_v53  ;;  %v987_v60 = vpop.f32.mrf.mxu1  ;;  %v401_v55 = vsel %vm333_vm2, %v399_v41, %v400_v42  ;;  %v403_v56 = vsel %vm333_vm2, %v400_v42, %v402_v44  ;;  %v3037_v41 = vld [vmem:[%s4329_s0 + $0xc8] sm:$0x1] }
  0xbc   :  { %v2572_v58 = vpack.c.bf16 %v2508_v52, %v2508_v52  ;;  %3098 = vmatmul.msk.bf16.gmra.mxu3 %vm592_vm1, %v2148_v50  ;;  %v571_v61 = vpack.c.bf16 %v403_v56, %v401_v55 }
  0xbe   :  { %2637 = vst.msk [vmem:[%s4330_s2 + $0x14] sm:$0xf] %vm2631_vm3, %v2572_v58 }
  0xbf   :  { %v2294_v1 = vpop.f32.mrf.mxu3 }
  0xc0   :  { %v2445_v2 = vadd.f32 %v2294_v1, %v1567_v59  ;;  %v719_v3 = vpop.f32.mrf.mxu0 }
  0xc1   :  { %v988_v10 = vadd.f32 %v987_v60, %v719_v3  ;;  %v1418_v11 = vpop.f32.mrf.mxu2  ;;  %v187_v3 = vld [vmem:[%s4329_s0 + $0xb0] sm:$0x1] }
  0xc2   :  { %v2509_v9 = vmax.f32 %v2445_v2, 0.0 }
  0xc3   :  { %v1568_v14 = vadd.f32 %v1418_v11, %v988_v10  ;;  %v990_v15 = vpop.f32.mrf.mxu1  ;;  %v219_v10 = vunpack.c.l.bf16 %v187_v3  ;;  %v1763_v11 = vunpack.c.l.bf16 %v3032_v4 }
  0xc4   :  { %v2573_v13 = vpack.c.bf16 %v2509_v9, %v2509_v9 }
  0xc5   :  { %v407_v17 = vrot.slane %v219_v10, 1  ;;  %v1983_v18 = vrot.slane %v1763_v11, 1 }
  0xc6   :  { %2638 = vst.msk [vmem:[%s4330_s2 + $0x18] sm:$0xf] %vm2631_vm3, %v2573_v13  ;;  %2745 = vmatmul.msk.bf16.gmra.mxu1 %vm592_vm1, %v3598_v5  ;;  %2970 = vmatmul.msk.bf16.gmra.mxu2 %vm592_vm1, %v3131_v12  ;;  %v3661_v5 = vld [vmem:[%s4329_s0 + $0xa8] sm:$0xff]   ;;  %v1764_v12 = vunpack.c.h.bf16 %v3032_v4  ;;  %v1765_v13 = vunpack.c.l.bf16 %v3034_v6 }
  0xc7   :  { %v2296_v19 = vpop.f32.mrf.mxu3  ;;  %v3241_v36 = vunpack.c.l.bf16 %v3661_v5  ;;  %v3242_v37 = vunpack.c.h.bf16 %v3661_v5 }
  0xc8   :  { %v2446_v20 = vadd.f32 %v2296_v19, %v1568_v14  ;;  %v722_v23 = vpop.f32.mrf.mxu0  ;;  %v1984_v19 = vrot.slane %v1764_v12, 1 }
  0xc9   :  { %v991_v26 = vadd.f32 %v990_v15, %v722_v23  ;;  %v1421_v27 = vpop.f32.mrf.mxu2  ;;  %v1978_v45 = vrot.slane %v3241_v36, 1  ;;  %v1979_v46 = vrot.slane %v3242_v37, 1  ;;  %v42_v36 = vld [vmem:[%s4329_s0 + $0xb4] sm:$0xff]  }
  0xca   :  { %v2510_v25 = vmax.f32 %v2446_v20, 0.0  ;;  %v1986_v20 = vrot.slane %v1765_v13, 1  ;;  %v1985_v29 = vsel %vm333_vm2, %v1983_v18, %v1984_v19  ;;  %v44_v13 = vld [vmem:[%s4329_s0 + $0xcc] sm:$0xff]   ;;  %v3755_v18 = vld [vmem:[%s4329_s0 + $0xd8] sm:$0xff]  }
  0xcb   :  { %2713 = vmatmul.msk.bf16.gmra.mxu0 %vm592_vm1, %v570_v21  ;;  %v1569_v31 = vadd.f32 %v1421_v27, %v991_v26  ;;  %v992_v32 = vpop.f32.mrf.mxu1  ;;  %v1980_v57 = vsel %vm333_vm2, %v1978_v45, %v1979_v46  ;;  %v1982_v58 = vsel %vm333_vm2, %v1979_v46, %v1981_v47  ;;  %v408_v28 = vsel %vm333_vm2, %v1979_v46, %v407_v17  ;;  %v189_v17 = vld [vmem:[%s4329_s0 + $0xd4] sm:$0x1] }
  0xcc   :  { %v2574_v30 = vpack.c.bf16 %v2510_v25, %v2510_v25  ;;  %3099 = vmatmul.msk.bf16.gmra.mxu3 %vm592_vm1, %v2149_v22  ;;  %v2150_v62 = vpack.c.bf16 %v1982_v58, %v1980_v57  ;;  %v572_v33 = vpack.c.bf16 %v408_v28, %v1980_v57  ;;  %v106_v45 = vunpack.c.l.bf16 %v42_v36 }
  0xcd   :  { %v107_v46 = vunpack.c.h.bf16 %v42_v36 }
  0xce   :  { %2639 = vst.msk [vmem:[%s4330_s2 + $0x1c] sm:$0xf] %vm2631_vm3, %v2574_v30  ;;  %v1987_v30 = vsel %vm333_vm2, %v1984_v19, %v1986_v20  ;;  %v3040_v19 = vld [vmem:[%s4329_s0 + $0xe0] sm:$0x1] }
  0xcf   :  { %v2299_v39 = vpop.f32.mrf.mxu3  ;;  %v2151_v34 = vpack.c.bf16 %v1987_v30, %v1985_v29  ;;  %v1771_v28 = vunpack.c.l.bf16 %v3040_v19 }
  0xd0   :  { %v2447_v40 = vadd.f32 %v2299_v39, %v1569_v31  ;;  %v724_v43 = vpop.f32.mrf.mxu0 }
  0xd1   :  { %v993_v49 = vadd.f32 %v992_v32, %v724_v43  ;;  %v1423_v50 = vpop.f32.mrf.mxu2 }
  0xd2   :  { %v2511_v48 = vmax.f32 %v2447_v40, 0.0  ;;  %v188_v40 = vld [vmem:[%s4329_s0 + $0xbc] sm:$0x1] }
  0xd3   :  { %v1570_v53 = vadd.f32 %v1423_v50, %v993_v49  ;;  %v995_v54 = vpop.f32.mrf.mxu1  ;;  %v220_v47 = vunpack.c.l.bf16 %v188_v40  ;;  %v1768_v50 = vunpack.c.l.bf16 %v3037_v41 }
  0xd4   :  { %v2575_v52 = vpack.c.bf16 %v2511_v48, %v2511_v48 }
  0xd5   :  { %v412_v56 = vrot.slane %v220_v47, 1 }
  0xd6   :  { %2640 = vst.msk [vmem:[%s4330_s2 + $0x20] sm:$0xf] %vm2631_vm3, %v2575_v52  ;;  %2746 = vmatmul.msk.bf16.gmra.mxu1 %vm592_vm1, %v38_v24  ;;  %2971 = vmatmul.msk.bf16.gmra.mxu2 %vm592_vm1, %v3132_v51  ;;  %v3133_v24 = vld [vmem:[%s4329_s0 + $0xb4] sm:$0xff] }
  0xd7   :  { %v2301_v59 = vpop.f32.mrf.mxu3 }
  0xd8   :  { %v2448_v60 = vadd.f32 %v2301_v59, %v1570_v53  ;;  %v727_v63 = vpop.f32.mrf.mxu0  ;;  %v409_v53 = vrot.slane %v106_v45, 1  ;;  %v1991_v59 = vrot.slane %v1768_v50, 1 }
  0xd9   :  { %v996_v1 = vadd.f32 %v995_v54, %v727_v63  ;;  %v1426_v2 = vpop.f32.mrf.mxu2  ;;  %v410_v54 = vrot.slane %v107_v46, 1  ;;  %v3134_v63 = vld [vmem:[%s4329_s0 + $0xc0] sm:$0xff] }
  0xda   :  { %v2512_v0 = vmax.f32 %v2448_v60, 0.0 }
  0xdb   :  { %2714 = vmatmul.msk.bf16.gmra.mxu0 %vm592_vm1, %v571_v61  ;;  %v1571_v8 = vadd.f32 %v1426_v2, %v996_v1  ;;  %v997_v9 = vpop.f32.mrf.mxu1  ;;  %v411_v3 = vsel %vm333_vm2, %v409_v53, %v410_v54  ;;  %v413_v4 = vsel %vm333_vm2, %v410_v54, %v412_v56  ;;  %v190_v56 = vld [vmem:[%s4329_s0 + $0xe0] sm:$0x1] }
  0xdc   :  { %v2576_v7 = vpack.c.bf16 %v2512_v0, %v2512_v0  ;;  %3100 = vmatmul.msk.bf16.gmra.mxu3 %vm592_vm1, %v2150_v62  ;;  %v573_v10 = vpack.c.bf16 %v413_v4, %v411_v3 }
  0xde   :  { %2641 = vst.msk [vmem:[%s4330_s2 + $0x24] sm:$0xf] %vm2631_vm3, %v2576_v7 }
  0xdf   :  { %v2304_v14 = vpop.f32.mrf.mxu3 }
  0xe0   :  { %v2449_v15 = vadd.f32 %v2304_v14, %v1571_v8  ;;  %v729_v16 = vpop.f32.mrf.mxu0 }
  0xe1   :  { %v998_v22 = vadd.f32 %v997_v9, %v729_v16  ;;  %v1428_v23 = vpop.f32.mrf.mxu2 }
  0xe2   :  { %v2513_v21 = vmax.f32 %v2449_v15, 0.0 }
  0xe3   :  { %v1572_v26 = vadd.f32 %v1428_v23, %v998_v22  ;;  %v1000_v27 = vpop.f32.mrf.mxu1  ;;  %v108_v23 = vunpack.c.l.bf16 %v44_v13 }
  0xe4   :  { %v2577_v25 = vpack.c.bf16 %v2513_v21, %v2513_v21 }
  0xe6   :  { %2642 = vst.msk [vmem:[%s4330_s2 + $0x28] sm:$0xf] %vm2631_vm3, %v2577_v25  ;;  %2747 = vmatmul.msk.bf16.gmra.mxu1 %vm592_vm1, %v3661_v5  ;;  %2972 = vmatmul.msk.bf16.gmra.mxu2 %vm592_vm1, %v3133_v24  ;;  %v3301_v5 = vld [vmem:[%s4329_s0 + $0xc0] sm:$0xff]   ;;  %v109_v24 = vunpack.c.h.bf16 %v44_v13  ;;  %v221_v25 = vunpack.c.l.bf16 %v189_v17 }
  0xe7   :  { %v2306_v31 = vpop.f32.mrf.mxu3  ;;  %v3245_v48 = vunpack.c.l.bf16 %v3301_v5  ;;  %v3246_v49 = vunpack.c.h.bf16 %v3301_v5  ;;  %v3135_v5 = vld [vmem:[%s4329_s0 + $0xd8] sm:$0xff] }
  0xe8   :  { %v2450_v32 = vadd.f32 %v2306_v31, %v1572_v26  ;;  %v732_v35 = vpop.f32.mrf.mxu0  ;;  %v3249_v26 = vunpack.c.l.bf16 %v3755_v18  ;;  %v414_v31 = vrot.slane %v108_v23, 1 }
  0xe9   :  { %v1001_v38 = vadd.f32 %v1000_v27, %v732_v35  ;;  %v1431_v39 = vpop.f32.mrf.mxu2  ;;  %v1988_v57 = vrot.slane %v3245_v48, 1  ;;  %v1989_v58 = vrot.slane %v3246_v49, 1  ;;  %v3250_v27 = vunpack.c.h.bf16 %v3755_v18 }
  0xea   :  { %v2514_v37 = vmax.f32 %v2450_v32, 0.0  ;;  %v415_v32 = vrot.slane %v109_v24, 1  ;;  %v1993_v35 = vrot.slane %v3249_v26, 1  ;;  %v48_v26 = vld [vmem:[%s4329_s0 + $0xe4] sm:$0xff]  }
  0xeb   :  { %2715 = vmatmul.msk.bf16.gmra.mxu0 %vm592_vm1, %v572_v33  ;;  %v1573_v43 = vadd.f32 %v1431_v39, %v1001_v38  ;;  %v1002_v44 = vpop.f32.mrf.mxu1  ;;  %v1990_v6 = vsel %vm333_vm2, %v1988_v57, %v1989_v58  ;;  %v1992_v7 = vsel %vm333_vm2, %v1989_v58, %v1991_v59  ;;  %v3041_v57 = vld [vmem:[%s4329_s0 + $0xe4] sm:$0xff]   ;;  %v3043_v58 = vld [vmem:[%s4329_s0 + $0xec] sm:$0x1] }
  0xec   :  { %v2578_v42 = vpack.c.bf16 %v2514_v37, %v2514_v37  ;;  %3101 = vmatmul.msk.bf16.gmra.mxu3 %vm592_vm1, %v2151_v34  ;;  %v2152_v11 = vpack.c.bf16 %v1992_v7, %v1990_v6  ;;  %v417_v34 = vrot.slane %v221_v25, 1  ;;  %v1996_v37 = vrot.slane %v1771_v28, 1 }
  0xee   :  { %2643 = vst.msk [vmem:[%s4330_s2 + $0x2c] sm:$0xf] %vm2631_vm3, %v2578_v42  ;;  %v418_v45 = vsel %vm333_vm2, %v415_v32, %v417_v34 }
  0xef   :  { %v2309_v51 = vpop.f32.mrf.mxu3 }
  0xf0   :  { %v2451_v52 = vadd.f32 %v2309_v51, %v1573_v43  ;;  %v734_v55 = vpop.f32.mrf.mxu0 }
  0xf1   :  { %v1003_v61 = vadd.f32 %v1002_v44, %v734_v55  ;;  %v1433_v62 = vpop.f32.mrf.mxu2  ;;  %v416_v44 = vsel %vm333_vm2, %v414_v31, %v415_v32  ;;  %v3046_v31 = vld [vmem:[%s4329_s0 + $0xf8] sm:$0x1] }
  0xf2   :  { %v2515_v60 = vmax.f32 %v2451_v52, 0.0  ;;  %v574_v50 = vpack.c.bf16 %v418_v45, %v416_v44 }
  0xf3   :  { %v1574_v1 = vadd.f32 %v1433_v62, %v1003_v61  ;;  %v1005_v2 = vpop.f32.mrf.mxu1  ;;  %v222_v62 = vunpack.c.l.bf16 %v190_v56 }
  0xf4   :  { %v2579_v0 = vpack.c.bf16 %v2515_v60, %v2515_v60 }
  0xf5   :  { %v422_v6 = vrot.slane %v222_v62, 1 }
  0xf6   :  { %2644 = vst.msk [vmem:[%s4330_s2 + $0x30] sm:$0xf] %vm2631_vm3, %v2579_v0  ;;  %2748 = vmatmul.msk.bf16.gmra.mxu1 %vm592_vm1, %v42_v36  ;;  %2973 = vmatmul.msk.bf16.gmra.mxu2 %vm592_vm1, %v3134_v63  ;;  %v1994_v36 = vrot.slane %v3250_v27, 1  ;;  %v1772_v63 = vunpack.c.l.bf16 %v3041_v57  ;;  %v1773_v0 = vunpack.c.h.bf16 %v3041_v57 }
  0xf7   :  { %v2311_v8 = vpop.f32.mrf.mxu3 }
  0xf8   :  { %v2452_v9 = vadd.f32 %v2311_v8, %v1574_v1  ;;  %v737_v12 = vpop.f32.mrf.mxu0  ;;  %v1995_v46 = vsel %vm333_vm2, %v1993_v35, %v1994_v36  ;;  %v1997_v47 = vsel %vm333_vm2, %v1994_v36, %v1996_v37  ;;  %v1774_v1 = vunpack.c.l.bf16 %v3043_v58 }
  0xf9   :  { %v1006_v15 = vadd.f32 %v1005_v2, %v737_v12  ;;  %v1436_v16 = vpop.f32.mrf.mxu2  ;;  %v2153_v51 = vpack.c.bf16 %v1997_v47, %v1995_v46  ;;  %v1998_v7 = vrot.slane %v1772_v63, 1  ;;  %v1999_v8 = vrot.slane %v1773_v0, 1 }
  0xfa   :  { %v2516_v14 = vmax.f32 %v2452_v9, 0.0  ;;  %v2001_v9 = vrot.slane %v1774_v1, 1  ;;  %v423_v17 = vsel %vm333_vm2, %v1994_v36, %v422_v6  ;;  %v112_v35 = vunpack.c.l.bf16 %v48_v26  ;;  %v3047_v6 = vld [vmem:[%s4329_s0 + $0xfc] sm:$0xff]  }
  0xfb   :  { %2716 = vmatmul.msk.bf16.gmra.mxu0 %vm592_vm1, %v573_v10  ;;  %v1575_v21 = vadd.f32 %v1436_v16, %v1006_v15  ;;  %v1007_v22 = vpop.f32.mrf.mxu1  ;;  %v2000_v19 = vsel %vm333_vm2, %v1998_v7, %v1999_v8  ;;  %v575_v23 = vpack.c.bf16 %v423_v17, %v1995_v46  ;;  %v113_v36 = vunpack.c.h.bf16 %v48_v26  ;;  %v3049_v7 = vld [vmem:[%s4329_s0 + $0x104] sm:$0x1] }
  0xfc   :  { %v2580_v20 = vpack.c.bf16 %v2516_v14, %v2516_v14  ;;  %3102 = vmatmul.msk.bf16.gmra.mxu3 %vm592_vm1, %v2152_v11 }
  0xfe   :  { %2645 = vst.msk [vmem:[%s4330_s2 + $0x34] sm:$0xf] %vm2631_vm3, %v2580_v20  ;;  %v2002_v20 = vsel %vm333_vm2, %v1999_v8, %v2001_v9 }
  0xff   :  { %v2314_v29 = vpop.f32.mrf.mxu3  ;;  %v2154_v24 = vpack.c.bf16 %v2002_v20, %v2000_v19 }
 0x100   :  { %v2453_v30 = vadd.f32 %v2314_v29, %v1575_v21  ;;  %v739_v33 = vpop.f32.mrf.mxu0 }
 0x101   :  { %v1008_v39 = vadd.f32 %v1007_v22, %v739_v33  ;;  %v1438_v40 = vpop.f32.mrf.mxu2 }
 0x102   :  { %v2517_v38 = vmax.f32 %v2453_v30, 0.0  ;;  %v191_v30 = vld [vmem:[%s4329_s0 + $0xec] sm:$0x1] }
 0x103   :  { %v1576_v42 = vadd.f32 %v1438_v40, %v1008_v39  ;;  %v1010_v43 = vpop.f32.mrf.mxu1  ;;  %v223_v37 = vunpack.c.l.bf16 %v191_v30  ;;  %v1777_v40 = vunpack.c.l.bf16 %v3046_v31 }
 0x104   :  { %v2581_v41 = vpack.c.bf16 %v2517_v38, %v2517_v38 }
 0x105   :  { %v427_v45 = vrot.slane %v223_v37, 1 }
 0x106   :  { %2646 = vst.msk [vmem:[%s4330_s2 + $0x38] sm:$0xf] %vm2631_vm3, %v2581_v41  ;;  %2749 = vmatmul.msk.bf16.gmra.mxu1 %vm592_vm1, %v44_v13  ;;  %2974 = vmatmul.msk.bf16.gmra.mxu2 %vm592_vm1, %v3135_v5  ;;  %v3136_v13 = vld [vmem:[%s4329_s0 + $0xe4] sm:$0xff] }
 0x107   :  { %v2316_v48 = vpop.f32.mrf.mxu3 }
 0x108   :  { %v2454_v49 = vadd.f32 %v2316_v48, %v1576_v42  ;;  %v742_v52 = vpop.f32.mrf.mxu0  ;;  %v424_v42 = vrot.slane %v112_v35, 1  ;;  %v2006_v48 = vrot.slane %v1777_v40, 1 }
 0x109   :  { %v1011_v54 = vadd.f32 %v1010_v43, %v742_v52  ;;  %v1441_v55 = vpop.f32.mrf.mxu2  ;;  %v425_v43 = vrot.slane %v113_v36, 1  ;;  %v3137_v52 = vld [vmem:[%s4329_s0 + $0xf0] sm:$0xff] }
 0x10a   :  { %v2518_v53 = vmax.f32 %v2454_v49, 0.0 }
 0x10b   :  { %2717 = vmatmul.msk.bf16.gmra.mxu0 %vm592_vm1, %v574_v50  ;;  %v1577_v60 = vadd.f32 %v1441_v55, %v1011_v54  ;;  %v1012_v61 = vpop.f32.mrf.mxu1  ;;  %v426_v56 = vsel %vm333_vm2, %v424_v42, %v425_v43  ;;  %v428_v57 = vsel %vm333_vm2, %v425_v43, %v427_v45  ;;  %v3052_v42 = vld [vmem:[%s4329_s0 + $0x110] sm:$0x1] }
 0x10c   :  { %v2582_v59 = vpack.c.bf16 %v2518_v53, %v2518_v53  ;;  %3103 = vmatmul.msk.bf16.gmra.mxu3 %vm592_vm1, %v2153_v51  ;;  %v576_v62 = vpack.c.bf16 %v428_v57, %v426_v56 }
 0x10e   :  { %2647 = vst.msk [vmem:[%s4330_s2 + $0x3c] sm:$0xf] %vm2631_vm3, %v2582_v59 }
 0x10f   :  { %v2319_v2 = vpop.f32.mrf.mxu3 }
 0x110   :  { %v2455_v3 = vadd.f32 %v2319_v2, %v1577_v60  ;;  %v744_v4 = vpop.f32.mrf.mxu0 }
 0x111   :  { %v1013_v11 = vadd.f32 %v1012_v61, %v744_v4  ;;  %v1443_v12 = vpop.f32.mrf.mxu2  ;;  %v192_v4 = vld [vmem:[%s4329_s0 + $0xf8] sm:$0x1] }
 0x112   :  { %v2519_v10 = vmax.f32 %v2455_v3, 0.0 }
 0x113   :  { %v1578_v15 = vadd.f32 %v1443_v12, %v1013_v11  ;;  %v1015_v16 = vpop.f32.mrf.mxu1  ;;  %v224_v11 = vunpack.c.l.bf16 %v192_v4  ;;  %v1778_v12 = vunpack.c.l.bf16 %v3047_v6 }
 0x114   :  { %v2583_v14 = vpack.c.bf16 %v2519_v10, %v2519_v10 }
 0x115   :  { %v432_v19 = vrot.slane %v224_v11, 1  ;;  %v2008_v20 = vrot.slane %v1778_v12, 1 }
 0x116   :  { %2648 = vst.msk [vmem:[%s4330_s2 + $0x40] sm:$0xf] %vm2631_vm3, %v2583_v14  ;;  %2750 = vmatmul.msk.bf16.gmra.mxu1 %vm592_vm1, %v3755_v18  ;;  %2975 = vmatmul.msk.bf16.gmra.mxu2 %vm592_vm1, %v3136_v13  ;;  %v3818_v18 = vld [vmem:[%s4329_s0 + $0xf0] sm:$0xff]   ;;  %v1779_v13 = vunpack.c.h.bf16 %v3047_v6  ;;  %v1780_v14 = vunpack.c.l.bf16 %v3049_v7 }
 0x117   :  { %v2321_v21 = vpop.f32.mrf.mxu3  ;;  %v3253_v38 = vunpack.c.l.bf16 %v3818_v18  ;;  %v3254_v39 = vunpack.c.h.bf16 %v3818_v18 }
 0x118   :  { %v2456_v22 = vadd.f32 %v2321_v21, %v1578_v15  ;;  %v747_v25 = vpop.f32.mrf.mxu0  ;;  %v2009_v21 = vrot.slane %v1779_v13, 1 }
 0x119   :  { %v1016_v28 = vadd.f32 %v1015_v16, %v747_v25  ;;  %v1446_v29 = vpop.f32.mrf.mxu2  ;;  %v2003_v46 = vrot.slane %v3253_v38, 1  ;;  %v2004_v47 = vrot.slane %v3254_v39, 1  ;;  %v52_v38 = vld [vmem:[%s4329_s0 + $0xfc] sm:$0xff]  }
 0x11a   :  { %v2520_v27 = vmax.f32 %v2456_v22, 0.0  ;;  %v2011_v22 = vrot.slane %v1780_v14, 1  ;;  %v2010_v31 = vsel %vm333_vm2, %v2008_v20, %v2009_v21  ;;  %v3055_v20 = vld [vmem:[%s4329_s0 + $0x11c] sm:$0x1] }
 0x11b   :  { %2718 = vmatmul.msk.bf16.gmra.mxu0 %vm592_vm1, %v575_v23  ;;  %v1579_v33 = vadd.f32 %v1446_v29, %v1016_v28  ;;  %v1017_v34 = vpop.f32.mrf.mxu1  ;;  %v2005_v58 = vsel %vm333_vm2, %v2003_v46, %v2004_v47  ;;  %v2007_v59 = vsel %vm333_vm2, %v2004_v47, %v2006_v48  ;;  %v433_v30 = vsel %vm333_vm2, %v2004_v47, %v432_v19  ;;  %v3053_v19 = vld [vmem:[%s4329_s0 + $0x114] sm:$0xff]  }
 0x11c   :  { %v2584_v32 = vpack.c.bf16 %v2520_v27, %v2520_v27  ;;  %3104 = vmatmul.msk.bf16.gmra.mxu3 %vm592_vm1, %v2154_v24  ;;  %v2155_v63 = vpack.c.bf16 %v2007_v59, %v2005_v58  ;;  %v577_v35 = vpack.c.bf16 %v433_v30, %v2005_v58  ;;  %v116_v46 = vunpack.c.l.bf16 %v52_v38 }
 0x11d   :  { %v117_v47 = vunpack.c.h.bf16 %v52_v38 }
 0x11e   :  { %2649 = vst.msk [vmem:[%s4330_s2 + $0x44] sm:$0xf] %vm2631_vm3, %v2584_v32  ;;  %v2012_v32 = vsel %vm333_vm2, %v2009_v21, %v2011_v22 }
 0x11f   :  { %v2324_v5 = vpop.f32.mrf.mxu3  ;;  %v2156_v36 = vpack.c.bf16 %v2012_v32, %v2010_v31 }
 0x120   :  { %v2457_v41 = vadd.f32 %v2324_v5, %v1579_v33  ;;  %v749_v44 = vpop.f32.mrf.mxu0 }
 0x121   :  { %v1018_v50 = vadd.f32 %v1017_v34, %v749_v44  ;;  %v1448_v51 = vpop.f32.mrf.mxu2 }
 0x122   :  { %v2521_v49 = vmax.f32 %v2457_v41, 0.0  ;;  %v193_v41 = vld [vmem:[%s4329_s0 + $0x104] sm:$0x1] }
 0x123   :  { %v1580_v54 = vadd.f32 %v1448_v51, %v1018_v50  ;;  %v1020_v55 = vpop.f32.mrf.mxu1  ;;  %v225_v48 = vunpack.c.l.bf16 %v193_v41  ;;  %v1783_v51 = vunpack.c.l.bf16 %v3052_v42 }
 0x124   :  { %v2585_v53 = vpack.c.bf16 %v2521_v49, %v2521_v49 }
 0x125   :  { %v437_v57 = vrot.slane %v225_v48, 1 }
 0x126   :  { %2650 = vst.msk [vmem:[%s4330_s2 + $0x48] sm:$0xf] %vm2631_vm3, %v2585_v53  ;;  %2751 = vmatmul.msk.bf16.gmra.mxu1 %vm592_vm1, %v48_v26  ;;  %2976 = vmatmul.msk.bf16.gmra.mxu2 %vm592_vm1, %v3137_v52  ;;  %v3138_v26 = vld [vmem:[%s4329_s0 + $0xfc] sm:$0xff] }
 0x127   :  { %v2326_v60 = vpop.f32.mrf.mxu3 }
 0x128   :  { %v2458_v61 = vadd.f32 %v2326_v60, %v1580_v54  ;;  %v752_v0 = vpop.f32.mrf.mxu0  ;;  %v434_v54 = vrot.slane %v116_v46, 1  ;;  %v2016_v60 = vrot.slane %v1783_v51, 1 }
 0x129   :  { %v1021_v2 = vadd.f32 %v1020_v55, %v752_v0  ;;  %v1451_v3 = vpop.f32.mrf.mxu2  ;;  %v435_v55 = vrot.slane %v117_v47, 1  ;;  %v3139_v0 = vld [vmem:[%s4329_s0 + $0x108] sm:$0xff] }
 0x12a   :  { %v2522_v1 = vmax.f32 %v2458_v61, 0.0 }
 0x12b   :  { %2719 = vmatmul.msk.bf16.gmra.mxu0 %vm592_vm1, %v576_v62  ;;  %v1581_v9 = vadd.f32 %v1451_v3, %v1021_v2  ;;  %v1022_v10 = vpop.f32.mrf.mxu1  ;;  %v436_v4 = vsel %vm333_vm2, %v434_v54, %v435_v55  ;;  %v438_v6 = vsel %vm333_vm2, %v435_v55, %v437_v57  ;;  %v3058_v54 = vld [vmem:[%s4329_s0 + $0x128] sm:$0x1] }
 0x12c   :  { %v2586_v8 = vpack.c.bf16 %v2522_v1, %v2522_v1  ;;  %3105 = vmatmul.msk.bf16.gmra.mxu3 %vm592_vm1, %v2155_v63  ;;  %v578_v11 = vpack.c.bf16 %v438_v6, %v436_v4 }
 0x12e   :  { %2651 = vst.msk [vmem:[%s4330_s2 + $0x4c] sm:$0xf] %vm2631_vm3, %v2586_v8 }
 0x12f   :  { %v2329_v15 = vpop.f32.mrf.mxu3 }
 0x130   :  { %v2459_v16 = vadd.f32 %v2329_v15, %v1581_v9  ;;  %v754_v17 = vpop.f32.mrf.mxu0 }
 0x131   :  { %v1023_v24 = vadd.f32 %v1022_v10, %v754_v17  ;;  %v1453_v25 = vpop.f32.mrf.mxu2  ;;  %v194_v17 = vld [vmem:[%s4329_s0 + $0x110] sm:$0x1] }
 0x132   :  { %v2523_v23 = vmax.f32 %v2459_v16, 0.0 }
 0x133   :  { %v1582_v28 = vadd.f32 %v1453_v25, %v1023_v24  ;;  %v1025_v29 = vpop.f32.mrf.mxu1  ;;  %v226_v24 = vunpack.c.l.bf16 %v194_v17  ;;  %v1784_v25 = vunpack.c.l.bf16 %v3053_v19 }
 0x134   :  { %v2587_v27 = vpack.c.bf16 %v2523_v23, %v2523_v23 }
 0x135   :  { %v442_v31 = vrot.slane %v226_v24, 1  ;;  %v2018_v32 = vrot.slane %v1784_v25, 1 }
 0x136   :  { %2652 = vst.msk [vmem:[%s4330_s2 + $0x50] sm:$0xf] %vm2631_vm3, %v2587_v27  ;;  %2752 = vmatmul.msk.bf16.gmra.mxu1 %vm592_vm1, %v3818_v18  ;;  %2977 = vmatmul.msk.bf16.gmra.mxu2 %vm592_vm1, %v3138_v26  ;;  %v3881_v18 = vld [vmem:[%s4329_s0 + $0x108] sm:$0xff]   ;;  %v1785_v26 = vunpack.c.h.bf16 %v3053_v19  ;;  %v1786_v27 = vunpack.c.l.bf16 %v3055_v20 }
 0x137   :  { %v2331_v33 = vpop.f32.mrf.mxu3  ;;  %v3257_v49 = vunpack.c.l.bf16 %v3881_v18  ;;  %v3258_v50 = vunpack.c.h.bf16 %v3881_v18 }
 0x138   :  { %v2460_v34 = vadd.f32 %v2331_v33, %v1582_v28  ;;  %v757_v37 = vpop.f32.mrf.mxu0  ;;  %v2019_v33 = vrot.slane %v1785_v26, 1 }
 0x139   :  { %v1026_v40 = vadd.f32 %v1025_v29, %v757_v37  ;;  %v1456_v5 = vpop.f32.mrf.mxu2  ;;  %v2013_v58 = vrot.slane %v3257_v49, 1  ;;  %v2014_v59 = vrot.slane %v3258_v50, 1  ;;  %v56_v49 = vld [vmem:[%s4329_s0 + $0x114] sm:$0xff]  }
 0x13a   :  { %v2524_v39 = vmax.f32 %v2460_v34, 0.0  ;;  %v2021_v34 = vrot.slane %v1786_v27, 1  ;;  %v2020_v42 = vsel %vm333_vm2, %v2018_v32, %v2019_v33  ;;  %v3061_v32 = vld [vmem:[%s4329_s0 + $0x134] sm:$0x1] }
 0x13b   :  { %2720 = vmatmul.msk.bf16.gmra.mxu0 %vm592_vm1, %v577_v35  ;;  %v1583_v44 = vadd.f32 %v1456_v5, %v1026_v40  ;;  %v1027_v45 = vpop.f32.mrf.mxu1  ;;  %v2015_v7 = vsel %vm333_vm2, %v2013_v58, %v2014_v59  ;;  %v2017_v8 = vsel %vm333_vm2, %v2014_v59, %v2016_v60  ;;  %v443_v41 = vsel %vm333_vm2, %v2014_v59, %v442_v31  ;;  %v3059_v31 = vld [vmem:[%s4329_s0 + $0x12c] sm:$0xff]  }
 0x13c   :  { %v2588_v43 = vpack.c.bf16 %v2524_v39, %v2524_v39  ;;  %3106 = vmatmul.msk.bf16.gmra.mxu3 %vm592_vm1, %v2156_v36  ;;  %v2157_v12 = vpack.c.bf16 %v2017_v8, %v2015_v7  ;;  %v579_v46 = vpack.c.bf16 %v443_v41, %v2015_v7  ;;  %v120_v58 = vunpack.c.l.bf16 %v56_v49 }
 0x13d   :  { %v121_v59 = vunpack.c.h.bf16 %v56_v49 }
 0x13e   :  { %2653 = vst.msk [vmem:[%s4330_s2 + $0x54] sm:$0xf] %vm2631_vm3, %v2588_v43  ;;  %v2022_v43 = vsel %vm333_vm2, %v2019_v33, %v2021_v34 }
 0x13f   :  { %v2334_v52 = vpop.f32.mrf.mxu3  ;;  %v2158_v47 = vpack.c.bf16 %v2022_v43, %v2020_v42 }
 0x140   :  { %v2461_v53 = vadd.f32 %v2334_v52, %v1583_v44  ;;  %v759_v56 = vpop.f32.mrf.mxu0 }
 0x141   :  { %v1028_v62 = vadd.f32 %v1027_v45, %v759_v56  ;;  %v1458_v63 = vpop.f32.mrf.mxu2 }
 0x142   :  { %v2525_v61 = vmax.f32 %v2461_v53, 0.0  ;;  %v195_v53 = vld [vmem:[%s4329_s0 + $0x11c] sm:$0x1] }
 0x143   :  { %v1584_v2 = vadd.f32 %v1458_v63, %v1028_v62  ;;  %v1030_v3 = vpop.f32.mrf.mxu1  ;;  %v227_v60 = vunpack.c.l.bf16 %v195_v53  ;;  %v1789_v63 = vunpack.c.l.bf16 %v3058_v54 }
 0x144   :  { %v2589_v1 = vpack.c.bf16 %v2525_v61, %v2525_v61 }
 0x145   :  { %v447_v6 = vrot.slane %v227_v60, 1 }
 0x146   :  { %2654 = vst.msk [vmem:[%s4330_s2 + $0x58] sm:$0xf] %vm2631_vm3, %v2589_v1  ;;  %2753 = vmatmul.msk.bf16.gmra.mxu1 %vm592_vm1, %v52_v38  ;;  %2978 = vmatmul.msk.bf16.gmra.mxu2 %vm592_vm1, %v3139_v0  ;;  %v3140_v38 = vld [vmem:[%s4329_s0 + $0x114] sm:$0xff] }
 0x147   :  { %v2336_v9 = vpop.f32.mrf.mxu3 }
 0x148   :  { %v2462_v10 = vadd.f32 %v2336_v9, %v1584_v2  ;;  %v762_v13 = vpop.f32.mrf.mxu0  ;;  %v444_v2 = vrot.slane %v120_v58, 1  ;;  %v2026_v9 = vrot.slane %v1789_v63, 1 }
 0x149   :  { %v1031_v15 = vadd.f32 %v1030_v3, %v762_v13  ;;  %v1461_v16 = vpop.f32.mrf.mxu2  ;;  %v445_v3 = vrot.slane %v121_v59, 1  ;;  %v3141_v13 = vld [vmem:[%s4329_s0 + $0x120] sm:$0xff] }
 0x14a   :  { %v2526_v14 = vmax.f32 %v2462_v10, 0.0 }
 0x14b   :  { %2721 = vmatmul.msk.bf16.gmra.mxu0 %vm592_vm1, %v578_v11  ;;  %v1585_v22 = vadd.f32 %v1461_v16, %v1031_v15  ;;  %v1032_v23 = vpop.f32.mrf.mxu1  ;;  %v446_v17 = vsel %vm333_vm2, %v444_v2, %v445_v3  ;;  %v448_v19 = vsel %vm333_vm2, %v445_v3, %v447_v6  ;;  %v3064_v2 = vld [vmem:[%s4329_s0 + $0x140] sm:$0x1] }
 0x14c   :  { %v2590_v21 = vpack.c.bf16 %v2526_v14, %v2526_v14  ;;  %3107 = vmatmul.msk.bf16.gmra.mxu3 %vm592_vm1, %v2157_v12  ;;  %v580_v24 = vpack.c.bf16 %v448_v19, %v446_v17 }
 0x14e   :  { %2655 = vst.msk [vmem:[%s4330_s2 + $0x5c] sm:$0xf] %vm2631_vm3, %v2590_v21 }
 0x14f   :  { %v2339_v28 = vpop.f32.mrf.mxu3 }
 0x150   :  { %v2463_v29 = vadd.f32 %v2339_v28, %v1585_v22  ;;  %v764_v30 = vpop.f32.mrf.mxu0 }
 0x151   :  { %v1033_v36 = vadd.f32 %v1032_v23, %v764_v30  ;;  %v1463_v37 = vpop.f32.mrf.mxu2  ;;  %v196_v30 = vld [vmem:[%s4329_s0 + $0x128] sm:$0x1] }
 0x152   :  { %v2527_v35 = vmax.f32 %v2463_v29, 0.0 }
 0x153   :  { %v1586_v40 = vadd.f32 %v1463_v37, %v1033_v36  ;;  %v1035_v5 = vpop.f32.mrf.mxu1  ;;  %v228_v36 = vunpack.c.l.bf16 %v196_v30  ;;  %v1790_v37 = vunpack.c.l.bf16 %v3059_v31 }
 0x154   :  { %v2591_v39 = vpack.c.bf16 %v2527_v35, %v2527_v35 }
 0x155   :  { %v452_v42 = vrot.slane %v228_v36, 1  ;;  %v2028_v43 = vrot.slane %v1790_v37, 1 }
 0x156   :  { %2656 = vst.msk [vmem:[%s4330_s2 + $0x60] sm:$0xf] %vm2631_vm3, %v2591_v39  ;;  %2754 = vmatmul.msk.bf16.gmra.mxu1 %vm592_vm1, %v3881_v18  ;;  %2979 = vmatmul.msk.bf16.gmra.mxu2 %vm592_vm1, %v3140_v38  ;;  %v3944_v18 = vld [vmem:[%s4329_s0 + $0x120] sm:$0xff]   ;;  %v1791_v38 = vunpack.c.h.bf16 %v3059_v31  ;;  %v1792_v39 = vunpack.c.l.bf16 %v3061_v32 }
 0x157   :  { %v2341_v44 = vpop.f32.mrf.mxu3  ;;  %v3261_v61 = vunpack.c.l.bf16 %v3944_v18  ;;  %v3262_v62 = vunpack.c.h.bf16 %v3944_v18 }
 0x158   :  { %v2464_v45 = vadd.f32 %v2341_v44, %v1586_v40  ;;  %v767_v48 = vpop.f32.mrf.mxu0  ;;  %v2029_v44 = vrot.slane %v1791_v38, 1 }
 0x159   :  { %v1036_v51 = vadd.f32 %v1035_v5, %v767_v48  ;;  %v1466_v52 = vpop.f32.mrf.mxu2  ;;  %v2023_v7 = vrot.slane %v3261_v61, 1  ;;  %v2024_v8 = vrot.slane %v3262_v62, 1  ;;  %v60_v61 = vld [vmem:[%s4329_s0 + $0x12c] sm:$0xff]  }
 0x15a   :  { %v2528_v50 = vmax.f32 %v2464_v45, 0.0  ;;  %v2031_v45 = vrot.slane %v1792_v39, 1  ;;  %v2030_v54 = vsel %vm333_vm2, %v2028_v43, %v2029_v44  ;;  %v3067_v43 = vld [vmem:[%s4329_s0 + $0x14c] sm:$0x1] }
 0x15b   :  { %2722 = vmatmul.msk.bf16.gmra.mxu0 %vm592_vm1, %v579_v46  ;;  %v1587_v56 = vadd.f32 %v1466_v52, %v1036_v51  ;;  %v1037_v57 = vpop.f32.mrf.mxu1  ;;  %v2025_v20 = vsel %vm333_vm2, %v2023_v7, %v2024_v8  ;;  %v2027_v21 = vsel %vm333_vm2, %v2024_v8, %v2026_v9  ;;  %v453_v53 = vsel %vm333_vm2, %v2024_v8, %v452_v42  ;;  %v3065_v42 = vld [vmem:[%s4329_s0 + $0x144] sm:$0xff]  }
 0x15c   :  { %v2592_v55 = vpack.c.bf16 %v2528_v50, %v2528_v50  ;;  %3108 = vmatmul.msk.bf16.gmra.mxu3 %vm592_vm1, %v2158_v47  ;;  %v2159_v25 = vpack.c.bf16 %v2027_v21, %v2025_v20  ;;  %v581_v58 = vpack.c.bf16 %v453_v53, %v2025_v20  ;;  %v124_v7 = vunpack.c.l.bf16 %v60_v61 }
 0x15d   :  { %v125_v8 = vunpack.c.h.bf16 %v60_v61 }
 0x15e   :  { %2657 = vst.msk [vmem:[%s4330_s2 + $0x64] sm:$0xf] %vm2631_vm3, %v2592_v55  ;;  %v2032_v55 = vsel %vm333_vm2, %v2029_v44, %v2031_v45 }
 0x15f   :  { %v2344_v0 = vpop.f32.mrf.mxu3  ;;  %v2160_v59 = vpack.c.bf16 %v2032_v55, %v2030_v54 }
 0x160   :  { %v2465_v1 = vadd.f32 %v2344_v0, %v1587_v56  ;;  %v769_v4 = vpop.f32.mrf.mxu0 }
 0x161   :  { %v1038_v11 = vadd.f32 %v1037_v57, %v769_v4  ;;  %v1468_v12 = vpop.f32.mrf.mxu2 }
 0x162   :  { %v2529_v10 = vmax.f32 %v2465_v1, 0.0  ;;  %v197_v1 = vld [vmem:[%s4329_s0 + $0x134] sm:$0x1] }
 0x163   :  { %v1588_v15 = vadd.f32 %v1468_v12, %v1038_v11  ;;  %v1040_v16 = vpop.f32.mrf.mxu1  ;;  %v229_v9 = vunpack.c.l.bf16 %v197_v1  ;;  %v1795_v12 = vunpack.c.l.bf16 %v3064_v2 }
 0x164   :  { %v2593_v14 = vpack.c.bf16 %v2529_v10, %v2529_v10 }
 0x165   :  { %v457_v19 = vrot.slane %v229_v9, 1 }
 0x166   :  { %2658 = vst.msk [vmem:[%s4330_s2 + $0x68] sm:$0xf] %vm2631_vm3, %v2593_v14  ;;  %2755 = vmatmul.msk.bf16.gmra.mxu1 %vm592_vm1, %v56_v49  ;;  %2980 = vmatmul.msk.bf16.gmra.mxu2 %vm592_vm1, %v3141_v13  ;;  %v3142_v49 = vld [vmem:[%s4329_s0 + $0x12c] sm:$0xff] }
 0x167   :  { %v2346_v22 = vpop.f32.mrf.mxu3 }
 0x168   :  { %v2466_v23 = vadd.f32 %v2346_v22, %v1588_v15  ;;  %v772_v26 = vpop.f32.mrf.mxu0  ;;  %v454_v15 = vrot.slane %v124_v7, 1  ;;  %v2036_v22 = vrot.slane %v1795_v12, 1 }
 0x169   :  { %v1041_v28 = vadd.f32 %v1040_v16, %v772_v26  ;;  %v1471_v29 = vpop.f32.mrf.mxu2  ;;  %v455_v16 = vrot.slane %v125_v8, 1  ;;  %v3143_v26 = vld [vmem:[%s4329_s0 + $0x138] sm:$0xff] }
 0x16a   :  { %v2530_v27 = vmax.f32 %v2466_v23, 0.0 }
 0x16b   :  { %2723 = vmatmul.msk.bf16.gmra.mxu0 %vm592_vm1, %v580_v24  ;;  %v1589_v34 = vadd.f32 %v1471_v29, %v1041_v28  ;;  %v1042_v35 = vpop.f32.mrf.mxu1  ;;  %v456_v30 = vsel %vm333_vm2, %v454_v15, %v455_v16  ;;  %v458_v31 = vsel %vm333_vm2, %v455_v16, %v457_v19  ;;  %v3070_v15 = vld [vmem:[%s4329_s0 + $0x158] sm:$0x1] }
 0x16c   :  { %v2594_v33 = vpack.c.bf16 %v2530_v27, %v2530_v27  ;;  %3109 = vmatmul.msk.bf16.gmra.mxu3 %vm592_vm1, %v2159_v25  ;;  %v582_v36 = vpack.c.bf16 %v458_v31, %v456_v30 }
 0x16e   :  { %2659 = vst.msk [vmem:[%s4330_s2 + $0x6c] sm:$0xf] %vm2631_vm3, %v2594_v33 }
 0x16f   :  { %v2349_v40 = vpop.f32.mrf.mxu3 }
 0x170   :  { %v2467_v5 = vadd.f32 %v2349_v40, %v1589_v34  ;;  %v774_v41 = vpop.f32.mrf.mxu0 }
 0x171   :  { %v1043_v47 = vadd.f32 %v1042_v35, %v774_v41  ;;  %v1473_v48 = vpop.f32.mrf.mxu2  ;;  %v198_v41 = vld [vmem:[%s4329_s0 + $0x140] sm:$0x1] }
 0x172   :  { %v2531_v46 = vmax.f32 %v2467_v5, 0.0 }
 0x173   :  { %v1590_v51 = vadd.f32 %v1473_v48, %v1043_v47  ;;  %v1045_v52 = vpop.f32.mrf.mxu1  ;;  %v230_v47 = vunpack.c.l.bf16 %v198_v41  ;;  %v1796_v48 = vunpack.c.l.bf16 %v3065_v42 }
 0x174   :  { %v2595_v50 = vpack.c.bf16 %v2531_v46, %v2531_v46 }
 0x175   :  { %v462_v54 = vrot.slane %v230_v47, 1  ;;  %v2038_v55 = vrot.slane %v1796_v48, 1 }
 0x176   :  { %2660 = vst.msk [vmem:[%s4330_s2 + $0x70] sm:$0xf] %vm2631_vm3, %v2595_v50  ;;  %2756 = vmatmul.msk.bf16.gmra.mxu1 %vm592_vm1, %v3944_v18  ;;  %2981 = vmatmul.msk.bf16.gmra.mxu2 %vm592_vm1, %v3142_v49  ;;  %v4007_v18 = vld [vmem:[%s4329_s0 + $0x138] sm:$0xff]   ;;  %v1797_v49 = vunpack.c.h.bf16 %v3065_v42  ;;  %v1798_v50 = vunpack.c.l.bf16 %v3067_v43 }
 0x177   :  { %v2351_v56 = vpop.f32.mrf.mxu3  ;;  %v3265_v10 = vunpack.c.l.bf16 %v4007_v18  ;;  %v3266_v11 = vunpack.c.h.bf16 %v4007_v18 }
 0x178   :  { %v2468_v57 = vadd.f32 %v2351_v56, %v1590_v51  ;;  %v777_v60 = vpop.f32.mrf.mxu0  ;;  %v2039_v56 = vrot.slane %v1797_v49, 1 }
 0x179   :  { %v1046_v63 = vadd.f32 %v1045_v52, %v777_v60  ;;  %v1476_v0 = vpop.f32.mrf.mxu2  ;;  %v2033_v20 = vrot.slane %v3265_v10, 1  ;;  %v2034_v21 = vrot.slane %v3266_v11, 1  ;;  %v64_v10 = vld [vmem:[%s4329_s0 + $0x144] sm:$0xff]  }
 0x17a   :  { %v2532_v62 = vmax.f32 %v2468_v57, 0.0  ;;  %v2041_v57 = vrot.slane %v1798_v50, 1  ;;  %v2040_v2 = vsel %vm333_vm2, %v2038_v55, %v2039_v56  ;;  %v3073_v55 = vld [vmem:[%s4329_s0 + $0x164] sm:$0x1] }
 0x17b   :  { %2724 = vmatmul.msk.bf16.gmra.mxu0 %vm592_vm1, %v581_v58  ;;  %v1591_v4 = vadd.f32 %v1476_v0, %v1046_v63  ;;  %v1047_v6 = vpop.f32.mrf.mxu1  ;;  %v2035_v32 = vsel %vm333_vm2, %v2033_v20, %v2034_v21  ;;  %v2037_v33 = vsel %vm333_vm2, %v2034_v21, %v2036_v22  ;;  %v463_v1 = vsel %vm333_vm2, %v2034_v21, %v462_v54  ;;  %v3071_v54 = vld [vmem:[%s4329_s0 + $0x15c] sm:$0xff]  }
 0x17c   :  { %v2596_v3 = vpack.c.bf16 %v2532_v62, %v2532_v62  ;;  %3110 = vmatmul.msk.bf16.gmra.mxu3 %vm592_vm1, %v2160_v59  ;;  %v2161_v37 = vpack.c.bf16 %v2037_v33, %v2035_v32  ;;  %v583_v7 = vpack.c.bf16 %v463_v1, %v2035_v32  ;;  %v128_v20 = vunpack.c.l.bf16 %v64_v10 }
 0x17d   :  { %v129_v21 = vunpack.c.h.bf16 %v64_v10 }
 0x17e   :  { %2661 = vst.msk [vmem:[%s4330_s2 + $0x74] sm:$0xf] %vm2631_vm3, %v2596_v3  ;;  %v2042_v3 = vsel %vm333_vm2, %v2039_v56, %v2041_v57 }
 0x17f   :  { %v2354_v13 = vpop.f32.mrf.mxu3  ;;  %v2162_v8 = vpack.c.bf16 %v2042_v3, %v2040_v2 }
 0x180   :  { %v2469_v14 = vadd.f32 %v2354_v13, %v1591_v4  ;;  %v779_v17 = vpop.f32.mrf.mxu0 }
 0x181   :  { %v1048_v24 = vadd.f32 %v1047_v6, %v779_v17  ;;  %v1478_v25 = vpop.f32.mrf.mxu2 }
 0x182   :  { %v2533_v23 = vmax.f32 %v2469_v14, 0.0  ;;  %v199_v14 = vld [vmem:[%s4329_s0 + $0x14c] sm:$0x1] }
 0x183   :  { %v1592_v28 = vadd.f32 %v1478_v25, %v1048_v24  ;;  %v1050_v29 = vpop.f32.mrf.mxu1  ;;  %v231_v22 = vunpack.c.l.bf16 %v199_v14  ;;  %v1801_v25 = vunpack.c.l.bf16 %v3070_v15 }
 0x184   :  { %v2597_v27 = vpack.c.bf16 %v2533_v23, %v2533_v23 }
 0x185   :  { %v467_v31 = vrot.slane %v231_v22, 1 }
 0x186   :  { %2662 = vst.msk [vmem:[%s4330_s2 + $0x78] sm:$0xf] %vm2631_vm3, %v2597_v27  ;;  %2757 = vmatmul.msk.bf16.gmra.mxu1 %vm592_vm1, %v60_v61  ;;  %2982 = vmatmul.msk.bf16.gmra.mxu2 %vm592_vm1, %v3143_v26  ;;  %v3144_v61 = vld [vmem:[%s4329_s0 + $0x144] sm:$0xff] }
 0x187   :  { %v2356_v34 = vpop.f32.mrf.mxu3 }
 0x188   :  { %v2470_v35 = vadd.f32 %v2356_v34, %v1592_v28  ;;  %v782_v38 = vpop.f32.mrf.mxu0  ;;  %v464_v28 = vrot.slane %v128_v20, 1  ;;  %v2046_v34 = vrot.slane %v1801_v25, 1 }
 0x189   :  { %v1051_v40 = vadd.f32 %v1050_v29, %v782_v38  ;;  %v1481_v5 = vpop.f32.mrf.mxu2  ;;  %v465_v29 = vrot.slane %v129_v21, 1  ;;  %v3145_v38 = vld [vmem:[%s4329_s0 + $0x150] sm:$0xff] }
 0x18a   :  { %v2534_v39 = vmax.f32 %v2470_v35, 0.0 }
 0x18b   :  { %2725 = vmatmul.msk.bf16.gmra.mxu0 %vm592_vm1, %v582_v36  ;;  %v1593_v45 = vadd.f32 %v1481_v5, %v1051_v40  ;;  %v1052_v46 = vpop.f32.mrf.mxu1  ;;  %v466_v41 = vsel %vm333_vm2, %v464_v28, %v465_v29  ;;  %v468_v42 = vsel %vm333_vm2, %v465_v29, %v467_v31  ;;  %v3076_v28 = vld [vmem:[%s4329_s0 + $0x170] sm:$0x1] }
 0x18c   :  { %v2598_v44 = vpack.c.bf16 %v2534_v39, %v2534_v39  ;;  %3111 = vmatmul.msk.bf16.gmra.mxu3 %vm592_vm1, %v2161_v37  ;;  %v584_v47 = vpack.c.bf16 %v468_v42, %v466_v41 }
 0x18e   :  { %2663 = vst.msk [vmem:[%s4330_s2 + $0x7c] sm:$0xf] %vm2631_vm3, %v2598_v44 }
 0x18f   :  { %v2359_v51 = vpop.f32.mrf.mxu3 }
 0x190   :  { %v2471_v52 = vadd.f32 %v2359_v51, %v1593_v45  ;;  %v784_v53 = vpop.f32.mrf.mxu0 }
 0x191   :  { %v1053_v59 = vadd.f32 %v1052_v46, %v784_v53  ;;  %v1483_v60 = vpop.f32.mrf.mxu2  ;;  %v200_v53 = vld [vmem:[%s4329_s0 + $0x158] sm:$0x1] }
 0x192   :  { %v2535_v58 = vmax.f32 %v2471_v52, 0.0 }
 0x193   :  { %v1594_v63 = vadd.f32 %v1483_v60, %v1053_v59  ;;  %v1055_v0 = vpop.f32.mrf.mxu1  ;;  %v232_v59 = vunpack.c.l.bf16 %v200_v53  ;;  %v1802_v60 = vunpack.c.l.bf16 %v3071_v54 }
 0x194   :  { %v2599_v62 = vpack.c.bf16 %v2535_v58, %v2535_v58 }
 0x195   :  { %v472_v2 = vrot.slane %v232_v59, 1  ;;  %v2048_v3 = vrot.slane %v1802_v60, 1 }
 0x196   :  { %2664 = vst.msk [vmem:[%s4330_s2 + $0x80] sm:$0xf] %vm2631_vm3, %v2599_v62  ;;  %2758 = vmatmul.msk.bf16.gmra.mxu1 %vm592_vm1, %v4007_v18  ;;  %2983 = vmatmul.msk.bf16.gmra.mxu2 %vm592_vm1, %v3144_v61  ;;  %v4070_v18 = vld [vmem:[%s4329_s0 + $0x150] sm:$0xff]   ;;  %v1803_v61 = vunpack.c.h.bf16 %v3071_v54  ;;  %v1804_v62 = vunpack.c.l.bf16 %v3073_v55 }
 0x197   :  { %v2361_v4 = vpop.f32.mrf.mxu3  ;;  %v3269_v23 = vunpack.c.l.bf16 %v4070_v18  ;;  %v3270_v24 = vunpack.c.h.bf16 %v4070_v18 }
 0x198   :  { %v2472_v6 = vadd.f32 %v2361_v4, %v1594_v63  ;;  %v787_v9 = vpop.f32.mrf.mxu0  ;;  %v2049_v4 = vrot.slane %v1803_v61, 1 }
 0x199   :  { %v1056_v12 = vadd.f32 %v1055_v0, %v787_v9  ;;  %v1486_v13 = vpop.f32.mrf.mxu2  ;;  %v2043_v32 = vrot.slane %v3269_v23, 1  ;;  %v2044_v33 = vrot.slane %v3270_v24, 1  ;;  %v68_v23 = vld [vmem:[%s4329_s0 + $0x15c] sm:$0xff]  }
 0x19a   :  { %v2536_v11 = vmax.f32 %v2472_v6, 0.0  ;;  %v2051_v6 = vrot.slane %v1804_v62, 1  ;;  %v2050_v15 = vsel %vm333_vm2, %v2048_v3, %v2049_v4  ;;  %v3079_v3 = vld [vmem:[%s4329_s0 + $0x17c] sm:$0x1] }
 0x19b   :  { %2726 = vmatmul.msk.bf16.gmra.mxu0 %vm592_vm1, %v583_v7  ;;  %v1595_v17 = vadd.f32 %v1486_v13, %v1056_v12  ;;  %v1057_v19 = vpop.f32.mrf.mxu1  ;;  %v2045_v43 = vsel %vm333_vm2, %v2043_v32, %v2044_v33  ;;  %v2047_v44 = vsel %vm333_vm2, %v2044_v33, %v2046_v34  ;;  %v473_v14 = vsel %vm333_vm2, %v2044_v33, %v472_v2  ;;  %v3077_v2 = vld [vmem:[%s4329_s0 + $0x174] sm:$0xff]  }
 0x19c   :  { %v2600_v16 = vpack.c.bf16 %v2536_v11, %v2536_v11  ;;  %3112 = vmatmul.msk.bf16.gmra.mxu3 %vm592_vm1, %v2162_v8  ;;  %v2163_v48 = vpack.c.bf16 %v2047_v44, %v2045_v43  ;;  %v585_v20 = vpack.c.bf16 %v473_v14, %v2045_v43  ;;  %v132_v32 = vunpack.c.l.bf16 %v68_v23 }
 0x19d   :  { %v133_v33 = vunpack.c.h.bf16 %v68_v23 }
 0x19e   :  { %2665 = vst.msk [vmem:[%s4330_s2 + $0x84] sm:$0xf] %vm2631_vm3, %v2600_v16  ;;  %v2052_v16 = vsel %vm333_vm2, %v2049_v4, %v2051_v6 }
 0x19f   :  { %v2364_v26 = vpop.f32.mrf.mxu3  ;;  %v2164_v21 = vpack.c.bf16 %v2052_v16, %v2050_v15 }
 0x1a0   :  { %v2473_v27 = vadd.f32 %v2364_v26, %v1595_v17  ;;  %v789_v30 = vpop.f32.mrf.mxu0 }
 0x1a1   :  { %v1058_v36 = vadd.f32 %v1057_v19, %v789_v30  ;;  %v1488_v37 = vpop.f32.mrf.mxu2 }
 0x1a2   :  { %v2537_v35 = vmax.f32 %v2473_v27, 0.0  ;;  %v201_v27 = vld [vmem:[%s4329_s0 + $0x164] sm:$0x1] }
 0x1a3   :  { %v1596_v40 = vadd.f32 %v1488_v37, %v1058_v36  ;;  %v1060_v5 = vpop.f32.mrf.mxu1  ;;  %v233_v34 = vunpack.c.l.bf16 %v201_v27  ;;  %v1807_v37 = vunpack.c.l.bf16 %v3076_v28 }
 0x1a4   :  { %v2601_v39 = vpack.c.bf16 %v2537_v35, %v2537_v35 }
 0x1a5   :  { %v477_v42 = vrot.slane %v233_v34, 1 }
 0x1a6   :  { %2666 = vst.msk [vmem:[%s4330_s2 + $0x88] sm:$0xf] %vm2631_vm3, %v2601_v39  ;;  %2759 = vmatmul.msk.bf16.gmra.mxu1 %vm592_vm1, %v64_v10  ;;  %2984 = vmatmul.msk.bf16.gmra.mxu2 %vm592_vm1, %v3145_v38  ;;  %v3146_v10 = vld [vmem:[%s4329_s0 + $0x15c] sm:$0xff] }
 0x1a7   :  { %v2366_v45 = vpop.f32.mrf.mxu3 }
 0x1a8   :  { %v2474_v46 = vadd.f32 %v2366_v45, %v1596_v40  ;;  %v792_v49 = vpop.f32.mrf.mxu0  ;;  %v474_v40 = vrot.slane %v132_v32, 1  ;;  %v2056_v45 = vrot.slane %v1807_v37, 1 }
 0x1a9   :  { %v1061_v51 = vadd.f32 %v1060_v5, %v792_v49  ;;  %v1491_v52 = vpop.f32.mrf.mxu2  ;;  %v475_v5 = vrot.slane %v133_v33, 1  ;;  %v3147_v49 = vld [vmem:[%s4329_s0 + $0x168] sm:$0xff] }
 0x1aa   :  { %v2538_v50 = vmax.f32 %v2474_v46, 0.0 }
 0x1ab   :  { %2727 = vmatmul.msk.bf16.gmra.mxu0 %vm592_vm1, %v584_v47  ;;  %v1597_v57 = vadd.f32 %v1491_v52, %v1061_v51  ;;  %v1062_v58 = vpop.f32.mrf.mxu1  ;;  %v476_v53 = vsel %vm333_vm2, %v474_v40, %v475_v5  ;;  %v478_v54 = vsel %vm333_vm2, %v475_v5, %v477_v42  ;;  %v3082_v40 = vld [vmem:[%s4329_s0 + $0x188] sm:$0x1] }
 0x1ac   :  { %v2602_v56 = vpack.c.bf16 %v2538_v50, %v2538_v50  ;;  %3113 = vmatmul.msk.bf16.gmra.mxu3 %vm592_vm1, %v2163_v48  ;;  %v586_v59 = vpack.c.bf16 %v478_v54, %v476_v53 }
 0x1ae   :  { %2667 = vst.msk [vmem:[%s4330_s2 + $0x8c] sm:$0xf] %vm2631_vm3, %v2602_v56 }
 0x1af   :  { %v2369_v63 = vpop.f32.mrf.mxu3 }
 0x1b0   :  { %v2475_v0 = vadd.f32 %v2369_v63, %v1597_v57  ;;  %v794_v1 = vpop.f32.mrf.mxu0 }
 0x1b1   :  { %v1063_v8 = vadd.f32 %v1062_v58, %v794_v1  ;;  %v1493_v9 = vpop.f32.mrf.mxu2  ;;  %v202_v1 = vld [vmem:[%s4329_s0 + $0x170] sm:$0x1] }
 0x1b2   :  { %v2539_v7 = vmax.f32 %v2475_v0, 0.0 }
 0x1b3   :  { %v1598_v12 = vadd.f32 %v1493_v9, %v1063_v8  ;;  %v1065_v13 = vpop.f32.mrf.mxu1  ;;  %v234_v8 = vunpack.c.l.bf16 %v202_v1  ;;  %v1808_v9 = vunpack.c.l.bf16 %v3077_v2 }
 0x1b4   :  { %v2603_v11 = vpack.c.bf16 %v2539_v7, %v2539_v7 }
 0x1b5   :  { %v482_v15 = vrot.slane %v234_v8, 1  ;;  %v2058_v16 = vrot.slane %v1808_v9, 1 }
 0x1b6   :  { %2668 = vst.msk [vmem:[%s4330_s2 + $0x90] sm:$0xf] %vm2631_vm3, %v2603_v11  ;;  %2760 = vmatmul.msk.bf16.gmra.mxu1 %vm592_vm1, %v4070_v18  ;;  %2985 = vmatmul.msk.bf16.gmra.mxu2 %vm592_vm1, %v3146_v10  ;;  %v4133_v18 = vld [vmem:[%s4329_s0 + $0x168] sm:$0xff]   ;;  %v1809_v10 = vunpack.c.h.bf16 %v3077_v2  ;;  %v1810_v11 = vunpack.c.l.bf16 %v3079_v3 }
 0x1b7   :  { %v2371_v17 = vpop.f32.mrf.mxu3  ;;  %v3273_v35 = vunpack.c.l.bf16 %v4133_v18  ;;  %v3274_v36 = vunpack.c.h.bf16 %v4133_v18 }
 0x1b8   :  { %v2476_v19 = vadd.f32 %v2371_v17, %v1598_v12  ;;  %v797_v22 = vpop.f32.mrf.mxu0  ;;  %v2059_v17 = vrot.slane %v1809_v10, 1 }
 0x1b9   :  { %v1066_v25 = vadd.f32 %v1065_v13, %v797_v22  ;;  %v1496_v26 = vpop.f32.mrf.mxu2  ;;  %v2053_v43 = vrot.slane %v3273_v35, 1  ;;  %v2054_v44 = vrot.slane %v3274_v36, 1  ;;  %v72_v35 = vld [vmem:[%s4329_s0 + $0x174] sm:$0xff]  }
 0x1ba   :  { %v2540_v24 = vmax.f32 %v2476_v19, 0.0  ;;  %v2061_v19 = vrot.slane %v1810_v11, 1  ;;  %v2060_v28 = vsel %vm333_vm2, %v2058_v16, %v2059_v17  ;;  %v3085_v16 = vld [vmem:[%s4329_s0 + $0x194] sm:$0x1] }
 0x1bb   :  { %2728 = vmatmul.msk.bf16.gmra.mxu0 %vm592_vm1, %v585_v20  ;;  %v1599_v30 = vadd.f32 %v1496_v26, %v1066_v25  ;;  %v1067_v31 = vpop.f32.mrf.mxu1  ;;  %v2055_v55 = vsel %vm333_vm2, %v2053_v43, %v2054_v44  ;;  %v2057_v56 = vsel %vm333_vm2, %v2054_v44, %v2056_v45  ;;  %v483_v27 = vsel %vm333_vm2, %v2054_v44, %v482_v15  ;;  %v3083_v15 = vld [vmem:[%s4329_s0 + $0x18c] sm:$0xff]  }
 0x1bc   :  { %v2604_v29 = vpack.c.bf16 %v2540_v24, %v2540_v24  ;;  %3114 = vmatmul.msk.bf16.gmra.mxu3 %vm592_vm1, %v2164_v21  ;;  %v2165_v60 = vpack.c.bf16 %v2057_v56, %v2055_v55  ;;  %v587_v32 = vpack.c.bf16 %v483_v27, %v2055_v55  ;;  %v136_v43 = vunpack.c.l.bf16 %v72_v35 }
 0x1bd   :  { %v137_v44 = vunpack.c.h.bf16 %v72_v35 }
 0x1be   :  { %2669 = vst.msk [vmem:[%s4330_s2 + $0x94] sm:$0xf] %vm2631_vm3, %v2604_v29  ;;  %v2062_v29 = vsel %vm333_vm2, %v2059_v17, %v2061_v19 }
 0x1bf   :  { %v2374_v38 = vpop.f32.mrf.mxu3  ;;  %v2166_v33 = vpack.c.bf16 %v2062_v29, %v2060_v28 }
 0x1c0   :  { %v2477_v39 = vadd.f32 %v2374_v38, %v1599_v30  ;;  %v799_v41 = vpop.f32.mrf.mxu0 }
 0x1c1   :  { %v1068_v47 = vadd.f32 %v1067_v31, %v799_v41  ;;  %v1498_v48 = vpop.f32.mrf.mxu2 }
 0x1c2   :  { %v2541_v46 = vmax.f32 %v2477_v39, 0.0  ;;  %v203_v39 = vld [vmem:[%s4329_s0 + $0x17c] sm:$0x1] }
 0x1c3   :  { %v1600_v51 = vadd.f32 %v1498_v48, %v1068_v47  ;;  %v1070_v52 = vpop.f32.mrf.mxu1  ;;  %v235_v45 = vunpack.c.l.bf16 %v203_v39  ;;  %v1813_v48 = vunpack.c.l.bf16 %v3082_v40 }
 0x1c4   :  { %v2605_v50 = vpack.c.bf16 %v2541_v46, %v2541_v46 }
 0x1c5   :  { %v487_v54 = vrot.slane %v235_v45, 1 }
 0x1c6   :  { %2670 = vst.msk [vmem:[%s4330_s2 + $0x98] sm:$0xf] %vm2631_vm3, %v2605_v50  ;;  %2761 = vmatmul.msk.bf16.gmra.mxu1 %vm592_vm1, %v68_v23  ;;  %2986 = vmatmul.msk.bf16.gmra.mxu2 %vm592_vm1, %v3147_v49  ;;  %v3148_v23 = vld [vmem:[%s4329_s0 + $0x174] sm:$0xff] }
 0x1c7   :  { %v2376_v57 = vpop.f32.mrf.mxu3 }
 0x1c8   :  { %v2478_v58 = vadd.f32 %v2376_v57, %v1600_v51  ;;  %v802_v61 = vpop.f32.mrf.mxu0  ;;  %v484_v51 = vrot.slane %v136_v43, 1  ;;  %v2066_v57 = vrot.slane %v1813_v48, 1 }
 0x1c9   :  { %v1071_v63 = vadd.f32 %v1070_v52, %v802_v61  ;;  %v1501_v0 = vpop.f32.mrf.mxu2  ;;  %v485_v52 = vrot.slane %v137_v44, 1  ;;  %v3149_v61 = vld [vmem:[%s4329_s0 + $0x180] sm:$0xff] }
 0x1ca   :  { %v2542_v62 = vmax.f32 %v2478_v58, 0.0 }
 0x1cb   :  { %2729 = vmatmul.msk.bf16.gmra.mxu0 %vm592_vm1, %v586_v59  ;;  %v1601_v6 = vadd.f32 %v1501_v0, %v1071_v63  ;;  %v1072_v7 = vpop.f32.mrf.mxu1  ;;  %v486_v1 = vsel %vm333_vm2, %v484_v51, %v485_v52  ;;  %v488_v2 = vsel %vm333_vm2, %v485_v52, %v487_v54 }
 0x1cc   :  { %v2606_v4 = vpack.c.bf16 %v2542_v62, %v2542_v62  ;;  %3115 = vmatmul.msk.bf16.gmra.mxu3 %vm592_vm1, %v2165_v60  ;;  %v588_v8 = vpack.c.bf16 %v488_v2, %v486_v1 }
 0x1ce   :  { %2671 = vst.msk [vmem:[%s4330_s2 + $0x9c] sm:$0xf] %vm2631_vm3, %v2606_v4 }
 0x1cf   :  { %v2379_v12 = vpop.f32.mrf.mxu3 }
 0x1d0   :  { %v2479_v13 = vadd.f32 %v2379_v12, %v1601_v6  ;;  %v804_v14 = vpop.f32.mrf.mxu0 }
 0x1d1   :  { %v1073_v21 = vadd.f32 %v1072_v7, %v804_v14  ;;  %v1503_v22 = vpop.f32.mrf.mxu2  ;;  %v204_v14 = vld [vmem:[%s4329_s0 + $0x188] sm:$0x1] }
 0x1d2   :  { %v2543_v20 = vmax.f32 %v2479_v13, 0.0 }
 0x1d3   :  { %v1602_v25 = vadd.f32 %v1503_v22, %v1073_v21  ;;  %v1075_v26 = vpop.f32.mrf.mxu1  ;;  %v236_v21 = vunpack.c.l.bf16 %v204_v14  ;;  %v1814_v22 = vunpack.c.l.bf16 %v3083_v15 }
 0x1d4   :  { %v2607_v24 = vpack.c.bf16 %v2543_v20, %v2543_v20 }
 0x1d5   :  { %v492_v28 = vrot.slane %v236_v21, 1  ;;  %v2068_v29 = vrot.slane %v1814_v22, 1 }
 0x1d6   :  { %2672 = vst.msk [vmem:[%s4330_s2 + $0xa0] sm:$0xf] %vm2631_vm3, %v2607_v24  ;;  %2762 = vmatmul.msk.bf16.gmra.mxu1 %vm592_vm1, %v4133_v18  ;;  %2987 = vmatmul.msk.bf16.gmra.mxu2 %vm592_vm1, %v3148_v23  ;;  %v4196_v18 = vld [vmem:[%s4329_s0 + $0x180] sm:$0xff]   ;;  %v1815_v23 = vunpack.c.h.bf16 %v3083_v15  ;;  %v1816_v24 = vunpack.c.l.bf16 %v3085_v16 }
 0x1d7   :  { %v2381_v30 = vpop.f32.mrf.mxu3  ;;  %v3277_v46 = vunpack.c.l.bf16 %v4196_v18  ;;  %v3278_v47 = vunpack.c.h.bf16 %v4196_v18 }
 0x1d8   :  { %v2480_v31 = vadd.f32 %v2381_v30, %v1602_v25  ;;  %v807_v34 = vpop.f32.mrf.mxu0  ;;  %v2069_v30 = vrot.slane %v1815_v23, 1 }
 0x1d9   :  { %v1076_v37 = vadd.f32 %v1075_v26, %v807_v34  ;;  %v1506_v38 = vpop.f32.mrf.mxu2  ;;  %v2063_v55 = vrot.slane %v3277_v46, 1  ;;  %v2064_v56 = vrot.slane %v3278_v47, 1 }
 0x1da   :  { %v2544_v36 = vmax.f32 %v2480_v31, 0.0  ;;  %v2071_v31 = vrot.slane %v1816_v24, 1  ;;  %v2070_v40 = vsel %vm333_vm2, %v2068_v29, %v2069_v30 }
 0x1db   :  { %2730 = vmatmul.msk.bf16.gmra.mxu0 %vm592_vm1, %v587_v32  ;;  %v1603_v41 = vadd.f32 %v1506_v38, %v1076_v37  ;;  %v1077_v42 = vpop.f32.mrf.mxu1  ;;  %v2065_v3 = vsel %vm333_vm2, %v2063_v55, %v2064_v56  ;;  %v2067_v4 = vsel %vm333_vm2, %v2064_v56, %v2066_v57  ;;  %v493_v39 = vsel %vm333_vm2, %v2064_v56, %v492_v28 }
 0x1dc   :  { %v2608_v5 = vpack.c.bf16 %v2544_v36, %v2544_v36  ;;  %3116 = vmatmul.msk.bf16.gmra.mxu3 %vm592_vm1, %v2166_v33  ;;  %v2167_v9 = vpack.c.bf16 %v2067_v4, %v2065_v3  ;;  %v589_v43 = vpack.c.bf16 %v493_v39, %v2065_v3 }
 0x1de   :  { %2673 = vst.msk [vmem:[%s4330_s2 + $0xa4] sm:$0xf] %vm2631_vm3, %v2608_v5  ;;  %v2072_v5 = vsel %vm333_vm2, %v2069_v30, %v2071_v31 }
 0x1df   :  { %v2384_v49 = vpop.f32.mrf.mxu3  ;;  %v2168_v44 = vpack.c.bf16 %v2072_v5, %v2070_v40 }
 0x1e0   :  { %v2481_v50 = vadd.f32 %v2384_v49, %v1603_v41  ;;  %v809_v53 = vpop.f32.mrf.mxu0 }
 0x1e1   :  { %v1078_v59 = vadd.f32 %v1077_v42, %v809_v53  ;;  %v1508_v60 = vpop.f32.mrf.mxu2 }
 0x1e2   :  { %v2545_v58 = vmax.f32 %v2481_v50, 0.0 }
 0x1e3   :  { %v1604_v63 = vadd.f32 %v1508_v60, %v1078_v59  ;;  %v1080_v0 = vpop.f32.mrf.mxu1 }
 0x1e4   :  { %v2609_v62 = vpack.c.bf16 %v2545_v58, %v2545_v58 }
 0x1e6   :  { %2674 = vst.msk [vmem:[%s4330_s2 + $0xa8] sm:$0xf] %vm2631_vm3, %v2609_v62  ;;  %2763 = vmatmul.msk.bf16.gmra.mxu1 %vm592_vm1, %v72_v35  ;;  %2988 = vmatmul.msk.bf16.gmra.mxu2 %vm592_vm1, %v3149_v61  ;;  %v3150_v35 = vld [vmem:[%s4329_s0 + $0x18c] sm:$0xff] }
 0x1e7   :  { %v2386_v6 = vpop.f32.mrf.mxu3 }
 0x1e8   :  { %v2482_v7 = vadd.f32 %v2386_v6, %v1604_v63  ;;  %v812_v10 = vpop.f32.mrf.mxu0 }
 0x1e9   :  { %v1081_v12 = vadd.f32 %v1080_v0, %v812_v10  ;;  %v1511_v13 = vpop.f32.mrf.mxu2 }
 0x1ea   :  { %v2546_v11 = vmax.f32 %v2482_v7, 0.0 }
 0x1eb   :  { %2731 = vmatmul.msk.bf16.gmra.mxu0 %vm592_vm1, %v588_v8  ;;  %v1605_v19 = vadd.f32 %v1511_v13, %v1081_v12  ;;  %v1082_v20 = vpop.f32.mrf.mxu1 }
 0x1ec   :  { %v2610_v17 = vpack.c.bf16 %v2546_v11, %v2546_v11  ;;  %3117 = vmatmul.msk.bf16.gmra.mxu3 %vm592_vm1, %v2167_v9 }
 0x1ee   :  { %2675 = vst.msk [vmem:[%s4330_s2 + $0xac] sm:$0xf] %vm2631_vm3, %v2610_v17 }
 0x1ef   :  { %v2389_v25 = vpop.f32.mrf.mxu3 }
 0x1f0   :  { %v2483_v26 = vadd.f32 %v2389_v25, %v1605_v19  ;;  %v814_v27 = vpop.f32.mrf.mxu0 }
 0x1f1   :  { %v1083_v33 = vadd.f32 %v1082_v20, %v814_v27  ;;  %v1513_v34 = vpop.f32.mrf.mxu2 }
 0x1f2   :  { %v2547_v32 = vmax.f32 %v2483_v26, 0.0 }
 0x1f3   :  { %v1606_v37 = vadd.f32 %v1513_v34, %v1083_v33  ;;  %v1085_v38 = vpop.f32.mrf.mxu1 }
 0x1f4   :  { %v2611_v36 = vpack.c.bf16 %v2547_v32, %v2547_v32 }
 0x1f6   :  { %2676 = vst.msk [vmem:[%s4330_s2 + $0xb0] sm:$0xf] %vm2631_vm3, %v2611_v36  ;;  %2764 = vmatmul.msk.bf16.gmra.mxu1 %vm592_vm1, %v4196_v18  ;;  %2989 = vmatmul.msk.bf16.gmra.mxu2 %vm592_vm1, %v3150_v35 }
 0x1f7   :  { %v2391_v41 = vpop.f32.mrf.mxu3 }
 0x1f8   :  { %v2484_v42 = vadd.f32 %v2391_v41, %v1606_v37  ;;  %v817_v45 = vpop.f32.mrf.mxu0 }
 0x1f9   :  { %v1086_v47 = vadd.f32 %v1085_v38, %v817_v45  ;;  %v1516_v48 = vpop.f32.mrf.mxu2 }
 0x1fa   :  { %v2548_v46 = vmax.f32 %v2484_v42, 0.0 }
 0x1fb   :  { %2732 = vmatmul.msk.bf16.gmra.mxu0 %vm592_vm1, %v589_v43  ;;  %v1607_v50 = vadd.f32 %v1516_v48, %v1086_v47  ;;  %v1087_v51 = vpop.f32.mrf.mxu1 }
 0x1fc   :  { %v2612_v49 = vpack.c.bf16 %v2548_v46, %v2548_v46  ;;  %3118 = vmatmul.msk.bf16.gmra.mxu3 %vm592_vm1, %v2168_v44 }
 0x1fe   :  { %2677 = vst.msk [vmem:[%s4330_s2 + $0xb4] sm:$0xf] %vm2631_vm3, %v2612_v49 }
 0x1ff   :  { %v2394_v18 = vpop.f32.mrf.mxu3 }
 0x200   :  { %v2485_v52 = vadd.f32 %v2394_v18, %v1607_v50  ;;  %v819_v53 = vpop.f32.mrf.mxu0 }
 0x201   :  { %v1088_v55 = vadd.f32 %v1087_v51, %v819_v53  ;;  %v1518_v56 = vpop.f32.mrf.mxu2 }
 0x202   :  { %v2549_v54 = vmax.f32 %v2485_v52, 0.0 }
 0x203   :  { %v1608_v58 = vadd.f32 %v1518_v56, %v1088_v55  ;;  %v1090_v59 = vpop.f32.mrf.mxu1 }
 0x204   :  { %v2613_v57 = vpack.c.bf16 %v2549_v54, %v2549_v54 }
 0x206   :  { %2678 = vst.msk [vmem:[%s4330_s2 + $0xb8] sm:$0xf] %vm2631_vm3, %v2613_v57 }
 0x207   :  { %v2396_v60 = vpop.f32.mrf.mxu3 }
 0x208   :  { %v2486_v61 = vadd.f32 %v2396_v60, %v1608_v58  ;;  %v822_v62 = vpop.f32.mrf.mxu0 }
 0x209   :  { %v1091_v0 = vadd.f32 %v1090_v59, %v822_v62  ;;  %v1521_v1 = vpop.f32.mrf.mxu2 }
 0x20a   :  { %v2550_v63 = vmax.f32 %v2486_v61, 0.0 }
 0x20b   :  { %v1609_v3 = vadd.f32 %v1521_v1, %v1091_v0  ;;  %v1092_v4 = vpop.f32.mrf.mxu1 }
 0x20c   :  { %v2614_v2 = vpack.c.bf16 %v2550_v63, %v2550_v63 }
 0x20e   :  { %2679 = vst.msk [vmem:[%s4330_s2 + $0xbc] sm:$0xf] %vm2631_vm3, %v2614_v2 }
 0x20f   :  { %v2399_v6 = vpop.f32.mrf.mxu3 }
 0x210   :  { %v2487_v7 = vadd.f32 %v2399_v6, %v1609_v3  ;;  %v824_v8 = vpop.f32.mrf.mxu0 }
 0x211   :  { %v1093_v10 = vadd.f32 %v1092_v4, %v824_v8  ;;  %v1523_v11 = vpop.f32.mrf.mxu2 }
 0x212   :  { %v2551_v9 = vmax.f32 %v2487_v7, 0.0 }
 0x213   :  { %v1610_v13 = vadd.f32 %v1523_v11, %v1093_v10  ;;  %v1095_v14 = vpop.f32.mrf.mxu1 }
 0x214   :  { %v2615_v12 = vpack.c.bf16 %v2551_v9, %v2551_v9 }
 0x216   :  { %2680 = vst.msk [vmem:[%s4330_s2 + $0xc0] sm:$0xf] %vm2631_vm3, %v2615_v12 }
 0x217   :  { %v2401_v15 = vpop.f32.mrf.mxu3 }
 0x218   :  { %v2488_v16 = vadd.f32 %v2401_v15, %v1610_v13  ;;  %v827_v17 = vpop.f32.mrf.mxu0 }
 0x219   :  { %v1096_v20 = vadd.f32 %v1095_v14, %v827_v17  ;;  %v1526_v21 = vpop.f32.mrf.mxu2 }
 0x21a   :  { %v2552_v19 = vmax.f32 %v2488_v16, 0.0 }
 0x21b   :  { %v1611_v23 = vadd.f32 %v1526_v21, %v1096_v20  ;;  %v1097_v24 = vpop.f32.mrf.mxu1 }
 0x21c   :  { %v2616_v22 = vpack.c.bf16 %v2552_v19, %v2552_v19 }
 0x21e   :  { %2681 = vst.msk [vmem:[%s4330_s2 + $0xc4] sm:$0xf] %vm2631_vm3, %v2616_v22 }
 0x21f   :  { %v2404_v25 = vpop.f32.mrf.mxu3 }
 0x220   :  { %v2489_v26 = vadd.f32 %v2404_v25, %v1611_v23  ;;  %v829_v27 = vpop.f32.mrf.mxu0 }
 0x221   :  { %v1098_v29 = vadd.f32 %v1097_v24, %v829_v27  ;;  %v1528_v30 = vpop.f32.mrf.mxu2 }
 0x222   :  { %v2553_v28 = vmax.f32 %v2489_v26, 0.0 }
 0x223   :  { %v1612_v32 = vadd.f32 %v1528_v30, %v1098_v29  ;;  %v1100_v33 = vpop.f32.mrf.mxu1 }
 0x224   :  { %v2617_v31 = vpack.c.bf16 %v2553_v28, %v2553_v28 }
 0x226   :  { %2682 = vst.msk [vmem:[%s4330_s2 + $0xc8] sm:$0xf] %vm2631_vm3, %v2617_v31 }
 0x227   :  { %v2406_v34 = vpop.f32.mrf.mxu3 }
 0x228   :  { %v2490_v35 = vadd.f32 %v2406_v34, %v1612_v32  ;;  %v832_v36 = vpop.f32.mrf.mxu0 }
 0x229   :  { %v1101_v38 = vadd.f32 %v1100_v33, %v832_v36  ;;  %v1531_v39 = vpop.f32.mrf.mxu2 }
 0x22a   :  { %v2554_v37 = vmax.f32 %v2490_v35, 0.0 }
 0x22b   :  { %v1613_v5 = vadd.f32 %v1531_v39, %v1101_v38  ;;  %v1102_v41 = vpop.f32.mrf.mxu1 }
 0x22c   :  { %v2618_v40 = vpack.c.bf16 %v2554_v37, %v2554_v37 }
 0x22e   :  { %2683 = vst.msk [vmem:[%s4330_s2 + $0xcc] sm:$0xf] %vm2631_vm3, %v2618_v40 }
 0x22f   :  { %v2409_v42 = vpop.f32.mrf.mxu3 }
 0x230   :  { %v2491_v43 = vadd.f32 %v2409_v42, %v1613_v5  ;;  %v834_v44 = vpop.f32.mrf.mxu0 }
 0x231   :  { %v1103_v46 = vadd.f32 %v1102_v41, %v834_v44  ;;  %v1533_v47 = vpop.f32.mrf.mxu2 }
 0x232   :  { %v2555_v45 = vmax.f32 %v2491_v43, 0.0 }
 0x233   :  { %v1614_v49 = vadd.f32 %v1533_v47, %v1103_v46  ;;  %v1105_v50 = vpop.f32.mrf.mxu1 }
 0x234   :  { %v2619_v48 = vpack.c.bf16 %v2555_v45, %v2555_v45 }
 0x236   :  { %2684 = vst.msk [vmem:[%s4330_s2 + $0xd0] sm:$0xf] %vm2631_vm3, %v2619_v48 }
 0x237   :  { %v2411_v51 = vpop.f32.mrf.mxu3 }
 0x238   :  { %v2492_v18 = vadd.f32 %v2411_v51, %v1614_v49  ;;  %v837_v52 = vpop.f32.mrf.mxu0 }
 0x239   :  { %v1106_v54 = vadd.f32 %v1105_v50, %v837_v52  ;;  %v1536_v55 = vpop.f32.mrf.mxu2 }
 0x23a   :  { %v2556_v53 = vmax.f32 %v2492_v18, 0.0 }
 0x23b   :  { %v1615_v57 = vadd.f32 %v1536_v55, %v1106_v54  ;;  %v1107_v58 = vpop.f32.mrf.mxu1 }
 0x23c   :  { %v2620_v56 = vpack.c.bf16 %v2556_v53, %v2556_v53 }
 0x23e   :  { %2685 = vst.msk [vmem:[%s4330_s2 + $0xd4] sm:$0xf] %vm2631_vm3, %v2620_v56 }
 0x23f   :  { %v2414_v59 = vpop.f32.mrf.mxu3 }
 0x240   :  { %v2493_v60 = vadd.f32 %v2414_v59, %v1615_v57  ;;  %v839_v61 = vpop.f32.mrf.mxu0 }
 0x241   :  { %v1108_v63 = vadd.f32 %v1107_v58, %v839_v61  ;;  %v1538_v0 = vpop.f32.mrf.mxu2 }
 0x242   :  { %v2557_v62 = vmax.f32 %v2493_v60, 0.0 }
 0x243   :  { %v1616_v2 = vadd.f32 %v1538_v0, %v1108_v63  ;;  %v1110_v3 = vpop.f32.mrf.mxu1 }
 0x244   :  { %v2621_v1 = vpack.c.bf16 %v2557_v62, %v2557_v62 }
 0x246   :  { %2686 = vst.msk [vmem:[%s4330_s2 + $0xd8] sm:$0xf] %vm2631_vm3, %v2621_v1 }
 0x247   :  { %v2416_v4 = vpop.f32.mrf.mxu3 }
 0x248   :  { %v2494_v6 = vadd.f32 %v2416_v4, %v1616_v2  ;;  %v842_v7 = vpop.f32.mrf.mxu0 }
 0x249   :  { %v1111_v9 = vadd.f32 %v1110_v3, %v842_v7  ;;  %v1541_v10 = vpop.f32.mrf.mxu2 }
 0x24a   :  { %v2558_v8 = vmax.f32 %v2494_v6, 0.0 }
 0x24b   :  { %v1617_v12 = vadd.f32 %v1541_v10, %v1111_v9  ;;  %v1112_v13 = vpop.f32.mrf.mxu1 }
 0x24c   :  { %v2622_v11 = vpack.c.bf16 %v2558_v8, %v2558_v8 }
 0x24e   :  { %2687 = vst.msk [vmem:[%s4330_s2 + $0xdc] sm:$0xf] %vm2631_vm3, %v2622_v11 }
 0x24f   :  { %v2419_v14 = vpop.f32.mrf.mxu3 }
 0x250   :  { %v2495_v15 = vadd.f32 %v2419_v14, %v1617_v12  ;;  %v844_v16 = vpop.f32.mrf.mxu0 }
 0x251   :  { %v1113_v19 = vadd.f32 %v1112_v13, %v844_v16  ;;  %v1543_v20 = vpop.f32.mrf.mxu2 }
 0x252   :  { %v2559_v17 = vmax.f32 %v2495_v15, 0.0 }
 0x253   :  { %v1618_v22 = vadd.f32 %v1543_v20, %v1113_v19  ;;  %v1115_v23 = vpop.f32.mrf.mxu1 }
 0x254   :  { %v2623_v21 = vpack.c.bf16 %v2559_v17, %v2559_v17 }
 0x256   :  { %2688 = vst.msk [vmem:[%s4330_s2 + $0xe0] sm:$0xf] %vm2631_vm3, %v2623_v21 }
 0x257   :  { %v2421_v24 = vpop.f32.mrf.mxu3 }
 0x258   :  { %v2496_v25 = vadd.f32 %v2421_v24, %v1618_v22  ;;  %v847_v26 = vpop.f32.mrf.mxu0 }
 0x259   :  { %v1116_v28 = vadd.f32 %v1115_v23, %v847_v26  ;;  %v1546_v29 = vpop.f32.mrf.mxu2 }
 0x25a   :  { %v2560_v27 = vmax.f32 %v2496_v25, 0.0 }
 0x25b   :  { %v1619_v31 = vadd.f32 %v1546_v29, %v1116_v28  ;;  %v1117_v32 = vpop.f32.mrf.mxu1 }
 0x25c   :  { %v2624_v30 = vpack.c.bf16 %v2560_v27, %v2560_v27 }
 0x25e   :  { %2689 = vst.msk [vmem:[%s4330_s2 + $0xe4] sm:$0xf] %vm2631_vm3, %v2624_v30 }
 0x25f   :  { %v2424_v33 = vpop.f32.mrf.mxu3 }
 0x260   :  { %v2497_v34 = vadd.f32 %v2424_v33, %v1619_v31  ;;  %v849_v35 = vpop.f32.mrf.mxu0 }
 0x261   :  { %v1118_v37 = vadd.f32 %v1117_v32, %v849_v35  ;;  %v1548_v38 = vpop.f32.mrf.mxu2 }
 0x262   :  { %v2561_v36 = vmax.f32 %v2497_v34, 0.0 }
 0x263   :  { %v1620_v40 = vadd.f32 %v1548_v38, %v1118_v37  ;;  %v1120_v5 = vpop.f32.mrf.mxu1 }
 0x264   :  { %v2625_v39 = vpack.c.bf16 %v2561_v36, %v2561_v36 }
 0x266   :  { %2690 = vst.msk [vmem:[%s4330_s2 + $0xe8] sm:$0xf] %vm2631_vm3, %v2625_v39 }
 0x267   :  { %v2426_v41 = vpop.f32.mrf.mxu3 }
 0x268   :  { %v2498_v42 = vadd.f32 %v2426_v41, %v1620_v40  ;;  %v852_v43 = vpop.f32.mrf.mxu0 }
 0x269   :  { %v1121_v45 = vadd.f32 %v1120_v5, %v852_v43  ;;  %v1551_v46 = vpop.f32.mrf.mxu2 }
 0x26a   :  { %v2562_v44 = vmax.f32 %v2498_v42, 0.0 }
 0x26b   :  { %v1621_v48 = vadd.f32 %v1551_v46, %v1121_v45  ;;  %v1122_v49 = vpop.f32.mrf.mxu1 }
 0x26c   :  { %v2626_v47 = vpack.c.bf16 %v2562_v44, %v2562_v44 }
 0x26e   :  { %2691 = vst.msk [vmem:[%s4330_s2 + $0xec] sm:$0xf] %vm2631_vm3, %v2626_v47 }
 0x26f   :  { %v2429_v50 = vpop.f32.mrf.mxu3 }
 0x270   :  { %v2499_v51 = vadd.f32 %v2429_v50, %v1621_v48  ;;  %v854_v18 = vpop.f32.mrf.mxu0 }
 0x271   :  { %v1123_v53 = vadd.f32 %v1122_v49, %v854_v18  ;;  %v1553_v54 = vpop.f32.mrf.mxu2 }
 0x272   :  { %v2563_v52 = vmax.f32 %v2499_v51, 0.0 }
 0x273   :  { %v1622_v56 = vadd.f32 %v1553_v54, %v1123_v53  ;;  %v1125_v57 = vpop.f32.mrf.mxu1 }
 0x274   :  { %v2627_v55 = vpack.c.bf16 %v2563_v52, %v2563_v52 }
 0x276   :  { %2692 = vst.msk [vmem:[%s4330_s2 + $0xf0] sm:$0xf] %vm2631_vm3, %v2627_v55 }
 0x277   :  { %v2431_v58 = vpop.f32.mrf.mxu3 }
 0x278   :  { %v2500_v59 = vadd.f32 %v2431_v58, %v1622_v56  ;;  %v857_v60 = vpop.f32.mrf.mxu0 }
 0x279   :  { %v1126_v62 = vadd.f32 %v1125_v57, %v857_v60  ;;  %v1556_v63 = vpop.f32.mrf.mxu2 }
 0x27a   :  { %v2564_v61 = vmax.f32 %v2500_v59, 0.0 }
 0x27b   :  { %v1623_v1 = vadd.f32 %v1556_v63, %v1126_v62  ;;  %v1127_v4 = vpop.f32.mrf.mxu1 }
 0x27c   :  { %v2628_v0 = vpack.c.bf16 %v2564_v61, %v2564_v61 }
 0x27e   :  { %2693 = vst.msk [vmem:[%s4330_s2 + $0xf4] sm:$0xf] %vm2631_vm3, %v2628_v0 }
 0x27f   :  { %v2434_v2 = vpop.f32.mrf.mxu3 }
 0x280   :  { %v2501_v3 = vadd.f32 %v2434_v2, %v1623_v1  ;;  %v859_v6 = vpop.f32.mrf.mxu0 }
 0x281   :  { %v1128_v8 = vadd.f32 %v1127_v4, %v859_v6  ;;  %v1558_v9 = vpop.f32.mrf.mxu2 }
 0x282   :  { %v2565_v7 = vmax.f32 %v2501_v3, 0.0 }
 0x283   :  { %v1624_v11 = vadd.f32 %v1558_v9, %v1128_v8 }
 0x284   :  { %v2629_v10 = vpack.c.bf16 %v2565_v7, %v2565_v7 }
 0x286   :  { %2694 = vst.msk [vmem:[%s4330_s2 + $0xf8] sm:$0xf] %vm2631_vm3, %v2629_v10 }
 0x287   :  { %v2436_v12 = vpop.f32.mrf.mxu3 }
 0x288   :  { %v2502_v13 = vadd.f32 %v2436_v12, %v1624_v11 }
 0x28a   :  { %v2566_v14 = vmax.f32 %v2502_v13, 0.0 }
 0x28c   :  { %v2630_v15 = vpack.c.bf16 %v2566_v14, %v2566_v14 }
 0x28e   :  { %2695 = vst.msk [vmem:[%s4330_s2 + $0xfc] sm:$0xf] %vm2631_vm3, %v2630_v15 }

// kernel: encoder_forward.7
= control target key start
LH: loop header
LB: loop body
LE: loop exit
PB: predicated region body
PF: predicated region fallthrough
CT: control target
= control target key end

     0   :  { %vm161_vm3 = vcmask 125952   ;;  %s395_s1 = inlined_call_operand.vmem [shape: f32[1,16], index: 1, kind: input, shape index: {}]   ;;  %s396_s2 = inlined_call_operand.vmem [shape: f32[1,16], index: 2, kind: input, shape index: {}]   ;;  %s397_s0 = inlined_call_operand.vmem [shape: bf16[128,16], index: 0, kind: input, shape index: {}]   ;;  %s398_s3 = inlined_call_operand.vmem [shape: f32[1,16], index: 3, kind: input, shape index: {}]   ;;  %s399_s4 = inlined_call_operand.vmem [shape: f32[1,16], index: 4, kind: input, shape index: {}]   ;;  %s400_s5 = inlined_call_operand.vmem [shape: bf16[128,16], index: 5, kind: output, shape index: {}]  }
   0x1   :  { %v20_v0 = vld [vmem:[%s395_s1] sm:$0x1]  ;;  %v214_v16 = vld [vmem:[%s397_s0 + $0x8] sm:$0xff]   ;;  %v215_v17 = vld [vmem:[%s397_s0 + $0x10] sm:$0xff]  }
   0x2   :  { %v22_v1 = vld [vmem:[%s396_s2] sm:$0x1]  ;;  %v21_v2 = vmul.f32 0.0078125, %v20_v0  ;;  %v216_v18 = vld [vmem:[%s397_s0 + $0x18] sm:$0xff]   ;;  %v218_v23 = vld [vmem:[%s397_s0 + $0x28] sm:$0xff]   ;;  %v188_v25 = vunpack.c.l.bf16 %v214_v16  ;;  %v189_v26 = vunpack.c.h.bf16 %v214_v16  ;;  %v192_v27 = vunpack.c.l.bf16 %v215_v17 }
   0x3   :  { %v23_v3 = vmul.f32 0.0078125, %v22_v1  ;;  %v183_v13 = vld [vmem:[%s397_s0] sm:$0xff]   ;;  %v219_v28 = vld [vmem:[%s397_s0 + $0x30] sm:$0xff]   ;;  %v286_v29 = vld [vmem:[%s397_s0 + $0x38] sm:$0xff]   ;;  %v193_v31 = vunpack.c.h.bf16 %v215_v17  ;;  %v196_v32 = vunpack.c.l.bf16 %v216_v18  ;;  %v197_v33 = vunpack.c.h.bf16 %v216_v18 }
   0x4   :  { %v24_v4 = vmul.f32 %v21_v2, %v21_v2  ;;  %v27_v14 = vld [vmem:[%s398_s3] sm:$0x1]  ;;  %v184_v21 = vunpack.c.l.bf16 %v183_v13  ;;  %v185_v22 = vunpack.c.h.bf16 %v183_v13  ;;  %v204_v38 = vunpack.c.l.bf16 %v218_v23 }
   0x5   :  { %v217_v19 = vld [vmem:[%s397_s0 + $0x20] sm:$0xff]   ;;  %v205_v39 = vunpack.c.h.bf16 %v218_v23  ;;  %v208_v40 = vunpack.c.l.bf16 %v219_v28  ;;  %v209_v41 = vunpack.c.h.bf16 %v219_v28  ;;  %v212_v42 = vunpack.c.l.bf16 %v286_v29 }
   0x6   :  { %v25_v5 = vsub.f32 %v23_v3, %v24_v4  ;;  %v40_v30 = vld [vmem:[%s399_s4] sm:$0x1]  ;;  %v200_v34 = vunpack.c.l.bf16 %v217_v19  ;;  %v201_v37 = vunpack.c.h.bf16 %v217_v19 }
   0x8   :  { %v26_v6 = vmax.f32 %v25_v5, 0.0 }
   0xa   :  { %v28_v7 = vadd.f32 1e-05, %v26_v6 }
   0xc   :  { %221 = vrsqrt.f32 %v28_v7  ;;  %vm35_vm0 = vweird.f32 %v28_v7 }
  0x12   :  { %v222_v8 = vpop.eup %221 }
  0x13   :  { %v30_v9 = vmul.f32 %v222_v8, %v28_v7  ;;  %vm36_vm1 = vweird.f32 %v222_v8 }
  0x14   :  { %vm37_vm2 = vmor %vm35_vm0, %vm36_vm1 }
  0x15   :  { %v31_v10 = vmul.f32 %v222_v8, %v30_v9 }
  0x17   :  { %v32_v11 = vmul.f32 0.5, %v31_v10 }
  0x19   :  { %v33_v12 = vsub.f32 1.5, %v32_v11 }
  0x1b   :  { %v34_v15 = vmul.f32 %v222_v8, %v33_v12 }
  0x1d   :  { %v38_v20 = vsel %vm37_vm2, %v222_v8, %v34_v15 }
  0x1e   :  { %v39_v24 = vmul.f32 %v38_v20, %v27_v14 }
  0x20   :  { %v41_v35 = vmul.f32 %v39_v24, %v21_v2  ;;  %v291_v36 = vperm.slane %v39_v24, 0 }
  0x22   :  { %v42_v43 = vsub.f32 %v40_v30, %v41_v35  ;;  %v78_v44 = vmul.f32 %v184_v21, %v291_v36  ;;  %v79_v45 = vmul.f32 %v185_v22, %v291_v36  ;;  %v80_v46 = vmul.f32 %v188_v25, %v291_v36 }
  0x23   :  { %v81_v47 = vmul.f32 %v189_v26, %v291_v36  ;;  %v82_v48 = vmul.f32 %v192_v27, %v291_v36  ;;  %v83_v49 = vmul.f32 %v193_v31, %v291_v36  ;;  %v84_v50 = vmul.f32 %v196_v32, %v291_v36 }
  0x24   :  { %v301_v51 = vperm.slane %v42_v43, 0  ;;  %v85_v52 = vmul.f32 %v197_v33, %v291_v36  ;;  %v86_v53 = vmul.f32 %v200_v34, %v291_v36  ;;  %v87_v54 = vmul.f32 %v201_v37, %v291_v36 }
  0x25   :  { %v88_v55 = vmul.f32 %v204_v38, %v291_v36  ;;  %v89_v56 = vmul.f32 %v205_v39, %v291_v36  ;;  %v90_v57 = vmul.f32 %v208_v40, %v291_v36  ;;  %v91_v58 = vmul.f32 %v209_v41, %v291_v36 }
  0x26   :  { %v97_v59 = vadd.f32 %v301_v51, %v78_v44  ;;  %v98_v60 = vadd.f32 %v301_v51, %v79_v45  ;;  %v99_v61 = vadd.f32 %v301_v51, %v80_v46  ;;  %v100_v62 = vadd.f32 %v301_v51, %v81_v47 }
  0x27   :  { %v101_v63 = vadd.f32 %v301_v51, %v82_v48  ;;  %v102_v0 = vadd.f32 %v301_v51, %v83_v49  ;;  %v103_v1 = vadd.f32 %v301_v51, %v84_v50  ;;  %v104_v2 = vadd.f32 %v301_v51, %v85_v52 }
  0x28   :  { %v113_v3 = vmul.f32 0.2, %v97_v59  ;;  %v114_v4 = vmul.f32 0.2, %v98_v60  ;;  %v115_v5 = vmul.f32 0.2, %v99_v61  ;;  %v105_v6 = vadd.f32 %v301_v51, %v86_v53 }
  0x29   :  { %v116_v7 = vmul.f32 0.2, %v100_v62  ;;  %v117_v8 = vmul.f32 0.2, %v101_v63  ;;  %v118_v9 = vmul.f32 0.2, %v102_v0  ;;  %v106_v10 = vadd.f32 %v301_v51, %v87_v54 }
  0x2a   :  { %v129_v11 = vmax.f32 %v97_v59, %v113_v3  ;;  %v130_v12 = vmax.f32 %v98_v60, %v114_v4  ;;  %v131_v13 = vmax.f32 %v99_v61, %v115_v5  ;;  %v119_v14 = vmul.f32 0.2, %v103_v1 }
  0x2b   :  { %v132_v15 = vmax.f32 %v100_v62, %v116_v7  ;;  %v133_v16 = vmax.f32 %v101_v63, %v117_v8  ;;  %v134_v17 = vmax.f32 %v102_v0, %v118_v9  ;;  %v120_v18 = vmul.f32 0.2, %v104_v2 }
  0x2c   :  { %v145_v19 = vpack.c.bf16 %v129_v11, %v129_v11  ;;  %v146_v20 = vpack.c.bf16 %v130_v12, %v130_v12  ;;  %v147_v21 = vpack.c.bf16 %v131_v13, %v131_v13  ;;  %v135_v22 = vmax.f32 %v103_v1, %v119_v14 }
  0x2d   :  { %v148_v23 = vpack.c.bf16 %v132_v15, %v132_v15  ;;  %v149_v24 = vpack.c.bf16 %v133_v16, %v133_v16  ;;  %v136_v25 = vmax.f32 %v104_v2, %v120_v18  ;;  %v213_v26 = vunpack.c.h.bf16 %v286_v29 }
  0x2e   :  { %162 = vst.msk [vmem:[%s400_s5] sm:$0xf] %vm161_vm3, %v145_v19  ;;  %v150_v27 = vpack.c.bf16 %v134_v17, %v134_v17  ;;  %v121_v28 = vmul.f32 0.2, %v105_v6  ;;  %v122_v30 = vmul.f32 0.2, %v106_v10  ;;  %v107_v31 = vadd.f32 %v301_v51, %v88_v55 }
  0x2f   :  { %163 = vst.msk [vmem:[%s400_s5 + $0x4] sm:$0xf] %vm161_vm3, %v146_v20  ;;  %v151_v32 = vpack.c.bf16 %v135_v22, %v135_v22  ;;  %v108_v33 = vadd.f32 %v301_v51, %v89_v56  ;;  %v109_v34 = vadd.f32 %v301_v51, %v90_v57  ;;  %v110_v35 = vadd.f32 %v301_v51, %v91_v58 }
  0x30   :  { %164 = vst.msk [vmem:[%s400_s5 + $0x8] sm:$0xf] %vm161_vm3, %v147_v21  ;;  %v137_v37 = vmax.f32 %v105_v6, %v121_v28  ;;  %v138_v38 = vmax.f32 %v106_v10, %v122_v30  ;;  %v123_v39 = vmul.f32 0.2, %v107_v31  ;;  %v92_v40 = vmul.f32 %v212_v42, %v291_v36 }
  0x31   :  { %165 = vst.msk [vmem:[%s400_s5 + $0xc] sm:$0xf] %vm161_vm3, %v148_v23  ;;  %v152_v41 = vpack.c.bf16 %v136_v25, %v136_v25  ;;  %v124_v43 = vmul.f32 0.2, %v108_v33  ;;  %v125_v44 = vmul.f32 0.2, %v109_v34  ;;  %v93_v45 = vmul.f32 %v213_v26, %v291_v36 }
  0x32   :  { %166 = vst.msk [vmem:[%s400_s5 + $0x10] sm:$0xf] %vm161_vm3, %v149_v24  ;;  %v153_v46 = vpack.c.bf16 %v137_v37, %v137_v37  ;;  %v154_v47 = vpack.c.bf16 %v138_v38, %v138_v38  ;;  %v139_v48 = vmax.f32 %v107_v31, %v123_v39  ;;  %v126_v29 = vmul.f32 0.2, %v110_v35 }
  0x33   :  { %167 = vst.msk [vmem:[%s400_s5 + $0x14] sm:$0xf] %vm161_vm3, %v150_v27  ;;  %v140_v42 = vmax.f32 %v108_v33, %v124_v43  ;;  %v141_v49 = vmax.f32 %v109_v34, %v125_v44  ;;  %v111_v50 = vadd.f32 %v301_v51, %v92_v40  ;;  %v112_v36 = vadd.f32 %v301_v51, %v93_v45 }
  0x34   :  { %168 = vst.msk [vmem:[%s400_s5 + $0x18] sm:$0xf] %vm161_vm3, %v151_v32  ;;  %v155_v52 = vpack.c.bf16 %v139_v48, %v139_v48  ;;  %v142_v53 = vmax.f32 %v110_v35, %v126_v29 }
  0x35   :  { %169 = vst.msk [vmem:[%s400_s5 + $0x1c] sm:$0xf] %vm161_vm3, %v152_v41  ;;  %v156_v54 = vpack.c.bf16 %v140_v42, %v140_v42  ;;  %v127_v55 = vmul.f32 0.2, %v111_v50  ;;  %v128_v56 = vmul.f32 0.2, %v112_v36  ;;  %v157_v51 = vpack.c.bf16 %v141_v49, %v141_v49 }
  0x36   :  { %170 = vst.msk [vmem:[%s400_s5 + $0x20] sm:$0xf] %vm161_vm3, %v153_v46  ;;  %v158_v57 = vpack.c.bf16 %v142_v53, %v142_v53 }
  0x37   :  { %171 = vst.msk [vmem:[%s400_s5 + $0x24] sm:$0xf] %vm161_vm3, %v154_v47  ;;  %v143_v58 = vmax.f32 %v111_v50, %v127_v55  ;;  %v144_v59 = vmax.f32 %v112_v36, %v128_v56 }
  0x38   :  { %172 = vst.msk [vmem:[%s400_s5 + $0x28] sm:$0xf] %vm161_vm3, %v155_v52 }
  0x39   :  { %173 = vst.msk [vmem:[%s400_s5 + $0x2c] sm:$0xf] %vm161_vm3, %v156_v54  ;;  %v159_v60 = vpack.c.bf16 %v143_v58, %v143_v58  ;;  %v160_v61 = vpack.c.bf16 %v144_v59, %v144_v59 }
  0x3a   :  { %174 = vst.msk [vmem:[%s400_s5 + $0x30] sm:$0xf] %vm161_vm3, %v157_v51 }
  0x3b   :  { %175 = vst.msk [vmem:[%s400_s5 + $0x34] sm:$0xf] %vm161_vm3, %v158_v57 }
  0x3c   :  { %176 = vst.msk [vmem:[%s400_s5 + $0x38] sm:$0xf] %vm161_vm3, %v159_v60 }
  0x3d   :  { %177 = vst.msk [vmem:[%s400_s5 + $0x3c] sm:$0xf] %vm161_vm3, %v160_v61 }

// kernel: encoder_forward.6
= control target key start
LH: loop header
LB: loop body
LE: loop exit
PB: predicated region body
PF: predicated region fallthrough
CT: control target
= control target key end

     0   :  { %vm130_vm0 = vcmask 1046528   ;;  %vm220_vm1 = vcmask 261120   ;;  %vm816_vm2 = vcmask 125952   ;;  %vm834_vm3 = vcmask 130048   ;;  %s1636_s1 = inlined_call_operand.vmem [shape: bf16[4,32,16], index: 1, kind: input, shape index: {}]   ;;  %s1637_s0 = inlined_call_operand.vmem [shape: bf16[2,9,9,32], index: 0, kind: input, shape index: {}]   ;;  %s1638_s2 = inlined_call_operand.vmem [shape: bf16[128,16], index: 2, kind: output, shape index: {0}]   ;;  %s1639_s3 = inlined_call_operand.vmem [shape: f32[1,16], index: 3, kind: output, shape index: {1}]   ;;  %s1640_s4 = inlined_call_operand.vmem [shape: f32[1,16], index: 4, kind: output, shape index: {2}]  }
   0x1   :  { %v1102_v0 = vld [vmem:[%s1636_s1 + $0x18] sm:$0xff]  ;;  %v1100_v1 = vld [vmem:[%s1636_s1 + $0x8] sm:$0xff]  ;;  %v1101_v4 = vld [vmem:[%s1636_s1 + $0x10] sm:$0xff]  ;;  %vm19_vm4 = vcmask 122880  }
   0x2   :  { %v1112_v2 = vld [vmem:[%s1636_s1 + $0x28] sm:$0xff]  ;;  %v1114_v3 = vld [vmem:[%s1636_s1 + $0x38] sm:$0xff]  ;;  %v1099_v5 = vld [vmem:[%s1636_s1] sm:$0xff]  ;;  %251 = vmatpush.bf16.msra.mxu0 %v1102_v0  ;;  %336 = vmatpush.bf16.msra.mxu1 %v1100_v1 }
   0x3   :  { %v1111_v6 = vld [vmem:[%s1636_s1 + $0x20] sm:$0xff]  ;;  %v1113_v7 = vld [vmem:[%s1636_s1 + $0x30] sm:$0xff]  ;;  %467 = vmatpush.bf16.msra.mxu2 %v1112_v2  ;;  %741 = vmatpush.bf16.msra.mxu3 %v1114_v3  ;;  %v23_v9 = vld [vmem:[%s1637_s0 + $0x8] sm:$0xf] }
   0x4   :  { %v22_v8 = vld [vmem:[%s1637_s0] sm:$0xf]  ;;  %v66_v11 = vld [vmem:[%s1637_s0 + $0x4] sm:$0x1]  ;;  %v67_v12 = vld [vmem:[%s1637_s0 + $0xc] sm:$0x1]  ;;  %v39_v13 = vunpack.c.l.bf16 %v23_v9 }
   0x5   :  { %v38_v10 = vunpack.c.l.bf16 %v22_v8  ;;  %v82_v14 = vunpack.c.l.bf16 %v66_v11  ;;  %v83_v15 = vunpack.c.l.bf16 %v67_v12  ;;  %v997_v16 = vld [vmem:[%s1637_s0 + $0x8] sm:$0xf]  ;;  %v1103_v17 = vld [vmem:[%s1637_s0 + $0xc] sm:$0xf0]  ;;  %v1048_v21 = vld [vmem:[%s1637_s0 + $0xc] sm:$0x1] }
   0x6   :  { %v1047_v18 = vld [vmem:[%s1637_s0 + $0x8] sm:$0xf]  ;;  %v998_v20 = vor.u32 %v1103_v17, %v997_v16  ;;  %v1049_v22 = vld [vmem:[%s1637_s0 + $0x10] sm:$0xf]  ;;  %252 = vmatpush.bf16.msra.mxu0 %v1101_v4  ;;  %337 = vmatpush.bf16.msra.mxu1 %v1099_v5  ;;  %v134_v25 = vrot.slane %v39_v13, 1  ;;  %v559_v29 = vunpack.c.l.bf16 %v1048_v21 }
   0x7   :  { %v131_v19 = vrot.slane %v38_v10, 1  ;;  %v558_v23 = vunpack.c.l.bf16 %v1047_v18  ;;  %v132_v24 = vrot.slane %v82_v14, 1  ;;  %v135_v26 = vrot.slane %v83_v15, 1  ;;  %v1050_v28 = vld [vmem:[%s1637_s0 + $0x14] sm:$0x1]  ;;  %468 = vmatpush.bf16.msra.mxu2 %v1111_v6  ;;  %742 = vmatpush.bf16.msra.mxu3 %v1113_v7 }
   0x8   :  { %v54_v27 = vpack.c.bf16 %v39_v13, %v38_v10  ;;  %v560_v30 = vunpack.c.l.bf16 %v1049_v22  ;;  %v561_v31 = vunpack.c.l.bf16 %v1050_v28  ;;  %v24_v35 = vld [vmem:[%s1637_s0 + $0x10] sm:$0xf]  ;;  %v25_v36 = vld [vmem:[%s1637_s0 + $0x18] sm:$0xf]  ;;  %v68_v37 = vld [vmem:[%s1637_s0 + $0x14] sm:$0x1] }
   0x9   :  { %v622_v32 = vrot.slane %v558_v23, 1  ;;  %v133_v33 = vsel %vm130_vm0, %v131_v19, %v132_v24  ;;  %v136_v34 = vsel %vm130_vm0, %v134_v25, %v135_v26  ;;  %v623_v39 = vrot.slane %v559_v29, 1  ;;  %v69_v42 = vld [vmem:[%s1637_s0 + $0x1c] sm:$0x1]  ;;  %v1051_v46 = vld [vmem:[%s1637_s0 + $0x18] sm:$0xf] }
   0xa   :  { %v195_v38 = vpack.c.bf16 %v136_v34, %v133_v33  ;;  %971 = vmatmul.msk.bf16.vlgmr.msra.gmra.mxu1 %vm220_vm1, %v54_v27  ;;  %v625_v40 = vrot.slane %v560_v30, 1  ;;  %v626_v41 = vrot.slane %v561_v31, 1  ;;  %1039 = vmatmul.msk.bf16.vlgmr.msra.gmra.mxu2 %vm220_vm1, %v998_v20  ;;  %v40_v45 = vunpack.c.l.bf16 %v24_v35  ;;  %v1052_v51 = vld [vmem:[%s1637_s0 + $0x1c] sm:$0x1]  ;;  %v1053_v52 = vld [vmem:[%s1637_s0 + $0x20] sm:$0xf] }
   0xb   :  { %v624_v43 = vsel %vm130_vm0, %v622_v32, %v623_v39  ;;  %v41_v48 = vunpack.c.l.bf16 %v25_v36  ;;  %v84_v49 = vunpack.c.l.bf16 %v68_v37  ;;  %v85_v50 = vunpack.c.l.bf16 %v69_v42  ;;  %v1054_v53 = vld [vmem:[%s1637_s0 + $0x24] sm:$0x1]  ;;  %v1001_v62 = vld [vmem:[%s1637_s0 + $0x18] sm:$0xf]  ;;  %v1104_v63 = vld [vmem:[%s1637_s0 + $0x1c] sm:$0xf0] }
   0xc   :  { %955 = vmatmul.msk.bf16.vlgmr.msra.gmra.mxu0 %vm220_vm1, %v195_v38  ;;  %v627_v44 = vsel %vm130_vm0, %v625_v40, %v626_v41  ;;  %v562_v54 = vunpack.c.l.bf16 %v1051_v46  ;;  %v563_v55 = vunpack.c.l.bf16 %v1052_v51  ;;  %v564_v56 = vunpack.c.l.bf16 %v1053_v52  ;;  %v26_v11 = vld [vmem:[%s1637_s0 + $0x20] sm:$0xf]  ;;  %v27_v12 = vld [vmem:[%s1637_s0 + $0x28] sm:$0xf]  ;;  %v70_v13 = vld [vmem:[%s1637_s0 + $0x24] sm:$0x1] }
   0xd   :  { %v686_v47 = vpack.c.bf16 %v627_v44, %v624_v43  ;;  %v565_v57 = vunpack.c.l.bf16 %v1054_v53  ;;  %v137_v58 = vrot.slane %v40_v45, 1  ;;  %v138_v59 = vrot.slane %v84_v49, 1  ;;  %v71_v14 = vld [vmem:[%s1637_s0 + $0x2c] sm:$0x1]  ;;  %v1055_v16 = vld [vmem:[%s1637_s0 + $0x28] sm:$0xf] }
   0xe   :  { %v140_v60 = vrot.slane %v41_v48, 1  ;;  %v141_v61 = vrot.slane %v85_v50, 1  ;;  %v628_v0 = vrot.slane %v562_v54, 1  ;;  %v629_v1 = vrot.slane %v563_v55, 1  ;;  %v1056_v21 = vld [vmem:[%s1637_s0 + $0x2c] sm:$0x1] }
   0xf   :  { %1091 = vmatmul.msk.bf16.vlgmr.msra.gmra.mxu3 %vm220_vm1, %v686_v47  ;;  %v631_v2 = vrot.slane %v564_v56, 1  ;;  %v632_v3 = vrot.slane %v565_v57, 1  ;;  %v139_v4 = vsel %vm130_vm0, %v137_v58, %v138_v59  ;;  %v55_v6 = vpack.c.bf16 %v41_v48, %v40_v45  ;;  %v1057_v22 = vld [vmem:[%s1637_s0 + $0x30] sm:$0xf]  ;;  %v1058_v23 = vld [vmem:[%s1637_s0 + $0x34] sm:$0x1] }
  0x10   :  { %v142_v5 = vsel %vm130_vm0, %v140_v60, %v141_v61  ;;  %v1002_v7 = vor.u32 %v1104_v63, %v1001_v62  ;;  %v630_v9 = vsel %vm130_vm0, %v628_v0, %v629_v1  ;;  %v42_v17 = vunpack.c.l.bf16 %v26_v11  ;;  %v1005_v32 = vld [vmem:[%s1637_s0 + $0x28] sm:$0xf]  ;;  %v1105_v33 = vld [vmem:[%s1637_s0 + $0x2c] sm:$0xf0]  ;;  %v29_v46 = vld [vmem:[%s1637_s0 + $0x38] sm:$0xf] }
  0x11   :  { %v196_v8 = vpack.c.bf16 %v142_v5, %v139_v4  ;;  %v633_v10 = vsel %vm130_vm0, %v631_v2, %v632_v3  ;;  %v43_v18 = vunpack.c.l.bf16 %v27_v12  ;;  %v86_v19 = vunpack.c.l.bf16 %v70_v13  ;;  %v28_v45 = vld [vmem:[%s1637_s0 + $0x30] sm:$0xf]  ;;  %v72_v47 = vld [vmem:[%s1637_s0 + $0x34] sm:$0x1]  ;;  %v73_v48 = vld [vmem:[%s1637_s0 + $0x3c] sm:$0x1] }
  0x12   :  { %v687_v15 = vpack.c.bf16 %v633_v10, %v630_v9  ;;  %v87_v20 = vunpack.c.l.bf16 %v71_v14  ;;  %v566_v24 = vunpack.c.l.bf16 %v1055_v16  ;;  %v567_v25 = vunpack.c.l.bf16 %v1056_v21  ;;  %v1059_v50 = vld [vmem:[%s1637_s0 + $0x38] sm:$0xf]  ;;  %v1060_v51 = vld [vmem:[%s1637_s0 + $0x3c] sm:$0x1]  ;;  %v1061_v56 = vld [vmem:[%s1637_s0 + $0x40] sm:$0xf] }
  0x13   :  { %v568_v26 = vunpack.c.l.bf16 %v1057_v22  ;;  %v569_v27 = vunpack.c.l.bf16 %v1058_v23  ;;  %v143_v28 = vrot.slane %v42_v17, 1  ;;  %v144_v29 = vrot.slane %v86_v19, 1  ;;  %v1062_v57 = vld [vmem:[%s1637_s0 + $0x44] sm:$0x1]  ;;  %v1009_v4 = vld [vmem:[%s1637_s0 + $0x38] sm:$0xf] }
  0x14   :  { %v146_v30 = vrot.slane %v43_v18, 1  ;;  %v147_v31 = vrot.slane %v87_v20, 1  ;;  %v634_v34 = vrot.slane %v566_v24, 1  ;;  %v635_v35 = vrot.slane %v567_v25, 1  ;;  %v1106_v5 = vld [vmem:[%s1637_s0 + $0x3c] sm:$0xf0] }
  0x15   :  { %v637_v36 = vrot.slane %v568_v26, 1  ;;  %v638_v37 = vrot.slane %v569_v27, 1  ;;  %v145_v38 = vsel %vm130_vm0, %v143_v28, %v144_v29  ;;  %v56_v40 = vpack.c.bf16 %v43_v18, %v42_v17  ;;  %v31_v16 = vld [vmem:[%s1637_s0 + $0x50] sm:$0xf]  ;;  %v74_v17 = vld [vmem:[%s1637_s0 + $0x4c] sm:$0x1] }
  0x16   :  { %v148_v39 = vsel %vm130_vm0, %v146_v30, %v147_v31  ;;  %v1006_v41 = vor.u32 %v1105_v33, %v1005_v32  ;;  %v636_v43 = vsel %vm130_vm0, %v634_v34, %v635_v35  ;;  %v44_v52 = vunpack.c.l.bf16 %v28_v45  ;;  %v75_v18 = vld [vmem:[%s1637_s0 + $0x54] sm:$0x1]  ;;  %v1063_v20 = vld [vmem:[%s1637_s0 + $0x50] sm:$0xf]  ;;  %v1065_v26 = vld [vmem:[%s1637_s0 + $0x58] sm:$0xf] }
  0x17   :  { %v197_v42 = vpack.c.bf16 %v148_v39, %v145_v38  ;;  %v639_v44 = vsel %vm130_vm0, %v637_v36, %v638_v37  ;;  %v45_v53 = vunpack.c.l.bf16 %v29_v46  ;;  %v88_v54 = vunpack.c.l.bf16 %v72_v47  ;;  %v1064_v21 = vld [vmem:[%s1637_s0 + $0x54] sm:$0x1]  ;;  %v1066_v27 = vld [vmem:[%s1637_s0 + $0x5c] sm:$0x1]  ;;  %v1013_v38 = vld [vmem:[%s1637_s0 + $0x50] sm:$0xf] }
  0x18   :  { %v688_v49 = vpack.c.bf16 %v639_v44, %v636_v43  ;;  %v89_v55 = vunpack.c.l.bf16 %v73_v48  ;;  %v570_v58 = vunpack.c.l.bf16 %v1059_v50  ;;  %v571_v59 = vunpack.c.l.bf16 %v1060_v51  ;;  %v1107_v39 = vld [vmem:[%s1637_s0 + $0x54] sm:$0xf0]  ;;  %v33_v50 = vld [vmem:[%s1637_s0 + $0x60] sm:$0xf]  ;;  %v76_v51 = vld [vmem:[%s1637_s0 + $0x5c] sm:$0x1] }
  0x19   :  { %v572_v60 = vunpack.c.l.bf16 %v1061_v56  ;;  %v573_v61 = vunpack.c.l.bf16 %v1062_v57  ;;  %v149_v62 = vrot.slane %v44_v52, 1  ;;  %v150_v63 = vrot.slane %v88_v54, 1  ;;  %v1067_v54 = vld [vmem:[%s1637_s0 + $0x60] sm:$0xf] }
  0x1a   :  { %972 = vmatmul.msk.bf16.gmra.mxu1 %vm220_vm1, %v55_v6  ;;  %1040 = vmatmul.msk.bf16.gmra.mxu2 %vm220_vm1, %v1002_v7  ;;  %v152_v0 = vrot.slane %v45_v53, 1  ;;  %v153_v1 = vrot.slane %v89_v55, 1  ;;  %v640_v2 = vrot.slane %v570_v58, 1  ;;  %v641_v3 = vrot.slane %v571_v59, 1  ;;  %v1068_v55 = vld [vmem:[%s1637_s0 + $0x64] sm:$0x1] }
  0x1b   :  { %v643_v6 = vrot.slane %v572_v60, 1  ;;  %v644_v7 = vrot.slane %v573_v61, 1  ;;  %v57_v10 = vpack.c.bf16 %v45_v53, %v44_v52  ;;  %v1010_v11 = vor.u32 %v1106_v5, %v1009_v4  ;;  %v77_v52 = vld [vmem:[%s1637_s0 + $0x64] sm:$0x1]  ;;  %v1069_v60 = vld [vmem:[%s1637_s0 + $0x68] sm:$0xf] }
  0x1c   :  { %956 = vmatmul.msk.bf16.gmra.mxu0 %vm220_vm1, %v196_v8  ;;  %v151_v8 = vsel %vm130_vm0, %v149_v62, %v150_v63  ;;  %v154_v9 = vsel %vm130_vm0, %v152_v0, %v153_v1  ;;  %v642_v13 = vsel %vm130_vm0, %v640_v2, %v641_v3  ;;  %v47_v23 = vunpack.c.l.bf16 %v31_v16  ;;  %v1070_v61 = vld [vmem:[%s1637_s0 + $0x6c] sm:$0x1] }
  0x1d   :  { %v198_v12 = vpack.c.bf16 %v154_v9, %v151_v8  ;;  %v645_v14 = vsel %vm130_vm0, %v643_v6, %v644_v7  ;;  %v90_v24 = vunpack.c.l.bf16 %v74_v17  ;;  %v91_v25 = vunpack.c.l.bf16 %v75_v18  ;;  %v1017_v8 = vld [vmem:[%s1637_s0 + $0x60] sm:$0xf]  ;;  %v1108_v9 = vld [vmem:[%s1637_s0 + $0x64] sm:$0xf0] }
  0x1e   :  { %v689_v19 = vpack.c.bf16 %v645_v14, %v642_v13  ;;  %v574_v28 = vunpack.c.l.bf16 %v1063_v20  ;;  %v575_v29 = vunpack.c.l.bf16 %v1064_v21  ;;  %v576_v30 = vunpack.c.l.bf16 %v1065_v26  ;;  %v35_v20 = vld [vmem:[%s1637_s0 + $0x70] sm:$0xf]  ;;  %v78_v21 = vld [vmem:[%s1637_s0 + $0x6c] sm:$0x1] }
  0x1f   :  { %1092 = vmatmul.msk.bf16.gmra.mxu3 %vm220_vm1, %v687_v15  ;;  %v30_v15 = vld [vmem:[%s1637_s0 + $0x48] sm:$0xf]  ;;  %v577_v31 = vunpack.c.l.bf16 %v1066_v27  ;;  %v156_v33 = vrot.slane %v90_v24, 1  ;;  %v158_v34 = vrot.slane %v47_v23, 1  ;;  %v159_v35 = vrot.slane %v91_v25, 1 }
  0x20   :  { %v46_v22 = vunpack.c.l.bf16 %v30_v15  ;;  %v646_v36 = vrot.slane %v574_v28, 1  ;;  %v647_v37 = vrot.slane %v575_v29, 1  ;;  %v1014_v45 = vor.u32 %v1107_v39, %v1013_v38  ;;  %v1071_v24 = vld [vmem:[%s1637_s0 + $0x70] sm:$0xf]  ;;  %v1072_v25 = vld [vmem:[%s1637_s0 + $0x74] sm:$0x1] }
  0x21   :  { %v160_v43 = vsel %vm130_vm0, %v158_v34, %v159_v35  ;;  %v49_v57 = vunpack.c.l.bf16 %v33_v50  ;;  %v92_v58 = vunpack.c.l.bf16 %v76_v51  ;;  %v93_v59 = vunpack.c.l.bf16 %v77_v52 }
  0x22   :  { %v155_v32 = vrot.slane %v46_v22, 1  ;;  %v58_v44 = vpack.c.bf16 %v47_v23, %v46_v22  ;;  %v648_v47 = vsel %vm130_vm0, %v646_v36, %v647_v37  ;;  %v578_v62 = vunpack.c.l.bf16 %v1067_v54  ;;  %v79_v22 = vld [vmem:[%s1637_s0 + $0x74] sm:$0x1]  ;;  %v37_v54 = vld [vmem:[%s1637_s0 + $0x80] sm:$0xf] }
  0x23   :  { %v579_v63 = vunpack.c.l.bf16 %v1068_v55  ;;  %v580_v0 = vunpack.c.l.bf16 %v1069_v60  ;;  %v581_v1 = vunpack.c.l.bf16 %v1070_v61  ;;  %v162_v3 = vrot.slane %v92_v58, 1  ;;  %v80_v55 = vld [vmem:[%s1637_s0 + $0x7c] sm:$0x1]  ;;  %v1075_v58 = vld [vmem:[%s1637_s0 + $0x80] sm:$0xf] }
  0x24   :  { %v164_v4 = vrot.slane %v49_v57, 1  ;;  %v165_v5 = vrot.slane %v93_v59, 1  ;;  %v652_v6 = vrot.slane %v578_v62, 1  ;;  %v1018_v15 = vor.u32 %v1108_v9, %v1017_v8  ;;  %v1076_v59 = vld [vmem:[%s1637_s0 + $0x84] sm:$0x1] }
  0x25   :  { %v653_v7 = vrot.slane %v579_v63, 1  ;;  %v51_v27 = vunpack.c.l.bf16 %v35_v20  ;;  %v94_v28 = vunpack.c.l.bf16 %v78_v21  ;;  %v95_v29 = vunpack.c.l.bf16 %v79_v22 }
  0x26   :  { %v166_v13 = vsel %vm130_vm0, %v164_v4, %v165_v5  ;;  %v53_v61 = vunpack.c.l.bf16 %v37_v54  ;;  %v96_v62 = vunpack.c.l.bf16 %v80_v55 }
  0x27   :  { %v654_v17 = vsel %vm130_vm0, %v652_v6, %v653_v7  ;;  %v168_v37 = vrot.slane %v94_v28, 1  ;;  %v170_v38 = vrot.slane %v51_v27, 1  ;;  %v171_v39 = vrot.slane %v95_v29, 1 }
  0x28   :  { %v174_v7 = vrot.slane %v96_v62, 1  ;;  %v176_v8 = vrot.slane %v53_v61, 1 }
  0x2a   :  { %973 = vmatmul.msk.bf16.gmra.mxu1 %vm220_vm1, %v56_v40  ;;  %1041 = vmatmul.msk.bf16.gmra.mxu2 %vm220_vm1, %v1006_v41  ;;  %v649_v40 = vrot.slane %v576_v30, 1  ;;  %v650_v41 = vrot.slane %v577_v31, 1  ;;  %v1073_v30 = vld [vmem:[%s1637_s0 + $0x78] sm:$0xf]  ;;  %v1074_v31 = vld [vmem:[%s1637_s0 + $0x7c] sm:$0x1] }
  0x2b   :  { %v584_v34 = vunpack.c.l.bf16 %v1073_v30  ;;  %v585_v35 = vunpack.c.l.bf16 %v1074_v31 }
  0x2c   :  { %957 = vmatmul.msk.bf16.gmra.mxu0 %vm220_vm1, %v197_v42  ;;  %v157_v42 = vsel %vm130_vm0, %v155_v32, %v156_v33  ;;  %v651_v48 = vsel %vm130_vm0, %v649_v40, %v650_v41  ;;  %v582_v32 = vunpack.c.l.bf16 %v1071_v24  ;;  %v583_v33 = vunpack.c.l.bf16 %v1072_v25 }
  0x2d   :  { %v199_v46 = vpack.c.bf16 %v160_v43, %v157_v42  ;;  %v690_v53 = vpack.c.bf16 %v651_v48, %v648_v47  ;;  %v1021_v42 = vld [vmem:[%s1637_s0 + $0x70] sm:$0xf]  ;;  %v1109_v43 = vld [vmem:[%s1637_s0 + $0x74] sm:$0xf0]  ;;  %v172_v47 = vsel %vm130_vm0, %v170_v38, %v171_v39 }
  0x2e   :  { %v658_v40 = vrot.slane %v582_v32, 1  ;;  %v659_v41 = vrot.slane %v583_v33, 1 }
  0x2f   :  { %1093 = vmatmul.msk.bf16.gmra.mxu3 %vm220_vm1, %v688_v49  ;;  %v32_v49 = vld [vmem:[%s1637_s0 + $0x58] sm:$0xf] }
  0x30   :  { %v48_v56 = vunpack.c.l.bf16 %v32_v49  ;;  %v1022_v49 = vor.u32 %v1109_v43, %v1021_v42  ;;  %v660_v51 = vsel %vm130_vm0, %v658_v40, %v659_v41 }
  0x32   :  { %v161_v2 = vrot.slane %v48_v56, 1  ;;  %v59_v14 = vpack.c.bf16 %v49_v57, %v48_v56  ;;  %v81_v56 = vld [vmem:[%s1637_s0 + $0x84] sm:$0x1] }
  0x33   :  { %v97_v63 = vunpack.c.l.bf16 %v81_v56 }
  0x35   :  { %v177_v9 = vrot.slane %v97_v63, 1 }
  0x3a   :  { %974 = vmatmul.msk.bf16.gmra.mxu1 %vm220_vm1, %v57_v10  ;;  %1042 = vmatmul.msk.bf16.gmra.mxu2 %vm220_vm1, %v1010_v11  ;;  %v655_v10 = vrot.slane %v580_v0, 1  ;;  %v656_v11 = vrot.slane %v581_v1, 1  ;;  %v1077_v0 = vld [vmem:[%s1637_s0 + $0x88] sm:$0xf]  ;;  %v1078_v1 = vld [vmem:[%s1637_s0 + $0x8c] sm:$0x1] }
  0x3b   :  { %v588_v4 = vunpack.c.l.bf16 %v1077_v0  ;;  %v589_v5 = vunpack.c.l.bf16 %v1078_v1 }
  0x3c   :  { %958 = vmatmul.msk.bf16.gmra.mxu0 %vm220_vm1, %v198_v12  ;;  %v163_v12 = vsel %vm130_vm0, %v161_v2, %v162_v3  ;;  %v657_v18 = vsel %vm130_vm0, %v655_v10, %v656_v11  ;;  %v586_v2 = vunpack.c.l.bf16 %v1075_v58  ;;  %v587_v3 = vunpack.c.l.bf16 %v1076_v59 }
  0x3d   :  { %v200_v16 = vpack.c.bf16 %v166_v13, %v163_v12  ;;  %v691_v23 = vpack.c.bf16 %v657_v18, %v654_v17  ;;  %v1025_v12 = vld [vmem:[%s1637_s0 + $0x80] sm:$0xf]  ;;  %v1110_v13 = vld [vmem:[%s1637_s0 + $0x84] sm:$0xf0]  ;;  %v178_v17 = vsel %vm130_vm0, %v176_v8, %v177_v9 }
  0x3e   :  { %v664_v10 = vrot.slane %v586_v2, 1  ;;  %v665_v11 = vrot.slane %v587_v3, 1 }
  0x3f   :  { %1094 = vmatmul.msk.bf16.gmra.mxu3 %vm220_vm1, %v689_v19  ;;  %v34_v19 = vld [vmem:[%s1637_s0 + $0x68] sm:$0xf] }
  0x40   :  { %v50_v26 = vunpack.c.l.bf16 %v34_v19  ;;  %v1026_v19 = vor.u32 %v1110_v13, %v1025_v12  ;;  %v666_v21 = vsel %vm130_vm0, %v664_v10, %v665_v11 }
  0x42   :  { %v167_v36 = vrot.slane %v50_v26, 1  ;;  %v60_v48 = vpack.c.bf16 %v51_v27, %v50_v26 }
  0x4a   :  { %975 = vmatmul.msk.bf16.gmra.mxu1 %vm220_vm1, %v58_v44  ;;  %1043 = vmatmul.msk.bf16.gmra.mxu2 %vm220_vm1, %v1014_v45  ;;  %v661_v44 = vrot.slane %v584_v34, 1  ;;  %v662_v45 = vrot.slane %v585_v35, 1 }
  0x4c   :  { %959 = vmatmul.msk.bf16.gmra.mxu0 %vm220_vm1, %v199_v46  ;;  %v169_v46 = vsel %vm130_vm0, %v167_v36, %v168_v37  ;;  %v663_v52 = vsel %vm130_vm0, %v661_v44, %v662_v45 }
  0x4d   :  { %v201_v50 = vpack.c.bf16 %v172_v47, %v169_v46  ;;  %v692_v57 = vpack.c.bf16 %v663_v52, %v660_v51 }
  0x4f   :  { %1095 = vmatmul.msk.bf16.gmra.mxu3 %vm220_vm1, %v690_v53  ;;  %v36_v53 = vld [vmem:[%s1637_s0 + $0x78] sm:$0xf] }
  0x50   :  { %v52_v60 = vunpack.c.l.bf16 %v36_v53 }
  0x52   :  { %v173_v6 = vrot.slane %v52_v60, 1  ;;  %v61_v18 = vpack.c.bf16 %v53_v61, %v52_v60 }
  0x5a   :  { %976 = vmatmul.msk.bf16.gmra.mxu1 %vm220_vm1, %v59_v14  ;;  %1044 = vmatmul.msk.bf16.gmra.mxu2 %vm220_vm1, %v1018_v15  ;;  %v667_v14 = vrot.slane %v588_v4, 1  ;;  %v668_v15 = vrot.slane %v589_v5, 1 }
  0x5c   :  { %960 = vmatmul.msk.bf16.gmra.mxu0 %vm220_vm1, %v200_v16  ;;  %v175_v16 = vsel %vm130_vm0, %v173_v6, %v174_v7  ;;  %v669_v22 = vsel %vm130_vm0, %v667_v14, %v668_v15 }
  0x5d   :  { %v202_v20 = vpack.c.bf16 %v178_v17, %v175_v16 }
  0x5f   :  { %1096 = vmatmul.msk.bf16.gmra.mxu3 %vm220_vm1, %v691_v23  ;;  %v693_v23 = vpack.c.bf16 %v669_v22, %v666_v21 }
  0x6a   :  { %977 = vmatmul.msk.bf16.gmra.mxu1 %vm220_vm1, %v60_v48  ;;  %1045 = vmatmul.msk.bf16.gmra.mxu2 %vm220_vm1, %v1022_v49 }
  0x6c   :  { %961 = vmatmul.msk.bf16.gmra.mxu0 %vm220_vm1, %v201_v50 }
  0x6f   :  { %1097 = vmatmul.msk.bf16.gmra.mxu3 %vm220_vm1, %v692_v57 }
  0x7a   :  { %978 = vmatmul.msk.bf16.gmra.mxu1 %vm220_vm1, %v61_v18  ;;  %1046 = vmatmul.msk.bf16.gmra.mxu2 %vm220_vm1, %v1026_v19 }
  0x7c   :  { %962 = vmatmul.msk.bf16.gmra.mxu0 %vm220_vm1, %v202_v20 }
  0x7f   :  { %1098 = vmatmul.msk.bf16.gmra.mxu3 %vm220_vm1, %v693_v23 }
  0x87   :  { %v339_v24 = vpop.f32.mrf.mxu1 }
  0x89   :  { %v254_v25 = vpop.f32.mrf.mxu0 }
  0x8a   :  { %v340_v26 = vadd.f32 %v339_v24, %v254_v25 }
  0x8d   :  { %v470_v27 = vpop.f32.mrf.mxu2 }
  0x8e   :  { %v510_v28 = vadd.f32 %v470_v27, %v340_v26 }
  0x8f   :  { %v341_v29 = vpop.f32.mrf.mxu1 }
  0x91   :  { %v256_v30 = vpop.f32.mrf.mxu0 }
  0x92   :  { %v744_v31 = vpop.f32.mrf.mxu3  ;;  %v342_v34 = vadd.f32 %v341_v29, %v256_v30 }
  0x93   :  { %v784_v32 = vadd.f32 %v744_v31, %v510_v28 }
  0x95   :  { %v800_v33 = vpack.c.bf16 %v784_v32, %v784_v32  ;;  %v472_v35 = vpop.f32.mrf.mxu2  ;;  %v876_v40 = vmul.f32 %v784_v32, %v784_v32  ;;  %v835_v43 = vsel %vm834_vm3, %v784_v32, 0.0 }
  0x96   :  { %v511_v36 = vadd.f32 %v472_v35, %v342_v34 }
  0x97   :  { %817 = vst.msk [vmem:[%s1638_s2] sm:$0xf] %vm816_vm2, %v800_v33  ;;  %v344_v37 = vpop.f32.mrf.mxu1  ;;  %v892_v49 = vsel %vm834_vm3, %v876_v40, 0.0 }
  0x99   :  { %v259_v38 = vpop.f32.mrf.mxu0 }
  0x9a   :  { %v746_v39 = vpop.f32.mrf.mxu3  ;;  %v345_v42 = vadd.f32 %v344_v37, %v259_v38 }
  0x9b   :  { %v785_v41 = vadd.f32 %v746_v39, %v511_v36 }
  0x9d   :  { %v801_v44 = vpack.c.bf16 %v785_v41, %v785_v41  ;;  %v836_v45 = vsel %vm834_vm3, %v785_v41, 0.0  ;;  %v877_v46 = vmul.f32 %v785_v41, %v785_v41  ;;  %v475_v48 = vpop.f32.mrf.mxu2 }
  0x9e   :  { %v837_v47 = vadd.f32 %v836_v45, %v835_v43  ;;  %v512_v51 = vadd.f32 %v475_v48, %v345_v42 }
  0x9f   :  { %818 = vst.msk [vmem:[%s1638_s2 + $0x4] sm:$0xf] %vm816_vm2, %v801_v44  ;;  %v893_v50 = vsel %vm834_vm3, %v877_v46, 0.0  ;;  %v346_v52 = vpop.f32.mrf.mxu1 }
  0xa0   :  { %v894_v53 = vadd.f32 %v893_v50, %v892_v49 }
  0xa1   :  { %v261_v54 = vpop.f32.mrf.mxu0 }
  0xa2   :  { %v749_v55 = vpop.f32.mrf.mxu3  ;;  %v347_v60 = vadd.f32 %v346_v52, %v261_v54 }
  0xa3   :  { %v786_v56 = vadd.f32 %v749_v55, %v512_v51 }
  0xa5   :  { %v802_v57 = vpack.c.bf16 %v786_v56, %v786_v56  ;;  %v838_v58 = vsel %vm834_vm3, %v786_v56, 0.0  ;;  %v878_v59 = vmul.f32 %v786_v56, %v786_v56  ;;  %v477_v62 = vpop.f32.mrf.mxu2 }
  0xa6   :  { %v839_v61 = vadd.f32 %v838_v58, %v837_v47  ;;  %v513_v0 = vadd.f32 %v477_v62, %v347_v60 }
  0xa7   :  { %819 = vst.msk [vmem:[%s1638_s2 + $0x8] sm:$0xf] %vm816_vm2, %v802_v57  ;;  %v895_v63 = vsel %vm834_vm3, %v878_v59, 0.0  ;;  %v349_v1 = vpop.f32.mrf.mxu1 }
  0xa8   :  { %v896_v2 = vadd.f32 %v895_v63, %v894_v53 }
  0xa9   :  { %v264_v3 = vpop.f32.mrf.mxu0 }
  0xaa   :  { %v751_v4 = vpop.f32.mrf.mxu3  ;;  %v350_v6 = vadd.f32 %v349_v1, %v264_v3 }
  0xab   :  { %v787_v5 = vadd.f32 %v751_v4, %v513_v0 }
  0xad   :  { %v803_v7 = vpack.c.bf16 %v787_v5, %v787_v5  ;;  %v840_v8 = vsel %vm834_vm3, %v787_v5, 0.0  ;;  %v879_v9 = vmul.f32 %v787_v5, %v787_v5  ;;  %v480_v11 = vpop.f32.mrf.mxu2 }
  0xae   :  { %v841_v10 = vadd.f32 %v840_v8, %v839_v61  ;;  %v514_v13 = vadd.f32 %v480_v11, %v350_v6 }
  0xaf   :  { %820 = vst.msk [vmem:[%s1638_s2 + $0xc] sm:$0xf] %vm816_vm2, %v803_v7  ;;  %v897_v12 = vsel %vm834_vm3, %v879_v9, 0.0  ;;  %v351_v14 = vpop.f32.mrf.mxu1 }
  0xb0   :  { %v898_v15 = vadd.f32 %v897_v12, %v896_v2 }
  0xb1   :  { %v266_v16 = vpop.f32.mrf.mxu0 }
  0xb2   :  { %v754_v17 = vpop.f32.mrf.mxu3  ;;  %v352_v22 = vadd.f32 %v351_v14, %v266_v16  ;;  %v1116_v14 = vmov 0.0  }
  0xb3   :  { %v788_v18 = vadd.f32 %v754_v17, %v514_v13  ;;  %20 = vst.msk [vmem:[%s1639_s3] sm:$0x1] %vm19_vm4, %v1116_v14 }
  0xb4   :  { %21 = vst.msk [vmem:[%s1640_s4] sm:$0x1] %vm19_vm4, %v1116_v14 }
  0xb5   :  { %v804_v19 = vpack.c.bf16 %v788_v18, %v788_v18  ;;  %v842_v20 = vsel %vm834_vm3, %v788_v18, 0.0  ;;  %v880_v21 = vmul.f32 %v788_v18, %v788_v18  ;;  %v482_v24 = vpop.f32.mrf.mxu2 }
  0xb6   :  { %v1495_v23 = vadd.f32 %v842_v20, %v841_v10  ;;  %v515_v26 = vadd.f32 %v482_v24, %v352_v22 }
  0xb7   :  { %821 = vst.msk [vmem:[%s1638_s2 + $0x10] sm:$0xf] %vm816_vm2, %v804_v19  ;;  %v899_v25 = vsel %vm834_vm3, %v880_v21, 0.0  ;;  %v354_v27 = vpop.f32.mrf.mxu1 }
  0xb8   :  { %v1502_v28 = vadd.f32 %v899_v25, %v898_v15 }
  0xb9   :  { %v269_v29 = vpop.f32.mrf.mxu0 }
  0xba   :  { %v756_v30 = vpop.f32.mrf.mxu3  ;;  %v355_v32 = vadd.f32 %v354_v27, %v269_v29 }
  0xbb   :  { %v1504_v31 = vadd.f32 %v756_v30, %v515_v26 }
  0xbd   :  { %v805_v33 = vpack.c.bf16 %v1504_v31, %v1504_v31  ;;  %v485_v34 = vpop.f32.mrf.mxu2  ;;  %v881_v26 = vmul.f32 %v1504_v31, %v1504_v31 }
  0xbe   :  { %v516_v35 = vadd.f32 %v485_v34, %v355_v32 }
  0xbf   :  { %822 = vst.msk [vmem:[%s1638_s2 + $0x14] sm:$0xf] %vm816_vm2, %v805_v33  ;;  %v356_v36 = vpop.f32.mrf.mxu1  ;;  %v844_v33 = vsel %vm834_vm3, %v1504_v31, 0.0 }
  0xc1   :  { %v271_v37 = vpop.f32.mrf.mxu0 }
  0xc2   :  { %v759_v38 = vpop.f32.mrf.mxu3  ;;  %v357_v41 = vadd.f32 %v356_v36, %v271_v37  ;;  %v901_v36 = vsel %vm834_vm3, %v881_v26, 0.0 }
  0xc3   :  { %v1512_v39 = vadd.f32 %v759_v38, %v516_v35 }
  0xc5   :  { %v806_v40 = vpack.c.bf16 %v1512_v39, %v1512_v39  ;;  %v487_v42 = vpop.f32.mrf.mxu2  ;;  %v882_v30 = vmul.f32 %v1512_v39, %v1512_v39  ;;  %v846_v37 = vsel %vm834_vm3, %v1512_v39, 0.0 }
  0xc6   :  { %v517_v43 = vadd.f32 %v487_v42, %v357_v41  ;;  %v845_v41 = vadd.f32 %v844_v33, %v1495_v23 }
  0xc7   :  { %823 = vst.msk [vmem:[%s1638_s2 + $0x18] sm:$0xf] %vm816_vm2, %v806_v40  ;;  %v359_v44 = vpop.f32.mrf.mxu1  ;;  %v903_v31 = vsel %vm834_vm3, %v882_v30, 0.0 }
  0xc8   :  { %v847_v39 = vadd.f32 %v846_v37, %v845_v41 }
  0xc9   :  { %v274_v45 = vpop.f32.mrf.mxu0 }
  0xca   :  { %v761_v46 = vpop.f32.mrf.mxu3  ;;  %v360_v48 = vadd.f32 %v359_v44, %v274_v45 }
  0xcb   :  { %v1520_v47 = vadd.f32 %v761_v46, %v517_v43 }
  0xcd   :  { %v807_v49 = vpack.c.bf16 %v1520_v47, %v1520_v47  ;;  %v490_v50 = vpop.f32.mrf.mxu2  ;;  %v883_v38 = vmul.f32 %v1520_v47, %v1520_v47  ;;  %v848_v43 = vsel %vm834_vm3, %v1520_v47, 0.0 }
  0xce   :  { %v518_v51 = vadd.f32 %v490_v50, %v360_v48  ;;  %v902_v48 = vadd.f32 %v901_v36, %v1502_v28 }
  0xcf   :  { %824 = vst.msk [vmem:[%s1638_s2 + $0x1c] sm:$0xf] %vm816_vm2, %v807_v49  ;;  %v361_v52 = vpop.f32.mrf.mxu1  ;;  %v905_v49 = vsel %vm834_vm3, %v883_v38, 0.0 }
  0xd1   :  { %v276_v53 = vpop.f32.mrf.mxu0 }
  0xd2   :  { %v764_v54 = vpop.f32.mrf.mxu3  ;;  %v362_v57 = vadd.f32 %v361_v52, %v276_v53  ;;  %v904_v52 = vadd.f32 %v903_v31, %v902_v48  ;;  %v849_v53 = vadd.f32 %v848_v43, %v847_v39 }
  0xd3   :  { %v1528_v55 = vadd.f32 %v764_v54, %v518_v51 }
  0xd5   :  { %v808_v56 = vpack.c.bf16 %v1528_v55, %v1528_v55  ;;  %v492_v58 = vpop.f32.mrf.mxu2  ;;  %v884_v44 = vmul.f32 %v1528_v55, %v1528_v55  ;;  %v850_v50 = vsel %vm834_vm3, %v1528_v55, 0.0 }
  0xd6   :  { %v519_v59 = vadd.f32 %v492_v58, %v362_v57  ;;  %v906_v57 = vadd.f32 %v905_v49, %v904_v52  ;;  %v851_v58 = vadd.f32 %v850_v50, %v849_v53  ;;  %v875_v53 = vld [vmem:[%s1640_s4] sm:$0x1] }
  0xd7   :  { %825 = vst.msk [vmem:[%s1638_s2 + $0x20] sm:$0xf] %vm816_vm2, %v808_v56  ;;  %v364_v60 = vpop.f32.mrf.mxu1  ;;  %v907_v54 = vsel %vm834_vm3, %v884_v44, 0.0 }
  0xd9   :  { %v279_v61 = vpop.f32.mrf.mxu0 }
  0xda   :  { %v766_v62 = vpop.f32.mrf.mxu3  ;;  %v365_v0 = vadd.f32 %v364_v60, %v279_v61 }
  0xdb   :  { %v1536_v63 = vadd.f32 %v766_v62, %v519_v59 }
  0xdd   :  { %v809_v1 = vpack.c.bf16 %v1536_v63, %v1536_v63  ;;  %v495_v2 = vpop.f32.mrf.mxu2  ;;  %v885_v23 = vmul.f32 %v1536_v63, %v1536_v63  ;;  %v852_v56 = vsel %vm834_vm3, %v1536_v63, 0.0 }
  0xde   :  { %v520_v3 = vadd.f32 %v495_v2, %v365_v0  ;;  %v908_v0 = vadd.f32 %v907_v54, %v906_v57  ;;  %v853_v63 = vadd.f32 %v852_v56, %v851_v58 }
  0xdf   :  { %826 = vst.msk [vmem:[%s1638_s2 + $0x24] sm:$0xf] %vm816_vm2, %v809_v1  ;;  %v366_v4 = vpop.f32.mrf.mxu1  ;;  %v909_v60 = vsel %vm834_vm3, %v885_v23, 0.0  ;;  %v833_v23 = vld [vmem:[%s1639_s3] sm:$0x1] }
  0xe1   :  { %v281_v5 = vpop.f32.mrf.mxu0 }
  0xe2   :  { %v769_v6 = vpop.f32.mrf.mxu3  ;;  %v367_v9 = vadd.f32 %v366_v4, %v281_v5 }
  0xe3   :  { %v1544_v7 = vadd.f32 %v769_v6, %v520_v3 }
  0xe5   :  { %v810_v8 = vpack.c.bf16 %v1544_v7, %v1544_v7  ;;  %v497_v10 = vpop.f32.mrf.mxu2  ;;  %v886_v28 = vmul.f32 %v1544_v7, %v1544_v7  ;;  %v854_v61 = vsel %vm834_vm3, %v1544_v7, 0.0 }
  0xe6   :  { %v521_v11 = vadd.f32 %v497_v10, %v367_v9  ;;  %v855_v9 = vadd.f32 %v854_v61, %v853_v63 }
  0xe7   :  { %827 = vst.msk [vmem:[%s1638_s2 + $0x28] sm:$0xf] %vm816_vm2, %v810_v8  ;;  %v369_v12 = vpop.f32.mrf.mxu1  ;;  %v911_v3 = vsel %vm834_vm3, %v886_v28, 0.0  ;;  %v910_v8 = vadd.f32 %v909_v60, %v908_v0 }
  0xe9   :  { %v284_v13 = vpop.f32.mrf.mxu0  ;;  %v912_v14 = vadd.f32 %v911_v3, %v910_v8 }
  0xea   :  { %v771_v15 = vpop.f32.mrf.mxu3  ;;  %v370_v17 = vadd.f32 %v369_v12, %v284_v13 }
  0xeb   :  { %v795_v16 = vadd.f32 %v771_v15, %v521_v11 }
  0xed   :  { %v811_v18 = vpack.c.bf16 %v795_v16, %v795_v16  ;;  %v500_v19 = vpop.f32.mrf.mxu2  ;;  %v887_v59 = vmul.f32 %v795_v16, %v795_v16  ;;  %v856_v4 = vsel %vm834_vm3, %v795_v16, 0.0 }
  0xee   :  { %v522_v20 = vadd.f32 %v500_v19, %v370_v17  ;;  %v857_v15 = vadd.f32 %v856_v4, %v855_v9 }
  0xef   :  { %828 = vst.msk [vmem:[%s1638_s2 + $0x2c] sm:$0xf] %vm816_vm2, %v811_v18  ;;  %v371_v21 = vpop.f32.mrf.mxu1  ;;  %v913_v10 = vsel %vm834_vm3, %v887_v59, 0.0 }
  0xf1   :  { %v286_v22 = vpop.f32.mrf.mxu0 }
  0xf2   :  { %v774_v24 = vpop.f32.mrf.mxu3  ;;  %v372_v29 = vadd.f32 %v371_v21, %v286_v22  ;;  %v914_v21 = vadd.f32 %v913_v10, %v912_v14 }
  0xf3   :  { %v796_v25 = vadd.f32 %v774_v24, %v522_v20 }
  0xf5   :  { %v812_v27 = vpack.c.bf16 %v796_v25, %v796_v25  ;;  %v502_v32 = vpop.f32.mrf.mxu2  ;;  %v888_v5 = vmul.f32 %v796_v25, %v796_v25  ;;  %v858_v11 = vsel %vm834_vm3, %v796_v25, 0.0 }
  0xf6   :  { %v523_v34 = vadd.f32 %v502_v32, %v372_v29  ;;  %v859_v22 = vadd.f32 %v858_v11, %v857_v15 }
  0xf7   :  { %829 = vst.msk [vmem:[%s1638_s2 + $0x30] sm:$0xf] %vm816_vm2, %v812_v27  ;;  %v374_v35 = vpop.f32.mrf.mxu1  ;;  %v915_v18 = vsel %vm834_vm3, %v888_v5, 0.0 }
  0xf8   :  { %v916_v26 = vadd.f32 %v915_v18, %v914_v21 }
  0xf9   :  { %v289_v40 = vpop.f32.mrf.mxu0 }
  0xfa   :  { %v776_v42 = vpop.f32.mrf.mxu3  ;;  %v375_v46 = vadd.f32 %v374_v35, %v289_v40 }
  0xfb   :  { %v797_v45 = vadd.f32 %v776_v42, %v523_v34 }
  0xfd   :  { %v813_v51 = vpack.c.bf16 %v797_v45, %v797_v45  ;;  %v505_v47 = vpop.f32.mrf.mxu2  ;;  %v889_v12 = vmul.f32 %v797_v45, %v797_v45  ;;  %v860_v19 = vsel %vm834_vm3, %v797_v45, 0.0 }
  0xfe   :  { %v524_v55 = vadd.f32 %v505_v47, %v375_v46  ;;  %v861_v27 = vadd.f32 %v860_v19, %v859_v22 }
  0xff   :  { %830 = vst.msk [vmem:[%s1638_s2 + $0x34] sm:$0xf] %vm816_vm2, %v813_v51  ;;  %v376_v62 = vpop.f32.mrf.mxu1  ;;  %v917_v24 = vsel %vm834_vm3, %v889_v12, 0.0 }
 0x100   :  { %v918_v33 = vadd.f32 %v917_v24, %v916_v26 }
 0x101   :  { %v291_v2 = vpop.f32.mrf.mxu0 }
 0x102   :  { %v779_v1 = vpop.f32.mrf.mxu3  ;;  %v377_v7 = vadd.f32 %v376_v62, %v291_v2 }
 0x103   :  { %v798_v6 = vadd.f32 %v779_v1, %v524_v55 }
 0x105   :  { %v814_v13 = vpack.c.bf16 %v798_v6, %v798_v6  ;;  %v507_v17 = vpop.f32.mrf.mxu2  ;;  %v890_v16 = vmul.f32 %v798_v6, %v798_v6  ;;  %v862_v25 = vsel %vm834_vm3, %v798_v6, 0.0 }
 0x106   :  { %v525_v20 = vadd.f32 %v507_v17, %v377_v7  ;;  %v863_v34 = vadd.f32 %v862_v25, %v861_v27 }
 0x107   :  { %831 = vst.msk [vmem:[%s1638_s2 + $0x38] sm:$0xf] %vm816_vm2, %v814_v13  ;;  %v919_v30 = vsel %vm834_vm3, %v890_v16, 0.0 }
 0x108   :  { %v920_v38 = vadd.f32 %v919_v30, %v918_v33 }
 0x10a   :  { %v781_v29 = vpop.f32.mrf.mxu3 }
 0x10b   :  { %v799_v32 = vadd.f32 %v781_v29, %v525_v20 }
 0x10d   :  { %v815_v35 = vpack.c.bf16 %v799_v32, %v799_v32  ;;  %v864_v36 = vsel %vm834_vm3, %v799_v32, 0.0  ;;  %v891_v37 = vmul.f32 %v799_v32, %v799_v32 }
 0x10e   :  { %v865_v40 = vadd.f32 %v864_v36, %v863_v34 }
 0x10f   :  { %832 = vst.msk [vmem:[%s1638_s2 + $0x3c] sm:$0xf] %vm816_vm2, %v815_v35  ;;  %v921_v41 = vsel %vm834_vm3, %v891_v37, 0.0 }
 0x110   :  { %v866_v31 = vrot.slane %v865_v40, 4  ;;  %v922_v42 = vadd.f32 %v921_v41, %v920_v38 }
 0x112   :  { %v867_v43 = vadd.f32 %v866_v31, %v865_v40  ;;  %v923_v44 = vrot.slane %v922_v42, 4 }
 0x114   :  { %v868_v45 = vrot.slane %v867_v43, 2  ;;  %v924_v46 = vadd.f32 %v923_v44, %v922_v42 }
 0x116   :  { %v869_v48 = vadd.f32 %v868_v45, %v867_v43  ;;  %v925_v39 = vrot.slane %v924_v46, 2 }
 0x118   :  { %v870_v49 = vrot.slane %v869_v48, 1  ;;  %v926_v50 = vadd.f32 %v925_v39, %v924_v46 }
 0x11a   :  { %v871_v51 = vadd.f32 %v870_v49, %v869_v48  ;;  %v927_v52 = vrot.slane %v926_v50, 1 }
 0x11c   :  { %v872_v47 = vadd.f32 %v871_v51, %v833_v23  ;;  %v928_v54 = vadd.f32 %v927_v52, %v926_v50 }
 0x11e   :  { %874 = vst.msk [vmem:[%s1639_s3] sm:$0x1] %vm19_vm4, %v872_v47  ;;  %v929_v56 = vadd.f32 %v928_v54, %v875_v53 }
 0x120   :  { %930 = vst.msk [vmem:[%s1640_s4] sm:$0x1] %vm19_vm4, %v929_v56 }

// kernel: encoder_forward.8
= control target key start
LH: loop header
LB: loop body
LE: loop exit
PB: predicated region body
PF: predicated region fallthrough
CT: control target
= control target key end

     0   :  { %vm207_vm0 = vcmask 261120   ;;  %vm285_vm4 = vcmask 257024   ;;  %s541_s1 = inlined_call_operand.vmem [shape: bf16[256,32], index: 1, kind: input, shape index: {}]   ;;  %s542_s0 = inlined_call_operand.vmem [shape: bf16[32,256], index: 0, kind: input, shape index: {}]   ;;  %s543_s2 = inlined_call_operand.vmem [shape: f32[1,32], index: 2, kind: input, shape index: {}]   ;;  %s544_s3 = inlined_call_operand.vmem [shape: f32[1,32], index: 3, kind: input, shape index: {}]   ;;  %s545_s4 = inlined_call_operand.vmem [shape: bf16[32,32], index: 4, kind: output, shape index: {}]  }
   0x1   :  { %v385_v0 = vld [vmem:[%s541_s1 + $0x38] sm:$0xff]  ;;  %v384_v2 = vld [vmem:[%s541_s1 + $0x30] sm:$0xff]  ;;  %v383_v4 = vld [vmem:[%s541_s1 + $0x28] sm:$0xff] }
   0x2   :  { %v393_v1 = vld [vmem:[%s541_s1 + $0x78] sm:$0xff]  ;;  %169 = vmatpush.bf16.msra.mxu0 %v385_v0  ;;  %394 = vmatpush.bf16.msra.mxu2 %v385_v0  ;;  %v392_v3 = vld [vmem:[%s541_s1 + $0x70] sm:$0xff]  ;;  %v391_v5 = vld [vmem:[%s541_s1 + $0x68] sm:$0xff] }
   0x3   :  { %188 = vmatpush.bf16.msra.mxu1 %v393_v1  ;;  %402 = vmatpush.bf16.msra.mxu3 %v393_v1  ;;  %v382_v6 = vld [vmem:[%s541_s1 + $0x20] sm:$0xff]  ;;  %v381_v8 = vld [vmem:[%s541_s1 + $0x18] sm:$0xff]  ;;  %v380_v10 = vld [vmem:[%s541_s1 + $0x10] sm:$0xff] }
   0x4   :  { %v390_v7 = vld [vmem:[%s541_s1 + $0x60] sm:$0xff]  ;;  %v389_v9 = vld [vmem:[%s541_s1 + $0x58] sm:$0xff]  ;;  %v388_v11 = vld [vmem:[%s541_s1 + $0x50] sm:$0xff] }
   0x5   :  { %v379_v12 = vld [vmem:[%s541_s1 + $0x8] sm:$0xff]  ;;  %v378_v14 = vld [vmem:[%s541_s1] sm:$0xff]  ;;  %v304_v18 = vld [vmem:[%s542_s0 + $0x10] sm:$0xf] }
   0x6   :  { %170 = vmatpush.bf16.msra.mxu0 %v384_v2  ;;  %395 = vmatpush.bf16.msra.mxu2 %v384_v2  ;;  %v387_v13 = vld [vmem:[%s541_s1 + $0x48] sm:$0xff]  ;;  %v386_v15 = vld [vmem:[%s541_s1 + $0x40] sm:$0xff]  ;;  %v377_v19 = vld [vmem:[%s542_s0 + $0x14] sm:$0xf0] }
   0x7   :  { %189 = vmatpush.bf16.msra.mxu1 %v392_v3  ;;  %403 = vmatpush.bf16.msra.mxu3 %v392_v3  ;;  %v296_v16 = vld [vmem:[%s542_s0] sm:$0xf]  ;;  %v375_v17 = vld [vmem:[%s542_s0 + $0x4] sm:$0xf0]  ;;  %v374_v20 = vld [vmem:[%s542_s0 + $0x4] sm:$0xf]  ;;  %v305_v25 = vor.u32 %v377_v19, %v304_v18 }
   0x8   :  { %v298_v21 = vld [vmem:[%s542_s0 + $0x8] sm:$0xf0]  ;;  %v376_v22 = vld [vmem:[%s542_s0 + $0x14] sm:$0xf]  ;;  %v306_v23 = vld [vmem:[%s542_s0 + $0x18] sm:$0xf0]  ;;  %v297_v24 = vor.u32 %v375_v17, %v296_v16 }
   0x9   :  { %v301_v26 = vor.u32 %v374_v20, %v298_v21  ;;  %v309_v27 = vor.u32 %v376_v22, %v306_v23  ;;  %v243_v17 = vld [vmem:[%s543_s2] sm:$0x1] }
   0xa   :  { %171 = vmatpush.bf16.msra.mxu0 %v383_v4  ;;  %396 = vmatpush.bf16.msra.mxu2 %v383_v4  ;;  %v256_v21 = vld [vmem:[%s544_s3] sm:$0x1] }
   0xb   :  { %190 = vmatpush.bf16.msra.mxu1 %v391_v5  ;;  %404 = vmatpush.bf16.msra.mxu3 %v391_v5 }
   0xe   :  { %172 = vmatpush.bf16.msra.mxu0 %v382_v6  ;;  %397 = vmatpush.bf16.msra.mxu2 %v382_v6 }
   0xf   :  { %191 = vmatpush.bf16.msra.mxu1 %v390_v7  ;;  %405 = vmatpush.bf16.msra.mxu3 %v390_v7 }
  0x12   :  { %173 = vmatpush.bf16.msra.mxu0 %v381_v8  ;;  %398 = vmatpush.bf16.msra.mxu2 %v381_v8 }
  0x13   :  { %192 = vmatpush.bf16.msra.mxu1 %v389_v9  ;;  %406 = vmatpush.bf16.msra.mxu3 %v389_v9 }
  0x16   :  { %174 = vmatpush.bf16.msra.mxu0 %v380_v10  ;;  %399 = vmatpush.bf16.msra.mxu2 %v380_v10 }
  0x17   :  { %193 = vmatpush.bf16.msra.mxu1 %v388_v11  ;;  %407 = vmatpush.bf16.msra.mxu3 %v388_v11 }
  0x1a   :  { %175 = vmatpush.bf16.msra.mxu0 %v379_v12  ;;  %400 = vmatpush.bf16.msra.mxu2 %v379_v12 }
  0x1b   :  { %194 = vmatpush.bf16.msra.mxu1 %v387_v13  ;;  %408 = vmatpush.bf16.msra.mxu3 %v387_v13 }
  0x1e   :  { %176 = vmatpush.bf16.msra.mxu0 %v378_v14  ;;  %401 = vmatpush.bf16.msra.mxu2 %v378_v14 }
  0x1f   :  { %195 = vmatpush.bf16.msra.mxu1 %v386_v15  ;;  %409 = vmatpush.bf16.msra.mxu3 %v386_v15 }
  0x21   :  { %177 = vmatmul.bf16.vlgmr.msra.gmra.mxu0 %v297_v24  ;;  %182 = vmatmul.bf16.vlgmr.msra.gmra.mxu2 %v305_v25 }
  0x22   :  { %196 = vmatmul.bf16.vlgmr.msra.gmra.mxu1 %v301_v26  ;;  %201 = vmatmul.bf16.vlgmr.msra.gmra.mxu3 %v309_v27 }
  0x9e   :  { %v178_v28 = vpop.f32.mrf.mxu0 }
  0x9f   :  { %v197_v29 = vpop.f32.mrf.mxu1 }
  0xa0   :  { %v509_v30 = vadd.f32 %v197_v29, %v178_v28 }
  0xa2   :  { %v221_v35 = vmul.f32 %v509_v30, %v509_v30  ;;  %v208_v38 = vsel %vm207_vm0, %v509_v30, 0.0 }
  0xa4   :  { %v183_v31 = vpop.f32.mrf.mxu2  ;;  %v225_v42 = vsel %vm207_vm0, %v221_v35, 0.0 }
  0xa5   :  { %v202_v32 = vpop.f32.mrf.mxu3 }
  0xa6   :  { %v180_v33 = vpop.f32.mrf.mxu0  ;;  %v203_v36 = vadd.f32 %v202_v32, %v183_v31 }
  0xa7   :  { %v199_v34 = vpop.f32.mrf.mxu1 }
  0xa8   :  { %v200_v37 = vadd.f32 %v199_v34, %v180_v33  ;;  %v223_v43 = vmul.f32 %v203_v36, %v203_v36  ;;  %v211_v48 = vsel %vm207_vm0, %v203_v36, 0.0 }
  0xaa   :  { %v209_v39 = vsel %vm207_vm0, %v200_v37, 0.0  ;;  %v222_v40 = vmul.f32 %v200_v37, %v200_v37  ;;  %v228_v51 = vsel %vm207_vm0, %v223_v43, 0.0 }
  0xab   :  { %v210_v41 = vadd.f32 %v209_v39, %v208_v38 }
  0xac   :  { %v226_v44 = vsel %vm207_vm0, %v222_v40, 0.0  ;;  %v185_v45 = vpop.f32.mrf.mxu2 }
  0xad   :  { %v227_v46 = vadd.f32 %v226_v44, %v225_v42  ;;  %v204_v47 = vpop.f32.mrf.mxu3  ;;  %v212_v50 = vadd.f32 %v211_v48, %v210_v41 }
  0xae   :  { %v205_v49 = vadd.f32 %v204_v47, %v185_v45 }
  0xaf   :  { %v229_v55 = vadd.f32 %v228_v51, %v227_v46 }
  0xb0   :  { %v213_v52 = vsel %vm207_vm0, %v205_v49, 0.0  ;;  %v224_v53 = vmul.f32 %v205_v49, %v205_v49 }
  0xb1   :  { %v214_v54 = vadd.f32 %v213_v52, %v212_v50 }
  0xb2   :  { %v230_v56 = vsel %vm207_vm0, %v224_v53, 0.0 }
  0xb3   :  { %v215_v57 = vrot.slane %v214_v54, 4  ;;  %v231_v58 = vadd.f32 %v230_v56, %v229_v55 }
  0xb5   :  { %v216_v59 = vadd.f32 %v215_v57, %v214_v54  ;;  %v232_v60 = vrot.slane %v231_v58, 4 }
  0xb7   :  { %v217_v61 = vrot.slane %v216_v59, 2  ;;  %v233_v62 = vadd.f32 %v232_v60, %v231_v58 }
  0xb9   :  { %v218_v63 = vadd.f32 %v217_v61, %v216_v59  ;;  %v234_v0 = vrot.slane %v233_v62, 2 }
  0xbb   :  { %v219_v1 = vrot.slane %v218_v63, 1  ;;  %v235_v2 = vadd.f32 %v234_v0, %v233_v62 }
  0xbd   :  { %v220_v3 = vadd.f32 %v219_v1, %v218_v63  ;;  %v236_v4 = vrot.slane %v235_v2, 1 }
  0xbf   :  { %v237_v5 = vadd.f32 %v236_v4, %v235_v2  ;;  %v238_v6 = vmul.f32 0.03125, %v220_v3 }
  0xc1   :  { %v239_v7 = vmul.f32 0.03125, %v237_v5  ;;  %v240_v8 = vmul.f32 %v238_v6, %v238_v6 }
  0xc3   :  { %v241_v9 = vsub.f32 %v239_v7, %v240_v8 }
  0xc5   :  { %v242_v10 = vmax.f32 %v241_v9, 0.0 }
  0xc7   :  { %v244_v11 = vadd.f32 1e-05, %v242_v10 }
  0xc9   :  { %410 = vrsqrt.f32 %v244_v11  ;;  %vm251_vm2 = vweird.f32 %v244_v11 }
  0xcf   :  { %v411_v12 = vpop.eup %410 }
  0xd0   :  { %v246_v13 = vmul.f32 %v411_v12, %v244_v11  ;;  %vm252_vm1 = vweird.f32 %v411_v12 }
  0xd1   :  { %vm253_vm3 = vmor %vm251_vm2, %vm252_vm1 }
  0xd2   :  { %v247_v14 = vmul.f32 %v411_v12, %v246_v13 }
  0xd4   :  { %v248_v15 = vmul.f32 0.5, %v247_v14 }
  0xd6   :  { %v249_v16 = vsub.f32 1.5, %v248_v15 }
  0xd8   :  { %v250_v18 = vmul.f32 %v411_v12, %v249_v16 }
  0xda   :  { %v254_v19 = vsel %vm253_vm3, %v411_v12, %v250_v18 }
  0xdb   :  { %v255_v20 = vmul.f32 %v254_v19, %v243_v17 }
  0xdd   :  { %v257_v22 = vmul.f32 %v255_v20, %v238_v6  ;;  %v260_v23 = vperm.slane %v255_v20, 0 }
  0xdf   :  { %v258_v24 = vsub.f32 %v256_v21, %v257_v22  ;;  %v262_v25 = vmul.f32 %v260_v23, %v509_v30  ;;  %v263_v26 = vmul.f32 %v260_v23, %v200_v37  ;;  %v264_v27 = vmul.f32 %v260_v23, %v203_v36 }
  0xe0   :  { %v265_v28 = vmul.f32 %v260_v23, %v205_v49 }
  0xe1   :  { %v267_v29 = vperm.slane %v258_v24, 0 }
  0xe3   :  { %v269_v31 = vadd.f32 %v267_v29, %v262_v25  ;;  %v270_v32 = vadd.f32 %v267_v29, %v263_v26  ;;  %v271_v33 = vadd.f32 %v267_v29, %v264_v27  ;;  %v272_v34 = vadd.f32 %v267_v29, %v265_v28 }
  0xe5   :  { %v273_v35 = vmul.f32 0.2, %v269_v31  ;;  %v274_v38 = vmul.f32 0.2, %v270_v32  ;;  %v275_v39 = vmul.f32 0.2, %v271_v33 }
  0xe6   :  { %v276_v40 = vmul.f32 0.2, %v272_v34 }
  0xe7   :  { %v277_v41 = vmax.f32 %v269_v31, %v273_v35  ;;  %v278_v42 = vmax.f32 %v270_v32, %v274_v38  ;;  %v279_v43 = vmax.f32 %v271_v33, %v275_v39 }
  0xe8   :  { %v280_v44 = vmax.f32 %v272_v34, %v276_v40 }
  0xe9   :  { %v281_v45 = vpack.c.bf16 %v277_v41, %v277_v41  ;;  %v282_v46 = vpack.c.bf16 %v278_v42, %v278_v42  ;;  %v283_v30 = vpack.c.bf16 %v279_v43, %v279_v43 }
  0xea   :  { %v284_v37 = vpack.c.bf16 %v280_v44, %v280_v44 }
  0xeb   :  { %286 = vst.msk [vmem:[%s545_s4] sm:$0xf] %vm285_vm4, %v281_v45 }
  0xec   :  { %287 = vst.msk [vmem:[%s545_s4 + $0x4] sm:$0xf] %vm285_vm4, %v282_v46 }
  0xed   :  { %288 = vst.msk [vmem:[%s545_s4 + $0x8] sm:$0xf] %vm285_vm4, %v283_v30 }
  0xee   :  { %289 = vst.msk [vmem:[%s545_s4 + $0xc] sm:$0xf] %vm285_vm4, %v284_v37 }

// kernel: encoder_forward.9
= control target key start
LH: loop header
LB: loop body
LE: loop exit
PB: predicated region body
PF: predicated region fallthrough
CT: control target
= control target key end

     0   :  { %vm335_vm0 = vcmask 261120   ;;  %s621_s1 = inlined_call_operand.vmem [shape: bf16[512,32], index: 1, kind: input, shape index: {}]   ;;  %s622_s0 = inlined_call_operand.vmem [shape: bf16[8,512], index: 0, kind: input, shape index: {}]   ;;  %s623_s2 = inlined_call_operand.vmem [shape: f32[8,32], index: 2, kind: output, shape index: {}]  }
   0x1   :  { %v476_v0 = vld [vmem:[%s621_s1 + $0x38] sm:$0xff]  ;;  %v475_v4 = vld [vmem:[%s621_s1 + $0x30] sm:$0xff]  ;;  %v474_v8 = vld [vmem:[%s621_s1 + $0x28] sm:$0xff] }
   0x2   :  { %v484_v1 = vld [vmem:[%s621_s1 + $0x78] sm:$0xff]  ;;  %283 = vmatpush.bf16.msra.mxu0 %v476_v0  ;;  %v483_v5 = vld [vmem:[%s621_s1 + $0x70] sm:$0xff]  ;;  %v482_v9 = vld [vmem:[%s621_s1 + $0x68] sm:$0xff] }
   0x3   :  { %v492_v2 = vld [vmem:[%s621_s1 + $0xb8] sm:$0xff]  ;;  %296 = vmatpush.bf16.msra.mxu1 %v484_v1  ;;  %v491_v6 = vld [vmem:[%s621_s1 + $0xb0] sm:$0xff]  ;;  %v490_v10 = vld [vmem:[%s621_s1 + $0xa8] sm:$0xff] }
   0x4   :  { %v500_v3 = vld [vmem:[%s621_s1 + $0xf8] sm:$0xff]  ;;  %309 = vmatpush.bf16.msra.mxu2 %v492_v2  ;;  %v499_v7 = vld [vmem:[%s621_s1 + $0xf0] sm:$0xff]  ;;  %v498_v11 = vld [vmem:[%s621_s1 + $0xe8] sm:$0xff] }
   0x5   :  { %322 = vmatpush.bf16.msra.mxu3 %v500_v3  ;;  %v473_v12 = vld [vmem:[%s621_s1 + $0x20] sm:$0xff]  ;;  %v472_v16 = vld [vmem:[%s621_s1 + $0x18] sm:$0xff]  ;;  %v471_v20 = vld [vmem:[%s621_s1 + $0x10] sm:$0xff] }
   0x6   :  { %284 = vmatpush.bf16.msra.mxu0 %v475_v4  ;;  %v481_v13 = vld [vmem:[%s621_s1 + $0x60] sm:$0xff]  ;;  %v480_v17 = vld [vmem:[%s621_s1 + $0x58] sm:$0xff]  ;;  %v479_v21 = vld [vmem:[%s621_s1 + $0x50] sm:$0xff] }
   0x7   :  { %297 = vmatpush.bf16.msra.mxu1 %v483_v5  ;;  %v489_v14 = vld [vmem:[%s621_s1 + $0xa0] sm:$0xff]  ;;  %v488_v18 = vld [vmem:[%s621_s1 + $0x98] sm:$0xff]  ;;  %v487_v22 = vld [vmem:[%s621_s1 + $0x90] sm:$0xff] }
   0x8   :  { %310 = vmatpush.bf16.msra.mxu2 %v491_v6  ;;  %v497_v15 = vld [vmem:[%s621_s1 + $0xe0] sm:$0xff]  ;;  %v496_v19 = vld [vmem:[%s621_s1 + $0xd8] sm:$0xff]  ;;  %v495_v23 = vld [vmem:[%s621_s1 + $0xd0] sm:$0xff] }
   0x9   :  { %323 = vmatpush.bf16.msra.mxu3 %v499_v7  ;;  %v470_v24 = vld [vmem:[%s621_s1 + $0x8] sm:$0xff]  ;;  %v11_v26 = vld [vmem:[%s622_s0] sm:$0xff] }
   0xa   :  { %285 = vmatpush.bf16.msra.mxu0 %v474_v8  ;;  %v478_v25 = vld [vmem:[%s621_s1 + $0x48] sm:$0xff]  ;;  %v79_v30 = vunpack.c.l.b16 %v11_v26  ;;  %v80_v31 = vunpack.c.h.b16 %v11_v26  ;;  %v469_v32 = vld [vmem:[%s621_s1] sm:$0xff] }
   0xb   :  { %298 = vmatpush.bf16.msra.mxu1 %v482_v9  ;;  %v486_v27 = vld [vmem:[%s621_s1 + $0x88] sm:$0xff]  ;;  %v477_v33 = vld [vmem:[%s621_s1 + $0x40] sm:$0xff] }
   0xc   :  { %311 = vmatpush.bf16.msra.mxu2 %v490_v10  ;;  %v494_v28 = vld [vmem:[%s621_s1 + $0xc8] sm:$0xff]  ;;  %v485_v36 = vld [vmem:[%s621_s1 + $0x80] sm:$0xff]  ;;  %v83_v38 = vpack.c.b16 %v79_v30, %v79_v30  ;;  %v84_v39 = vpack.c.b16 %v80_v31, %v80_v31 }
   0xd   :  { %324 = vmatpush.bf16.msra.mxu3 %v498_v11  ;;  %v12_v29 = vld [vmem:[%s622_s0 + $0x8] sm:$0xff]  ;;  %v493_v37 = vld [vmem:[%s621_s1 + $0xc0] sm:$0xff] }
   0xe   :  { %286 = vmatpush.bf16.msra.mxu0 %v473_v12  ;;  %v81_v34 = vunpack.c.l.b16 %v12_v29  ;;  %v82_v35 = vunpack.c.h.b16 %v12_v29 }
   0xf   :  { %299 = vmatpush.bf16.msra.mxu1 %v481_v13 }
  0x10   :  { %312 = vmatpush.bf16.msra.mxu2 %v489_v14  ;;  %v85_v40 = vpack.c.b16 %v81_v34, %v81_v34  ;;  %v86_v41 = vpack.c.b16 %v82_v35, %v82_v35 }
  0x11   :  { %325 = vmatpush.bf16.msra.mxu3 %v497_v15 }
  0x12   :  { %287 = vmatpush.bf16.msra.mxu0 %v472_v16 }
  0x13   :  { %300 = vmatpush.bf16.msra.mxu1 %v480_v17 }
  0x14   :  { %313 = vmatpush.bf16.msra.mxu2 %v488_v18 }
  0x15   :  { %326 = vmatpush.bf16.msra.mxu3 %v496_v19 }
  0x16   :  { %288 = vmatpush.bf16.msra.mxu0 %v471_v20 }
  0x17   :  { %301 = vmatpush.bf16.msra.mxu1 %v479_v21 }
  0x18   :  { %314 = vmatpush.bf16.msra.mxu2 %v487_v22 }
  0x19   :  { %327 = vmatpush.bf16.msra.mxu3 %v495_v23 }
  0x1a   :  { %289 = vmatpush.bf16.msra.mxu0 %v470_v24 }
  0x1b   :  { %302 = vmatpush.bf16.msra.mxu1 %v478_v25 }
  0x1c   :  { %315 = vmatpush.bf16.msra.mxu2 %v486_v27 }
  0x1d   :  { %328 = vmatpush.bf16.msra.mxu3 %v494_v28 }
  0x1e   :  { %290 = vmatpush.bf16.msra.mxu0 %v469_v32 }
  0x1f   :  { %303 = vmatpush.bf16.msra.mxu1 %v477_v33 }
  0x20   :  { %316 = vmatpush.bf16.msra.mxu2 %v485_v36 }
  0x21   :  { %329 = vmatpush.bf16.msra.mxu3 %v493_v37  ;;  %291 = vmatmul.bf16.vlgmr.msra.gmra.mxu0 %v83_v38 }
  0x22   :  { %304 = vmatmul.bf16.vlgmr.msra.gmra.mxu1 %v84_v39 }
  0x23   :  { %317 = vmatmul.bf16.vlgmr.msra.gmra.mxu2 %v85_v40 }
  0x24   :  { %330 = vmatmul.bf16.vlgmr.msra.gmra.mxu3 %v86_v41 }
  0x9e   :  { %v292_v42 = vpop.f32.mrf.mxu0 }
  0x9f   :  { %v305_v43 = vpop.f32.mrf.mxu1 }
  0xa0   :  { %v306_v44 = vadd.f32 %v305_v43, %v292_v42 }
  0xa6   :  { %v318_v45 = vpop.f32.mrf.mxu2  ;;  %v294_v48 = vpop.f32.mrf.mxu0 }
  0xa7   :  { %v331_v46 = vpop.f32.mrf.mxu3  ;;  %v319_v47 = vadd.f32 %v318_v45, %v306_v44  ;;  %v307_v49 = vpop.f32.mrf.mxu1 }
  0xa9   :  { %v332_v50 = vadd.f32 %v331_v46, %v319_v47 }
  0xab   :  { %336 = vst.msk [vmem:[%s623_s2] sm:$0xff] %vm335_vm0, %v332_v50 }
  0xae   :  { %v320_v51 = vpop.f32.mrf.mxu2 }
  0xaf   :  { %v333_v52 = vpop.f32.mrf.mxu3 }

</bundles_post_ra>
